<compile_context>
chip_gen: v6e
topology: v6e:2x2x1
jax: 0.10.0
libtpu: 0.0.40
codegen_flags: <defaults>
</compile_context>

<pallas_src>
import jax
import jax.numpy as jnp
from jax.experimental import pallas as pl
from jax.experimental.pallas import tpu as pltpu  # noqa: F401  (TPU backend assumed)

# ----------------------------- config -------------------------------------
FEATURE_SIZE = 25
PATCH = 5
N_SEQ = FEATURE_SIZE // PATCH          # 5 patches
SEQ = N_SEQ + 1                        # 6 tokens (class token + patches)
D_MODEL = 64
HIDDEN = 256
NUM_HEADS = 4
HEAD_DIM = D_MODEL // NUM_HEADS        # 16
NUM_LAYERS = 2                         # module default is 6; same per-layer math
N_CLASSES = 1
LN_EPS = 1e-5

_PER_LAYER_REFS = 12                   # ln1(g,b) qkv(w,b) out(w,b) ln2(g,b) fc1(w,b) fc2(w,b)
_N_FIXED_REFS = 6                      # x_patches, t, mask, cls_rows, patch_bias, reproj_w


def _full_spec(shape):
    """BlockSpec covering the whole array (grid = ())."""
    nd = len(shape)
    return pl.BlockSpec(shape, lambda *_: (0,) * nd)


# ------------------------- in-kernel helpers -------------------------------
def _layernorm(x, g, b):
    mu = jnp.mean(x, axis=-1, keepdims=True)
    var = jnp.mean(jnp.square(x - mu), axis=-1, keepdims=True)
    return (x - mu) * jax.lax.rsqrt(var + LN_EPS) * g + b


def _erf_poly(x):
    # Abramowitz & Stegun 7.1.26, |error| < 1.5e-7 (float32-exact in practice).
    a1, a2, a3 = 0.254829592, -0.284496736, 1.421413741
    a4, a5, p = -1.453152027, 1.061405429, 0.3275911
    sgn = jnp.where(x >= 0.0, 1.0, -1.0)
    ax = jnp.abs(x)
    tt = 1.0 / (1.0 + p * ax)
    poly = ((((a5 * tt + a4) * tt + a3) * tt + a2) * tt + a1) * tt
    return sgn * (1.0 - poly * jnp.exp(-ax * ax))


def _gelu_exact(x):
    # torch nn.GELU() default (erf-based).
    return 0.5 * x * (1.0 + _erf_poly(x * 0.7071067811865476))


# --------------------------- fused forward kernel --------------------------
def _fused_forward_kernel(*refs):
    """Whole FTransformer forward on VMEM-resident data.

    refs = (x_patches, t, mask, cls_rows, patch_bias, reproj_w,
            [12 refs per encoder layer] * NUM_LAYERS,
            enc_ln_g, enc_ln_b, head_w, head_b, out_ref)

    Token-slab row layout (R = B*SEQ rows, D_MODEL lanes):
      rows 0..B-1           : class token of batch 0..B-1
      rows B + b*N_SEQ + j  : patch j of batch b
    `mask` is the (R, R) block-diagonal additive attention mask (0 / -1e30)
    keeping attention within each batch element (permutation-equivalent to
    the interleaved per-sequence layout).
    """
    n_layer_refs = NUM_LAYERS * _PER_LAYER_REFS
    x_ref, t_ref, mask_ref, cls_ref, pbias_ref, rw_ref = refs[:_N_FIXED_REFS]
    layer_refs = refs[_N_FIXED_REFS:_N_FIXED_REFS + n_layer_refs]
    enc_g_ref, enc_b_ref, hw_ref, hb_ref = refs[_N_FIXED_REFS + n_layer_refs:-1]
    out_ref = refs[-1]

    f32 = jnp.float32
    batch = t_ref.shape[0]

    # Patch re-projection (Linear patch -> d_model).  The reproj bias plus the
    # token-type and positional embeddings are pre-folded into `patch_bias`,
    # and into `cls_rows` for the class-token rows.
    tokens = jnp.dot(x_ref[...], rw_ref[...], preferred_element_type=f32) + pbias_ref[...]
    h = jnp.concatenate([cls_ref[...], tokens], axis=0)              # (R, D)

    mask = mask_ref[...]
    scale = 1.0 / (HEAD_DIM ** 0.5)

    for layer in range(NUM_LAYERS):                                  # unrolled
        (ln1_g, ln1_b, qkv_w, qkv_b, out_w, out_b,
         ln2_g, ln2_b, fc1_w, fc1_b, fc2_w, fc2_b) = [
            r[...] for r in layer_refs[_PER_LAYER_REFS * layer:
                                       _PER_LAYER_REFS * (layer + 1)]]

        # ---- pre-LN multi-head self-attention -----------------------------
        y = _layernorm(h, ln1_g, ln1_b)
        qkv = jnp.dot(y, qkv_w, preferred_element_type=f32) + qkv_b  # (R, 3D)
        attn = jnp.zeros_like(h)
        for hh in range(NUM_HEADS):
            lo = hh * HEAD_DIM
            q = qkv[:, lo:lo + HEAD_DIM]
            k = qkv[:, D_MODEL + lo:D_MODEL + lo + HEAD_DIM]
            v = qkv[:, 2 * D_MODEL + lo:2 * D_MODEL + lo + HEAD_DIM]
            s = jax.lax.dot_general(q, k, (((1,), (1,)), ((), ())),
                                    preferred_element_type=f32) * scale + mask
            m = jnp.max(s, axis=-1, keepdims=True)
            p = jnp.exp(s - m)
            p = p * pl.reciprocal(jnp.sum(p, axis=-1, keepdims=True), approx=True)
            o_h = jnp.dot(p, v, preferred_element_type=f32)          # (R, HEAD_DIM)
            # fold this head straight into its slice of the output projection
            attn = attn + jnp.dot(o_h, out_w[lo:lo + HEAD_DIM, :],
                                  preferred_element_type=f32)
        h = h + attn + out_b

        # ---- pre-LN MLP (exact GELU) ---------------------------------------
        y2 = _layernorm(h, ln2_g, ln2_b)
        m1 = _gelu_exact(jnp.dot(y2, fc1_w, preferred_element_type=f32) + fc1_b)
        h = h + jnp.dot(m1, fc2_w, preferred_element_type=f32) + fc2_b

    # final encoder LayerNorm
    h = _layernorm(h, enc_g_ref[...], enc_b_ref[...])

    # class-token head: fused [d0 | d1] matmul, then factual / counterfactual
    x_cls = h[:batch, :]                                             # (B, D)
    preds = jnp.dot(x_cls, hw_ref[...], preferred_element_type=f32) + hb_ref[...]
    p0 = preds[:, :N_CLASSES]
    p1 = preds[:, N_CLASSES:2 * N_CLASSES]
    t = t_ref[...]
    yf = jnp.where(t > 0.0, p1, p0)
    ycf = jnp.where(t > 0.0, p0, p1)
    out_ref[...] = jnp.concatenate([yf, ycf], axis=1)                # (B, 2*n_classes)


# ----------------------------- parameters ----------------------------------
def init_params(key):
    keys = iter(jax.random.split(key, 8 + 6 * NUM_LAYERS))

    def dense(k, fan_in, fan_out):
        lim = 1.0 / (fan_in ** 0.5)
        kw, kb = jax.random.split(k)
        w = jax.random.uniform(kw, (fan_in, fan_out), jnp.float32, -lim, lim)
        b = jax.random.uniform(kb, (fan_out,), jnp.float32, -lim, lim)
        return w, b

    p = {}
    p["reproj_w"], p["reproj_b"] = dense(next(keys), PATCH, D_MODEL)
    p["class_token"] = jnp.zeros((1, 1, D_MODEL), jnp.float32)
    p["token_type_table"] = 0.02 * jax.random.normal(next(keys), (4, D_MODEL), jnp.float32)
    p["pos_embedding"] = 0.02 * jax.random.normal(
        next(keys), (1, 2 * N_SEQ + 2, D_MODEL), jnp.float32)
    p["d0_w"], p["d0_b"] = dense(next(keys), D_MODEL, N_CLASSES)
    p["d1_w"], p["d1_b"] = dense(next(keys), D_MODEL, N_CLASSES)
    p["enc_ln_g"] = jnp.ones((D_MODEL,), jnp.float32)
    p["enc_ln_b"] = jnp.zeros((D_MODEL,), jnp.float32)

    layers = []
    for _ in range(NUM_LAYERS):
        lp = {}
        lp["ln1_g"] = jnp.ones((D_MODEL,), jnp.float32)
        lp["ln1_b"] = jnp.zeros((D_MODEL,), jnp.float32)
        lp["qkv_w"], lp["qkv_b"] = dense(next(keys), D_MODEL, 3 * D_MODEL)
        lp["out_w"], lp["out_b"] = dense(next(keys), D_MODEL, D_MODEL)
        lp["ln2_g"] = jnp.ones((D_MODEL,), jnp.float32)
        lp["ln2_b"] = jnp.zeros((D_MODEL,), jnp.float32)
        lp["fc1_w"], lp["fc1_b"] = dense(next(keys), D_MODEL, HIDDEN)
        lp["fc2_w"], lp["fc2_b"] = dense(next(keys), HIDDEN, D_MODEL)
        layers.append(lp)
    p["layers"] = layers
    return p


# ----------------------------- forward pass --------------------------------
def ftransformer_forward(params, x, t, token_type=True, position_emb=True):
    """x: (B, feature_size) f32, t: (B, 1) f32 -> (yf, ycf) each (B, n_classes)."""
    B = x.shape[0]
    x_p = x.reshape(B * N_SEQ, PATCH).astype(jnp.float32)            # patchify
    t = t.astype(jnp.float32).reshape(B, 1)

    # Fold token-type + positional embeddings (plus class token / reproj bias)
    # into two small additive tensors so the kernel adds each exactly once.
    extra = jnp.zeros((SEQ, D_MODEL), jnp.float32)
    if token_type:
        # token_type_ids = [2] + [0]*N_SEQ  (one-hot @ table == table[ids])
        tt_ids = jnp.array([2] + [0] * N_SEQ, jnp.int32)
        extra = extra + params["token_type_table"][tt_ids]
    if position_emb:
        extra = extra + params["pos_embedding"][0, :SEQ, :]

    cls_rows = jnp.broadcast_to(params["class_token"][0] + extra[0:1], (B, D_MODEL))
    patch_bias = jnp.tile(params["reproj_b"].reshape(1, D_MODEL) + extra[1:], (B, 1))

    # Block-diagonal additive attention mask for the row layout
    # [cls(b=0..B-1), patches of b=0, patches of b=1, ...].
    batch_id = jnp.concatenate([jnp.arange(B, dtype=jnp.int32),
                                jnp.repeat(jnp.arange(B, dtype=jnp.int32), N_SEQ)])
    mask = jnp.where(batch_id[:, None] == batch_id[None, :], 0.0, -1e30
                     ).astype(jnp.float32)

    # Fused factual / counterfactual head weights: [d0 | d1].
    head_w = jnp.concatenate([params["d0_w"], params["d1_w"]], axis=1)   # (D, 2*n_cls)
    head_b = jnp.concatenate([params["d0_b"], params["d1_b"]]).reshape(1, 2 * N_CLASSES)

    inputs = [x_p, t, mask, cls_rows, patch_bias, params["reproj_w"]]
    for lp in params["layers"]:
        inputs += [lp["ln1_g"].reshape(1, -1), lp["ln1_b"].reshape(1, -1),
                   lp["qkv_w"], lp["qkv_b"].reshape(1, -1),
                   lp["out_w"], lp["out_b"].reshape(1, -1),
                   lp["ln2_g"].reshape(1, -1), lp["ln2_b"].reshape(1, -1),
                   lp["fc1_w"], lp["fc1_b"].reshape(1, -1),
                   lp["fc2_w"], lp["fc2_b"].reshape(1, -1)]
    inputs += [params["enc_ln_g"].reshape(1, -1), params["enc_ln_b"].reshape(1, -1),
               head_w, head_b]

    out = pl.pallas_call(
        _fused_forward_kernel,
        out_shape=jax.ShapeDtypeStruct((B, 2 * N_CLASSES), jnp.float32),
        in_specs=[_full_spec(a.shape) for a in inputs],
        out_specs=_full_spec((B, 2 * N_CLASSES)),
    )(*inputs)

    yf = out[:, :N_CLASSES]
    ycf = out[:, N_CLASSES:]
    return yf, ycf


# --------------------------------- main -------------------------------------
if __name__ == "__main__":
    key = jax.random.PRNGKey(0)
    kp, kx, kt = jax.random.split(key, 3)

    params = init_params(kp)
    B = 2
    x = jax.random.normal(kx, (B, FEATURE_SIZE), jnp.float32)
    t = (jax.random.uniform(kt, (B, 1)) > 0.5).astype(jnp.float32)  # treatment flag

    fwd = jax.jit(ftransformer_forward)
    yf, ycf = fwd(params, x, t)
    jax.block_until_ready((yf, ycf))

    assert yf.shape == (B, N_CLASSES) and ycf.shape == (B, N_CLASSES)
    assert bool(jnp.all(jnp.isfinite(yf))) and bool(jnp.all(jnp.isfinite(ycf)))
    print("KERNEL_OK")
</pallas_src>

<mosaic_0001>
module attributes {stable_mosaic.version = 11 : i64} {
  func.func @_fused_forward_kernel(%arg0: memref<10x5xf32, #tpu.memory_space<vmem>>, %arg1: memref<2x1xf32, #tpu.memory_space<vmem>>, %arg2: memref<12x12xf32, #tpu.memory_space<vmem>>, %arg3: memref<2x64xf32, #tpu.memory_space<vmem>>, %arg4: memref<10x64xf32, #tpu.memory_space<vmem>>, %arg5: memref<5x64xf32, #tpu.memory_space<vmem>>, %arg6: memref<1x64xf32, #tpu.memory_space<vmem>>, %arg7: memref<1x64xf32, #tpu.memory_space<vmem>>, %arg8: memref<64x192xf32, #tpu.memory_space<vmem>>, %arg9: memref<1x192xf32, #tpu.memory_space<vmem>>, %arg10: memref<64x64xf32, #tpu.memory_space<vmem>>, %arg11: memref<1x64xf32, #tpu.memory_space<vmem>>, %arg12: memref<1x64xf32, #tpu.memory_space<vmem>>, %arg13: memref<1x64xf32, #tpu.memory_space<vmem>>, %arg14: memref<64x256xf32, #tpu.memory_space<vmem>>, %arg15: memref<1x256xf32, #tpu.memory_space<vmem>>, %arg16: memref<256x64xf32, #tpu.memory_space<vmem>>, %arg17: memref<1x64xf32, #tpu.memory_space<vmem>>, %arg18: memref<1x64xf32, #tpu.memory_space<vmem>>, %arg19: memref<1x64xf32, #tpu.memory_space<vmem>>, %arg20: memref<64x192xf32, #tpu.memory_space<vmem>>, %arg21: memref<1x192xf32, #tpu.memory_space<vmem>>, %arg22: memref<64x64xf32, #tpu.memory_space<vmem>>, %arg23: memref<1x64xf32, #tpu.memory_space<vmem>>, %arg24: memref<1x64xf32, #tpu.memory_space<vmem>>, %arg25: memref<1x64xf32, #tpu.memory_space<vmem>>, %arg26: memref<64x256xf32, #tpu.memory_space<vmem>>, %arg27: memref<1x256xf32, #tpu.memory_space<vmem>>, %arg28: memref<256x64xf32, #tpu.memory_space<vmem>>, %arg29: memref<1x64xf32, #tpu.memory_space<vmem>>, %arg30: memref<1x64xf32, #tpu.memory_space<vmem>>, %arg31: memref<1x64xf32, #tpu.memory_space<vmem>>, %arg32: memref<64x2xf32, #tpu.memory_space<vmem>>, %arg33: memref<1x2xf32, #tpu.memory_space<vmem>>, %arg34: memref<2x2xf32, #tpu.memory_space<vmem>>) attributes {dimension_semantics = [], scalar_prefetch = 0 : i64, scratch_operands = 0 : i64, tpu.core_type = #tpu.core_type<tc>} {
    %c0 = arith.constant 0 : index
    %c0_0 = arith.constant 0 : index
    %0 = vector.load %arg0[%c0, %c0_0] : memref<10x5xf32, #tpu.memory_space<vmem>>, vector<10x5xf32>
    %c0_1 = arith.constant 0 : index
    %c0_2 = arith.constant 0 : index
    %1 = vector.load %arg5[%c0_1, %c0_2] : memref<5x64xf32, #tpu.memory_space<vmem>>, vector<5x64xf32>
    %cst = arith.constant dense<0.000000e+00> : vector<10x64xf32>
    %2 = tpu.matmul %0, %1, %cst {dimension_numbers = #tpu.dot_dimension_numbers<[1], [0], [0], [1], [0, 0, 1, 1], [], []>} : vector<10x5xf32>, vector<5x64xf32>, vector<10x64xf32> -> vector<10x64xf32>
    %c0_3 = arith.constant 0 : index
    %c0_4 = arith.constant 0 : index
    %3 = vector.load %arg4[%c0_3, %c0_4] : memref<10x64xf32, #tpu.memory_space<vmem>>, vector<10x64xf32>
    %4 = arith.addf %2, %3 : vector<10x64xf32>
    %c0_5 = arith.constant 0 : index
    %c0_6 = arith.constant 0 : index
    %5 = vector.load %arg3[%c0_5, %c0_6] : memref<2x64xf32, #tpu.memory_space<vmem>>, vector<2x64xf32>
    %6 = tpu.concatenate %5, %4 in 0 : vector<2x64xf32>, vector<10x64xf32> -> vector<12x64xf32>
    %c0_7 = arith.constant 0 : index
    %c0_8 = arith.constant 0 : index
    %7 = vector.load %arg2[%c0_7, %c0_8] : memref<12x12xf32, #tpu.memory_space<vmem>>, vector<12x12xf32>
    %c0_9 = arith.constant 0 : index
    %c0_10 = arith.constant 0 : index
    %8 = vector.load %arg6[%c0_9, %c0_10] : memref<1x64xf32, #tpu.memory_space<vmem>>, vector<1x64xf32>
    %c0_11 = arith.constant 0 : index
    %c0_12 = arith.constant 0 : index
    %9 = vector.load %arg7[%c0_11, %c0_12] : memref<1x64xf32, #tpu.memory_space<vmem>>, vector<1x64xf32>
    %c0_13 = arith.constant 0 : index
    %c0_14 = arith.constant 0 : index
    %10 = vector.load %arg8[%c0_13, %c0_14] : memref<64x192xf32, #tpu.memory_space<vmem>>, vector<64x192xf32>
    %c0_15 = arith.constant 0 : index
    %c0_16 = arith.constant 0 : index
    %11 = vector.load %arg9[%c0_15, %c0_16] : memref<1x192xf32, #tpu.memory_space<vmem>>, vector<1x192xf32>
    %c0_17 = arith.constant 0 : index
    %c0_18 = arith.constant 0 : index
    %12 = vector.load %arg10[%c0_17, %c0_18] : memref<64x64xf32, #tpu.memory_space<vmem>>, vector<64x64xf32>
    %c0_19 = arith.constant 0 : index
    %c0_20 = arith.constant 0 : index
    %13 = vector.load %arg11[%c0_19, %c0_20] : memref<1x64xf32, #tpu.memory_space<vmem>>, vector<1x64xf32>
    %c0_21 = arith.constant 0 : index
    %c0_22 = arith.constant 0 : index
    %14 = vector.load %arg12[%c0_21, %c0_22] : memref<1x64xf32, #tpu.memory_space<vmem>>, vector<1x64xf32>
    %c0_23 = arith.constant 0 : index
    %c0_24 = arith.constant 0 : index
    %15 = vector.load %arg13[%c0_23, %c0_24] : memref<1x64xf32, #tpu.memory_space<vmem>>, vector<1x64xf32>
    %c0_25 = arith.constant 0 : index
    %c0_26 = arith.constant 0 : index
    %16 = vector.load %arg14[%c0_25, %c0_26] : memref<64x256xf32, #tpu.memory_space<vmem>>, vector<64x256xf32>
    %c0_27 = arith.constant 0 : index
    %c0_28 = arith.constant 0 : index
    %17 = vector.load %arg15[%c0_27, %c0_28] : memref<1x256xf32, #tpu.memory_space<vmem>>, vector<1x256xf32>
    %c0_29 = arith.constant 0 : index
    %c0_30 = arith.constant 0 : index
    %18 = vector.load %arg16[%c0_29, %c0_30] : memref<256x64xf32, #tpu.memory_space<vmem>>, vector<256x64xf32>
    %c0_31 = arith.constant 0 : index
    %c0_32 = arith.constant 0 : index
    %19 = vector.load %arg17[%c0_31, %c0_32] : memref<1x64xf32, #tpu.memory_space<vmem>>, vector<1x64xf32>
    %cst_33 = arith.constant dense<0.000000e+00> : vector<12xf32>
    %20 = vector.multi_reduction <add>, %6, %cst_33 [1] : vector<12x64xf32> to vector<12xf32>
    %21 = vector.shape_cast %20 : vector<12xf32> to vector<12x1xf32>
    %cst_34 = arith.constant 6.400000e+01 : f32
    %22 = vector.broadcast %cst_34 : f32 to vector<12x1xf32>
    %23 = arith.divf %21, %22 : vector<12x1xf32>
    %24 = vector.broadcast %23 : vector<12x1xf32> to vector<12x64xf32>
    %25 = arith.subf %6, %24 : vector<12x64xf32>
    %26 = arith.mulf %25, %25 : vector<12x64xf32>
    %cst_35 = arith.constant dense<0.000000e+00> : vector<12xf32>
    %27 = vector.multi_reduction <add>, %26, %cst_35 [1] : vector<12x64xf32> to vector<12xf32>
    %28 = vector.shape_cast %27 : vector<12xf32> to vector<12x1xf32>
    %cst_36 = arith.constant 6.400000e+01 : f32
    %29 = vector.broadcast %cst_36 : f32 to vector<12x1xf32>
    %30 = arith.divf %28, %29 : vector<12x1xf32>
    %31 = vector.broadcast %23 : vector<12x1xf32> to vector<12x64xf32>
    %32 = arith.subf %6, %31 : vector<12x64xf32>
    %cst_37 = arith.constant 9.99999974E-6 : f32
    %33 = vector.broadcast %cst_37 : f32 to vector<12x1xf32>
    %34 = arith.addf %30, %33 : vector<12x1xf32>
    %35 = math.rsqrt %34 : vector<12x1xf32>
    %36 = vector.broadcast %35 : vector<12x1xf32> to vector<12x64xf32>
    %37 = arith.mulf %32, %36 : vector<12x64xf32>
    %38 = vector.broadcast %8 : vector<1x64xf32> to vector<12x64xf32>
    %39 = arith.mulf %37, %38 : vector<12x64xf32>
    %40 = vector.broadcast %9 : vector<1x64xf32> to vector<12x64xf32>
    %41 = arith.addf %39, %40 : vector<12x64xf32>
    %cst_38 = arith.constant dense<0.000000e+00> : vector<12x192xf32>
    %42 = tpu.matmul %41, %10, %cst_38 {dimension_numbers = #tpu.dot_dimension_numbers<[1], [0], [0], [1], [0, 0, 1, 1], [], []>} : vector<12x64xf32>, vector<64x192xf32>, vector<12x192xf32> -> vector<12x192xf32>
    %43 = vector.broadcast %11 : vector<1x192xf32> to vector<12x192xf32>
    %44 = arith.addf %42, %43 : vector<12x192xf32>
    %cst_39 = arith.constant 0.000000e+00 : f32
    %45 = vector.broadcast %cst_39 : f32 to vector<12x64xf32>
    %46 = vector.extract_strided_slice %44 {offsets = [0, 0], sizes = [12, 16], strides = [1, 1]} : vector<12x192xf32> to vector<12x16xf32>
    %47 = vector.extract_strided_slice %44 {offsets = [0, 64], sizes = [12, 16], strides = [1, 1]} : vector<12x192xf32> to vector<12x16xf32>
    %48 = vector.extract_strided_slice %44 {offsets = [0, 128], sizes = [12, 16], strides = [1, 1]} : vector<12x192xf32> to vector<12x16xf32>
    %cst_40 = arith.constant dense<0.000000e+00> : vector<12x12xf32>
    %49 = tpu.matmul %46, %47, %cst_40 {dimension_numbers = #tpu.dot_dimension_numbers<[1], [1], [0], [0], [0, 0, 1, 0], [], []>} : vector<12x16xf32>, vector<12x16xf32>, vector<12x12xf32> -> vector<12x12xf32>
    %cst_41 = arith.constant 2.500000e-01 : f32
    %50 = vector.broadcast %cst_41 : f32 to vector<12x12xf32>
    %51 = arith.mulf %49, %50 : vector<12x12xf32>
    %52 = arith.addf %51, %7 : vector<12x12xf32>
    %cst_42 = arith.constant dense<0xFF800000> : vector<12xf32>
    %53 = vector.multi_reduction <maximumf>, %52, %cst_42 [1] : vector<12x12xf32> to vector<12xf32>
    %54 = vector.shape_cast %53 : vector<12xf32> to vector<12x1xf32>
    %55 = vector.broadcast %54 : vector<12x1xf32> to vector<12x12xf32>
    %56 = arith.subf %52, %55 : vector<12x12xf32>
    %57 = math.exp %56 : vector<12x12xf32>
    %cst_43 = arith.constant dense<0.000000e+00> : vector<12xf32>
    %58 = vector.multi_reduction <add>, %57, %cst_43 [1] : vector<12x12xf32> to vector<12xf32>
    %59 = vector.shape_cast %58 : vector<12xf32> to vector<12x1xf32>
    %60 = tpu.reciprocal %59 {approx = true} : vector<12x1xf32> -> vector<12x1xf32>
    %61 = vector.broadcast %60 : vector<12x1xf32> to vector<12x12xf32>
    %62 = arith.mulf %57, %61 : vector<12x12xf32>
    %cst_44 = arith.constant dense<0.000000e+00> : vector<12x16xf32>
    %63 = tpu.matmul %62, %48, %cst_44 {dimension_numbers = #tpu.dot_dimension_numbers<[1], [0], [0], [1], [0, 0, 1, 1], [], []>} : vector<12x12xf32>, vector<12x16xf32>, vector<12x16xf32> -> vector<12x16xf32>
    %64 = vector.extract_strided_slice %12 {offsets = [0, 0], sizes = [16, 64], strides = [1, 1]} : vector<64x64xf32> to vector<16x64xf32>
    %cst_45 = arith.constant dense<0.000000e+00> : vector<12x64xf32>
    %65 = tpu.matmul %63, %64, %cst_45 {dimension_numbers = #tpu.dot_dimension_numbers<[1], [0], [0], [1], [0, 0, 1, 1], [], []>} : vector<12x16xf32>, vector<16x64xf32>, vector<12x64xf32> -> vector<12x64xf32>
    %66 = arith.addf %45, %65 : vector<12x64xf32>
    %67 = vector.extract_strided_slice %44 {offsets = [0, 16], sizes = [12, 16], strides = [1, 1]} : vector<12x192xf32> to vector<12x16xf32>
    %68 = vector.extract_strided_slice %44 {offsets = [0, 80], sizes = [12, 16], strides = [1, 1]} : vector<12x192xf32> to vector<12x16xf32>
    %69 = vector.extract_strided_slice %44 {offsets = [0, 144], sizes = [12, 16], strides = [1, 1]} : vector<12x192xf32> to vector<12x16xf32>
    %cst_46 = arith.constant dense<0.000000e+00> : vector<12x12xf32>
    %70 = tpu.matmul %67, %68, %cst_46 {dimension_numbers = #tpu.dot_dimension_numbers<[1], [1], [0], [0], [0, 0, 1, 0], [], []>} : vector<12x16xf32>, vector<12x16xf32>, vector<12x12xf32> -> vector<12x12xf32>
    %cst_47 = arith.constant 2.500000e-01 : f32
    %71 = vector.broadcast %cst_47 : f32 to vector<12x12xf32>
    %72 = arith.mulf %70, %71 : vector<12x12xf32>
    %73 = arith.addf %72, %7 : vector<12x12xf32>
    %cst_48 = arith.constant dense<0xFF800000> : vector<12xf32>
    %74 = vector.multi_reduction <maximumf>, %73, %cst_48 [1] : vector<12x12xf32> to vector<12xf32>
    %75 = vector.shape_cast %74 : vector<12xf32> to vector<12x1xf32>
    %76 = vector.broadcast %75 : vector<12x1xf32> to vector<12x12xf32>
    %77 = arith.subf %73, %76 : vector<12x12xf32>
    %78 = math.exp %77 : vector<12x12xf32>
    %cst_49 = arith.constant dense<0.000000e+00> : vector<12xf32>
    %79 = vector.multi_reduction <add>, %78, %cst_49 [1] : vector<12x12xf32> to vector<12xf32>
    %80 = vector.shape_cast %79 : vector<12xf32> to vector<12x1xf32>
    %81 = tpu.reciprocal %80 {approx = true} : vector<12x1xf32> -> vector<12x1xf32>
    %82 = vector.broadcast %81 : vector<12x1xf32> to vector<12x12xf32>
    %83 = arith.mulf %78, %82 : vector<12x12xf32>
    %cst_50 = arith.constant dense<0.000000e+00> : vector<12x16xf32>
    %84 = tpu.matmul %83, %69, %cst_50 {dimension_numbers = #tpu.dot_dimension_numbers<[1], [0], [0], [1], [0, 0, 1, 1], [], []>} : vector<12x12xf32>, vector<12x16xf32>, vector<12x16xf32> -> vector<12x16xf32>
    %85 = vector.extract_strided_slice %12 {offsets = [16, 0], sizes = [16, 64], strides = [1, 1]} : vector<64x64xf32> to vector<16x64xf32>
    %cst_51 = arith.constant dense<0.000000e+00> : vector<12x64xf32>
    %86 = tpu.matmul %84, %85, %cst_51 {dimension_numbers = #tpu.dot_dimension_numbers<[1], [0], [0], [1], [0, 0, 1, 1], [], []>} : vector<12x16xf32>, vector<16x64xf32>, vector<12x64xf32> -> vector<12x64xf32>
    %87 = arith.addf %66, %86 : vector<12x64xf32>
    %88 = vector.extract_strided_slice %44 {offsets = [0, 32], sizes = [12, 16], strides = [1, 1]} : vector<12x192xf32> to vector<12x16xf32>
    %89 = vector.extract_strided_slice %44 {offsets = [0, 96], sizes = [12, 16], strides = [1, 1]} : vector<12x192xf32> to vector<12x16xf32>
    %90 = vector.extract_strided_slice %44 {offsets = [0, 160], sizes = [12, 16], strides = [1, 1]} : vector<12x192xf32> to vector<12x16xf32>
    %cst_52 = arith.constant dense<0.000000e+00> : vector<12x12xf32>
    %91 = tpu.matmul %88, %89, %cst_52 {dimension_numbers = #tpu.dot_dimension_numbers<[1], [1], [0], [0], [0, 0, 1, 0], [], []>} : vector<12x16xf32>, vector<12x16xf32>, vector<12x12xf32> -> vector<12x12xf32>
    %cst_53 = arith.constant 2.500000e-01 : f32
    %92 = vector.broadcast %cst_53 : f32 to vector<12x12xf32>
    %93 = arith.mulf %91, %92 : vector<12x12xf32>
    %94 = arith.addf %93, %7 : vector<12x12xf32>
    %cst_54 = arith.constant dense<0xFF800000> : vector<12xf32>
    %95 = vector.multi_reduction <maximumf>, %94, %cst_54 [1] : vector<12x12xf32> to vector<12xf32>
    %96 = vector.shape_cast %95 : vector<12xf32> to vector<12x1xf32>
    %97 = vector.broadcast %96 : vector<12x1xf32> to vector<12x12xf32>
    %98 = arith.subf %94, %97 : vector<12x12xf32>
    %99 = math.exp %98 : vector<12x12xf32>
    %cst_55 = arith.constant dense<0.000000e+00> : vector<12xf32>
    %100 = vector.multi_reduction <add>, %99, %cst_55 [1] : vector<12x12xf32> to vector<12xf32>
    %101 = vector.shape_cast %100 : vector<12xf32> to vector<12x1xf32>
    %102 = tpu.reciprocal %101 {approx = true} : vector<12x1xf32> -> vector<12x1xf32>
    %103 = vector.broadcast %102 : vector<12x1xf32> to vector<12x12xf32>
    %104 = arith.mulf %99, %103 : vector<12x12xf32>
    %cst_56 = arith.constant dense<0.000000e+00> : vector<12x16xf32>
    %105 = tpu.matmul %104, %90, %cst_56 {dimension_numbers = #tpu.dot_dimension_numbers<[1], [0], [0], [1], [0, 0, 1, 1], [], []>} : vector<12x12xf32>, vector<12x16xf32>, vector<12x16xf32> -> vector<12x16xf32>
    %106 = vector.extract_strided_slice %12 {offsets = [32, 0], sizes = [16, 64], strides = [1, 1]} : vector<64x64xf32> to vector<16x64xf32>
    %cst_57 = arith.constant dense<0.000000e+00> : vector<12x64xf32>
    %107 = tpu.matmul %105, %106, %cst_57 {dimension_numbers = #tpu.dot_dimension_numbers<[1], [0], [0], [1], [0, 0, 1, 1], [], []>} : vector<12x16xf32>, vector<16x64xf32>, vector<12x64xf32> -> vector<12x64xf32>
    %108 = arith.addf %87, %107 : vector<12x64xf32>
    %109 = vector.extract_strided_slice %44 {offsets = [0, 48], sizes = [12, 16], strides = [1, 1]} : vector<12x192xf32> to vector<12x16xf32>
    %110 = vector.extract_strided_slice %44 {offsets = [0, 112], sizes = [12, 16], strides = [1, 1]} : vector<12x192xf32> to vector<12x16xf32>
    %111 = vector.extract_strided_slice %44 {offsets = [0, 176], sizes = [12, 16], strides = [1, 1]} : vector<12x192xf32> to vector<12x16xf32>
    %cst_58 = arith.constant dense<0.000000e+00> : vector<12x12xf32>
    %112 = tpu.matmul %109, %110, %cst_58 {dimension_numbers = #tpu.dot_dimension_numbers<[1], [1], [0], [0], [0, 0, 1, 0], [], []>} : vector<12x16xf32>, vector<12x16xf32>, vector<12x12xf32> -> vector<12x12xf32>
    %cst_59 = arith.constant 2.500000e-01 : f32
    %113 = vector.broadcast %cst_59 : f32 to vector<12x12xf32>
    %114 = arith.mulf %112, %113 : vector<12x12xf32>
    %115 = arith.addf %114, %7 : vector<12x12xf32>
    %cst_60 = arith.constant dense<0xFF800000> : vector<12xf32>
    %116 = vector.multi_reduction <maximumf>, %115, %cst_60 [1] : vector<12x12xf32> to vector<12xf32>
    %117 = vector.shape_cast %116 : vector<12xf32> to vector<12x1xf32>
    %118 = vector.broadcast %117 : vector<12x1xf32> to vector<12x12xf32>
    %119 = arith.subf %115, %118 : vector<12x12xf32>
    %120 = math.exp %119 : vector<12x12xf32>
    %cst_61 = arith.constant dense<0.000000e+00> : vector<12xf32>
    %121 = vector.multi_reduction <add>, %120, %cst_61 [1] : vector<12x12xf32> to vector<12xf32>
    %122 = vector.shape_cast %121 : vector<12xf32> to vector<12x1xf32>
    %123 = tpu.reciprocal %122 {approx = true} : vector<12x1xf32> -> vector<12x1xf32>
    %124 = vector.broadcast %123 : vector<12x1xf32> to vector<12x12xf32>
    %125 = arith.mulf %120, %124 : vector<12x12xf32>
    %cst_62 = arith.constant dense<0.000000e+00> : vector<12x16xf32>
    %126 = tpu.matmul %125, %111, %cst_62 {dimension_numbers = #tpu.dot_dimension_numbers<[1], [0], [0], [1], [0, 0, 1, 1], [], []>} : vector<12x12xf32>, vector<12x16xf32>, vector<12x16xf32> -> vector<12x16xf32>
    %127 = vector.extract_strided_slice %12 {offsets = [48, 0], sizes = [16, 64], strides = [1, 1]} : vector<64x64xf32> to vector<16x64xf32>
    %cst_63 = arith.constant dense<0.000000e+00> : vector<12x64xf32>
    %128 = tpu.matmul %126, %127, %cst_63 {dimension_numbers = #tpu.dot_dimension_numbers<[1], [0], [0], [1], [0, 0, 1, 1], [], []>} : vector<12x16xf32>, vector<16x64xf32>, vector<12x64xf32> -> vector<12x64xf32>
    %129 = arith.addf %108, %128 : vector<12x64xf32>
    %130 = arith.addf %6, %129 : vector<12x64xf32>
    %131 = vector.broadcast %13 : vector<1x64xf32> to vector<12x64xf32>
    %132 = arith.addf %130, %131 : vector<12x64xf32>
    %cst_64 = arith.constant dense<0.000000e+00> : vector<12xf32>
    %133 = vector.multi_reduction <add>, %132, %cst_64 [1] : vector<12x64xf32> to vector<12xf32>
    %134 = vector.shape_cast %133 : vector<12xf32> to vector<12x1xf32>
    %cst_65 = arith.constant 6.400000e+01 : f32
    %135 = vector.broadcast %cst_65 : f32 to vector<12x1xf32>
    %136 = arith.divf %134, %135 : vector<12x1xf32>
    %137 = vector.broadcast %136 : vector<12x1xf32> to vector<12x64xf32>
    %138 = arith.subf %132, %137 : vector<12x64xf32>
    %139 = arith.mulf %138, %138 : vector<12x64xf32>
    %cst_66 = arith.constant dense<0.000000e+00> : vector<12xf32>
    %140 = vector.multi_reduction <add>, %139, %cst_66 [1] : vector<12x64xf32> to vector<12xf32>
    %141 = vector.shape_cast %140 : vector<12xf32> to vector<12x1xf32>
    %cst_67 = arith.constant 6.400000e+01 : f32
    %142 = vector.broadcast %cst_67 : f32 to vector<12x1xf32>
    %143 = arith.divf %141, %142 : vector<12x1xf32>
    %144 = vector.broadcast %136 : vector<12x1xf32> to vector<12x64xf32>
    %145 = arith.subf %132, %144 : vector<12x64xf32>
    %cst_68 = arith.constant 9.99999974E-6 : f32
    %146 = vector.broadcast %cst_68 : f32 to vector<12x1xf32>
    %147 = arith.addf %143, %146 : vector<12x1xf32>
    %148 = math.rsqrt %147 : vector<12x1xf32>
    %149 = vector.broadcast %148 : vector<12x1xf32> to vector<12x64xf32>
    %150 = arith.mulf %145, %149 : vector<12x64xf32>
    %151 = vector.broadcast %14 : vector<1x64xf32> to vector<12x64xf32>
    %152 = arith.mulf %150, %151 : vector<12x64xf32>
    %153 = vector.broadcast %15 : vector<1x64xf32> to vector<12x64xf32>
    %154 = arith.addf %152, %153 : vector<12x64xf32>
    %cst_69 = arith.constant dense<0.000000e+00> : vector<12x256xf32>
    %155 = tpu.matmul %154, %16, %cst_69 {dimension_numbers = #tpu.dot_dimension_numbers<[1], [0], [0], [1], [0, 0, 1, 1], [], []>} : vector<12x64xf32>, vector<64x256xf32>, vector<12x256xf32> -> vector<12x256xf32>
    %156 = vector.broadcast %17 : vector<1x256xf32> to vector<12x256xf32>
    %157 = arith.addf %155, %156 : vector<12x256xf32>
    %cst_70 = arith.constant 5.000000e-01 : f32
    %158 = vector.broadcast %cst_70 : f32 to vector<12x256xf32>
    %159 = arith.mulf %158, %157 : vector<12x256xf32>
    %cst_71 = arith.constant 0.707106769 : f32
    %160 = vector.broadcast %cst_71 : f32 to vector<12x256xf32>
    %161 = arith.mulf %157, %160 : vector<12x256xf32>
    %cst_72 = arith.constant 0.000000e+00 : f32
    %162 = vector.broadcast %cst_72 : f32 to vector<12x256xf32>
    %163 = arith.cmpf oge, %161, %162 : vector<12x256xf32>
    %cst_73 = arith.constant 1.000000e+00 : f32
    %cst_74 = arith.constant -1.000000e+00 : f32
    %164 = vector.broadcast %cst_73 : f32 to vector<12x256xf32>
    %165 = vector.broadcast %cst_74 : f32 to vector<12x256xf32>
    %166 = arith.select %163, %164, %165 : vector<12x256xi1>, vector<12x256xf32>
    %167 = math.absf %161 : vector<12x256xf32>
    %cst_75 = arith.constant 0.327591091 : f32
    %168 = vector.broadcast %cst_75 : f32 to vector<12x256xf32>
    %169 = arith.mulf %168, %167 : vector<12x256xf32>
    %cst_76 = arith.constant 1.000000e+00 : f32
    %170 = vector.broadcast %cst_76 : f32 to vector<12x256xf32>
    %171 = arith.addf %170, %169 : vector<12x256xf32>
    %cst_77 = arith.constant 1.000000e+00 : f32
    %172 = vector.broadcast %cst_77 : f32 to vector<12x256xf32>
    %173 = arith.divf %172, %171 : vector<12x256xf32>
    %cst_78 = arith.constant 1.06140542 : f32
    %174 = vector.broadcast %cst_78 : f32 to vector<12x256xf32>
    %175 = arith.mulf %174, %173 : vector<12x256xf32>
    %cst_79 = arith.constant -1.45315206 : f32
    %176 = vector.broadcast %cst_79 : f32 to vector<12x256xf32>
    %177 = arith.addf %175, %176 : vector<12x256xf32>
    %178 = arith.mulf %177, %173 : vector<12x256xf32>
    %cst_80 = arith.constant 1.42141378 : f32
    %179 = vector.broadcast %cst_80 : f32 to vector<12x256xf32>
    %180 = arith.addf %178, %179 : vector<12x256xf32>
    %181 = arith.mulf %180, %173 : vector<12x256xf32>
    %cst_81 = arith.constant -0.284496725 : f32
    %182 = vector.broadcast %cst_81 : f32 to vector<12x256xf32>
    %183 = arith.addf %181, %182 : vector<12x256xf32>
    %184 = arith.mulf %183, %173 : vector<12x256xf32>
    %cst_82 = arith.constant 0.254829586 : f32
    %185 = vector.broadcast %cst_82 : f32 to vector<12x256xf32>
    %186 = arith.addf %184, %185 : vector<12x256xf32>
    %187 = arith.mulf %186, %173 : vector<12x256xf32>
    %cst_83 = arith.constant 0.000000e+00 : f32
    %188 = vector.broadcast %cst_83 : f32 to vector<12x256xf32>
    %189 = arith.subf %188, %167 : vector<12x256xf32>
    %190 = arith.mulf %189, %167 : vector<12x256xf32>
    %191 = math.exp %190 : vector<12x256xf32>
    %192 = arith.mulf %187, %191 : vector<12x256xf32>
    %cst_84 = arith.constant 1.000000e+00 : f32
    %193 = vector.broadcast %cst_84 : f32 to vector<12x256xf32>
    %194 = arith.subf %193, %192 : vector<12x256xf32>
    %195 = arith.mulf %166, %194 : vector<12x256xf32>
    %cst_85 = arith.constant 1.000000e+00 : f32
    %196 = vector.broadcast %cst_85 : f32 to vector<12x256xf32>
    %197 = arith.addf %196, %195 : vector<12x256xf32>
    %198 = arith.mulf %159, %197 : vector<12x256xf32>
    %cst_86 = arith.constant dense<0.000000e+00> : vector<12x64xf32>
    %199 = tpu.matmul %198, %18, %cst_86 {dimension_numbers = #tpu.dot_dimension_numbers<[1], [0], [0], [1], [0, 0, 1, 1], [], []>} : vector<12x256xf32>, vector<256x64xf32>, vector<12x64xf32> -> vector<12x64xf32>
    %200 = arith.addf %132, %199 : vector<12x64xf32>
    %201 = vector.broadcast %19 : vector<1x64xf32> to vector<12x64xf32>
    %202 = arith.addf %200, %201 : vector<12x64xf32>
    %c0_87 = arith.constant 0 : index
    %c0_88 = arith.constant 0 : index
    %203 = vector.load %arg18[%c0_87, %c0_88] : memref<1x64xf32, #tpu.memory_space<vmem>>, vector<1x64xf32>
    %c0_89 = arith.constant 0 : index
    %c0_90 = arith.constant 0 : index
    %204 = vector.load %arg19[%c0_89, %c0_90] : memref<1x64xf32, #tpu.memory_space<vmem>>, vector<1x64xf32>
    %c0_91 = arith.constant 0 : index
    %c0_92 = arith.constant 0 : index
    %205 = vector.load %arg20[%c0_91, %c0_92] : memref<64x192xf32, #tpu.memory_space<vmem>>, vector<64x192xf32>
    %c0_93 = arith.constant 0 : index
    %c0_94 = arith.constant 0 : index
    %206 = vector.load %arg21[%c0_93, %c0_94] : memref<1x192xf32, #tpu.memory_space<vmem>>, vector<1x192xf32>
    %c0_95 = arith.constant 0 : index
    %c0_96 = arith.constant 0 : index
    %207 = vector.load %arg22[%c0_95, %c0_96] : memref<64x64xf32, #tpu.memory_space<vmem>>, vector<64x64xf32>
    %c0_97 = arith.constant 0 : index
    %c0_98 = arith.constant 0 : index
    %208 = vector.load %arg23[%c0_97, %c0_98] : memref<1x64xf32, #tpu.memory_space<vmem>>, vector<1x64xf32>
    %c0_99 = arith.constant 0 : index
    %c0_100 = arith.constant 0 : index
    %209 = vector.load %arg24[%c0_99, %c0_100] : memref<1x64xf32, #tpu.memory_space<vmem>>, vector<1x64xf32>
    %c0_101 = arith.constant 0 : index
    %c0_102 = arith.constant 0 : index
    %210 = vector.load %arg25[%c0_101, %c0_102] : memref<1x64xf32, #tpu.memory_space<vmem>>, vector<1x64xf32>
    %c0_103 = arith.constant 0 : index
    %c0_104 = arith.constant 0 : index
    %211 = vector.load %arg26[%c0_103, %c0_104] : memref<64x256xf32, #tpu.memory_space<vmem>>, vector<64x256xf32>
    %c0_105 = arith.constant 0 : index
    %c0_106 = arith.constant 0 : index
    %212 = vector.load %arg27[%c0_105, %c0_106] : memref<1x256xf32, #tpu.memory_space<vmem>>, vector<1x256xf32>
    %c0_107 = arith.constant 0 : index
    %c0_108 = arith.constant 0 : index
    %213 = vector.load %arg28[%c0_107, %c0_108] : memref<256x64xf32, #tpu.memory_space<vmem>>, vector<256x64xf32>
    %c0_109 = arith.constant 0 : index
    %c0_110 = arith.constant 0 : index
    %214 = vector.load %arg29[%c0_109, %c0_110] : memref<1x64xf32, #tpu.memory_space<vmem>>, vector<1x64xf32>
    %cst_111 = arith.constant dense<0.000000e+00> : vector<12xf32>
    %215 = vector.multi_reduction <add>, %202, %cst_111 [1] : vector<12x64xf32> to vector<12xf32>
    %216 = vector.shape_cast %215 : vector<12xf32> to vector<12x1xf32>
    %cst_112 = arith.constant 6.400000e+01 : f32
    %217 = vector.broadcast %cst_112 : f32 to vector<12x1xf32>
    %218 = arith.divf %216, %217 : vector<12x1xf32>
    %219 = vector.broadcast %218 : vector<12x1xf32> to vector<12x64xf32>
    %220 = arith.subf %202, %219 : vector<12x64xf32>
    %221 = arith.mulf %220, %220 : vector<12x64xf32>
    %cst_113 = arith.constant dense<0.000000e+00> : vector<12xf32>
    %222 = vector.multi_reduction <add>, %221, %cst_113 [1] : vector<12x64xf32> to vector<12xf32>
    %223 = vector.shape_cast %222 : vector<12xf32> to vector<12x1xf32>
    %cst_114 = arith.constant 6.400000e+01 : f32
    %224 = vector.broadcast %cst_114 : f32 to vector<12x1xf32>
    %225 = arith.divf %223, %224 : vector<12x1xf32>
    %226 = vector.broadcast %218 : vector<12x1xf32> to vector<12x64xf32>
    %227 = arith.subf %202, %226 : vector<12x64xf32>
    %cst_115 = arith.constant 9.99999974E-6 : f32
    %228 = vector.broadcast %cst_115 : f32 to vector<12x1xf32>
    %229 = arith.addf %225, %228 : vector<12x1xf32>
    %230 = math.rsqrt %229 : vector<12x1xf32>
    %231 = vector.broadcast %230 : vector<12x1xf32> to vector<12x64xf32>
    %232 = arith.mulf %227, %231 : vector<12x64xf32>
    %233 = vector.broadcast %203 : vector<1x64xf32> to vector<12x64xf32>
    %234 = arith.mulf %232, %233 : vector<12x64xf32>
    %235 = vector.broadcast %204 : vector<1x64xf32> to vector<12x64xf32>
    %236 = arith.addf %234, %235 : vector<12x64xf32>
    %cst_116 = arith.constant dense<0.000000e+00> : vector<12x192xf32>
    %237 = tpu.matmul %236, %205, %cst_116 {dimension_numbers = #tpu.dot_dimension_numbers<[1], [0], [0], [1], [0, 0, 1, 1], [], []>} : vector<12x64xf32>, vector<64x192xf32>, vector<12x192xf32> -> vector<12x192xf32>
    %238 = vector.broadcast %206 : vector<1x192xf32> to vector<12x192xf32>
    %239 = arith.addf %237, %238 : vector<12x192xf32>
    %cst_117 = arith.constant 0.000000e+00 : f32
    %240 = vector.broadcast %cst_117 : f32 to vector<12x64xf32>
    %241 = vector.extract_strided_slice %239 {offsets = [0, 0], sizes = [12, 16], strides = [1, 1]} : vector<12x192xf32> to vector<12x16xf32>
    %242 = vector.extract_strided_slice %239 {offsets = [0, 64], sizes = [12, 16], strides = [1, 1]} : vector<12x192xf32> to vector<12x16xf32>
    %243 = vector.extract_strided_slice %239 {offsets = [0, 128], sizes = [12, 16], strides = [1, 1]} : vector<12x192xf32> to vector<12x16xf32>
    %cst_118 = arith.constant dense<0.000000e+00> : vector<12x12xf32>
    %244 = tpu.matmul %241, %242, %cst_118 {dimension_numbers = #tpu.dot_dimension_numbers<[1], [1], [0], [0], [0, 0, 1, 0], [], []>} : vector<12x16xf32>, vector<12x16xf32>, vector<12x12xf32> -> vector<12x12xf32>
    %cst_119 = arith.constant 2.500000e-01 : f32
    %245 = vector.broadcast %cst_119 : f32 to vector<12x12xf32>
    %246 = arith.mulf %244, %245 : vector<12x12xf32>
    %247 = arith.addf %246, %7 : vector<12x12xf32>
    %cst_120 = arith.constant dense<0xFF800000> : vector<12xf32>
    %248 = vector.multi_reduction <maximumf>, %247, %cst_120 [1] : vector<12x12xf32> to vector<12xf32>
    %249 = vector.shape_cast %248 : vector<12xf32> to vector<12x1xf32>
    %250 = vector.broadcast %249 : vector<12x1xf32> to vector<12x12xf32>
    %251 = arith.subf %247, %250 : vector<12x12xf32>
    %252 = math.exp %251 : vector<12x12xf32>
    %cst_121 = arith.constant dense<0.000000e+00> : vector<12xf32>
    %253 = vector.multi_reduction <add>, %252, %cst_121 [1] : vector<12x12xf32> to vector<12xf32>
    %254 = vector.shape_cast %253 : vector<12xf32> to vector<12x1xf32>
    %255 = tpu.reciprocal %254 {approx = true} : vector<12x1xf32> -> vector<12x1xf32>
    %256 = vector.broadcast %255 : vector<12x1xf32> to vector<12x12xf32>
    %257 = arith.mulf %252, %256 : vector<12x12xf32>
    %cst_122 = arith.constant dense<0.000000e+00> : vector<12x16xf32>
    %258 = tpu.matmul %257, %243, %cst_122 {dimension_numbers = #tpu.dot_dimension_numbers<[1], [0], [0], [1], [0, 0, 1, 1], [], []>} : vector<12x12xf32>, vector<12x16xf32>, vector<12x16xf32> -> vector<12x16xf32>
    %259 = vector.extract_strided_slice %207 {offsets = [0, 0], sizes = [16, 64], strides = [1, 1]} : vector<64x64xf32> to vector<16x64xf32>
    %cst_123 = arith.constant dense<0.000000e+00> : vector<12x64xf32>
    %260 = tpu.matmul %258, %259, %cst_123 {dimension_numbers = #tpu.dot_dimension_numbers<[1], [0], [0], [1], [0, 0, 1, 1], [], []>} : vector<12x16xf32>, vector<16x64xf32>, vector<12x64xf32> -> vector<12x64xf32>
    %261 = arith.addf %240, %260 : vector<12x64xf32>
    %262 = vector.extract_strided_slice %239 {offsets = [0, 16], sizes = [12, 16], strides = [1, 1]} : vector<12x192xf32> to vector<12x16xf32>
    %263 = vector.extract_strided_slice %239 {offsets = [0, 80], sizes = [12, 16], strides = [1, 1]} : vector<12x192xf32> to vector<12x16xf32>
    %264 = vector.extract_strided_slice %239 {offsets = [0, 144], sizes = [12, 16], strides = [1, 1]} : vector<12x192xf32> to vector<12x16xf32>
    %cst_124 = arith.constant dense<0.000000e+00> : vector<12x12xf32>
    %265 = tpu.matmul %262, %263, %cst_124 {dimension_numbers = #tpu.dot_dimension_numbers<[1], [1], [0], [0], [0, 0, 1, 0], [], []>} : vector<12x16xf32>, vector<12x16xf32>, vector<12x12xf32> -> vector<12x12xf32>
    %cst_125 = arith.constant 2.500000e-01 : f32
    %266 = vector.broadcast %cst_125 : f32 to vector<12x12xf32>
    %267 = arith.mulf %265, %266 : vector<12x12xf32>
    %268 = arith.addf %267, %7 : vector<12x12xf32>
    %cst_126 = arith.constant dense<0xFF800000> : vector<12xf32>
    %269 = vector.multi_reduction <maximumf>, %268, %cst_126 [1] : vector<12x12xf32> to vector<12xf32>
    %270 = vector.shape_cast %269 : vector<12xf32> to vector<12x1xf32>
    %271 = vector.broadcast %270 : vector<12x1xf32> to vector<12x12xf32>
    %272 = arith.subf %268, %271 : vector<12x12xf32>
    %273 = math.exp %272 : vector<12x12xf32>
    %cst_127 = arith.constant dense<0.000000e+00> : vector<12xf32>
    %274 = vector.multi_reduction <add>, %273, %cst_127 [1] : vector<12x12xf32> to vector<12xf32>
    %275 = vector.shape_cast %274 : vector<12xf32> to vector<12x1xf32>
    %276 = tpu.reciprocal %275 {approx = true} : vector<12x1xf32> -> vector<12x1xf32>
    %277 = vector.broadcast %276 : vector<12x1xf32> to vector<12x12xf32>
    %278 = arith.mulf %273, %277 : vector<12x12xf32>
    %cst_128 = arith.constant dense<0.000000e+00> : vector<12x16xf32>
    %279 = tpu.matmul %278, %264, %cst_128 {dimension_numbers = #tpu.dot_dimension_numbers<[1], [0], [0], [1], [0, 0, 1, 1], [], []>} : vector<12x12xf32>, vector<12x16xf32>, vector<12x16xf32> -> vector<12x16xf32>
    %280 = vector.extract_strided_slice %207 {offsets = [16, 0], sizes = [16, 64], strides = [1, 1]} : vector<64x64xf32> to vector<16x64xf32>
    %cst_129 = arith.constant dense<0.000000e+00> : vector<12x64xf32>
    %281 = tpu.matmul %279, %280, %cst_129 {dimension_numbers = #tpu.dot_dimension_numbers<[1], [0], [0], [1], [0, 0, 1, 1], [], []>} : vector<12x16xf32>, vector<16x64xf32>, vector<12x64xf32> -> vector<12x64xf32>
    %282 = arith.addf %261, %281 : vector<12x64xf32>
    %283 = vector.extract_strided_slice %239 {offsets = [0, 32], sizes = [12, 16], strides = [1, 1]} : vector<12x192xf32> to vector<12x16xf32>
    %284 = vector.extract_strided_slice %239 {offsets = [0, 96], sizes = [12, 16], strides = [1, 1]} : vector<12x192xf32> to vector<12x16xf32>
    %285 = vector.extract_strided_slice %239 {offsets = [0, 160], sizes = [12, 16], strides = [1, 1]} : vector<12x192xf32> to vector<12x16xf32>
    %cst_130 = arith.constant dense<0.000000e+00> : vector<12x12xf32>
    %286 = tpu.matmul %283, %284, %cst_130 {dimension_numbers = #tpu.dot_dimension_numbers<[1], [1], [0], [0], [0, 0, 1, 0], [], []>} : vector<12x16xf32>, vector<12x16xf32>, vector<12x12xf32> -> vector<12x12xf32>
    %cst_131 = arith.constant 2.500000e-01 : f32
    %287 = vector.broadcast %cst_131 : f32 to vector<12x12xf32>
    %288 = arith.mulf %286, %287 : vector<12x12xf32>
    %289 = arith.addf %288, %7 : vector<12x12xf32>
    %cst_132 = arith.constant dense<0xFF800000> : vector<12xf32>
    %290 = vector.multi_reduction <maximumf>, %289, %cst_132 [1] : vector<12x12xf32> to vector<12xf32>
    %291 = vector.shape_cast %290 : vector<12xf32> to vector<12x1xf32>
    %292 = vector.broadcast %291 : vector<12x1xf32> to vector<12x12xf32>
    %293 = arith.subf %289, %292 : vector<12x12xf32>
    %294 = math.exp %293 : vector<12x12xf32>
    %cst_133 = arith.constant dense<0.000000e+00> : vector<12xf32>
    %295 = vector.multi_reduction <add>, %294, %cst_133 [1] : vector<12x12xf32> to vector<12xf32>
    %296 = vector.shape_cast %295 : vector<12xf32> to vector<12x1xf32>
    %297 = tpu.reciprocal %296 {approx = true} : vector<12x1xf32> -> vector<12x1xf32>
    %298 = vector.broadcast %297 : vector<12x1xf32> to vector<12x12xf32>
    %299 = arith.mulf %294, %298 : vector<12x12xf32>
    %cst_134 = arith.constant dense<0.000000e+00> : vector<12x16xf32>
    %300 = tpu.matmul %299, %285, %cst_134 {dimension_numbers = #tpu.dot_dimension_numbers<[1], [0], [0], [1], [0, 0, 1, 1], [], []>} : vector<12x12xf32>, vector<12x16xf32>, vector<12x16xf32> -> vector<12x16xf32>
    %301 = vector.extract_strided_slice %207 {offsets = [32, 0], sizes = [16, 64], strides = [1, 1]} : vector<64x64xf32> to vector<16x64xf32>
    %cst_135 = arith.constant dense<0.000000e+00> : vector<12x64xf32>
    %302 = tpu.matmul %300, %301, %cst_135 {dimension_numbers = #tpu.dot_dimension_numbers<[1], [0], [0], [1], [0, 0, 1, 1], [], []>} : vector<12x16xf32>, vector<16x64xf32>, vector<12x64xf32> -> vector<12x64xf32>
    %303 = arith.addf %282, %302 : vector<12x64xf32>
    %304 = vector.extract_strided_slice %239 {offsets = [0, 48], sizes = [12, 16], strides = [1, 1]} : vector<12x192xf32> to vector<12x16xf32>
    %305 = vector.extract_strided_slice %239 {offsets = [0, 112], sizes = [12, 16], strides = [1, 1]} : vector<12x192xf32> to vector<12x16xf32>
    %306 = vector.extract_strided_slice %239 {offsets = [0, 176], sizes = [12, 16], strides = [1, 1]} : vector<12x192xf32> to vector<12x16xf32>
    %cst_136 = arith.constant dense<0.000000e+00> : vector<12x12xf32>
    %307 = tpu.matmul %304, %305, %cst_136 {dimension_numbers = #tpu.dot_dimension_numbers<[1], [1], [0], [0], [0, 0, 1, 0], [], []>} : vector<12x16xf32>, vector<12x16xf32>, vector<12x12xf32> -> vector<12x12xf32>
    %cst_137 = arith.constant 2.500000e-01 : f32
    %308 = vector.broadcast %cst_137 : f32 to vector<12x12xf32>
    %309 = arith.mulf %307, %308 : vector<12x12xf32>
    %310 = arith.addf %309, %7 : vector<12x12xf32>
    %cst_138 = arith.constant dense<0xFF800000> : vector<12xf32>
    %311 = vector.multi_reduction <maximumf>, %310, %cst_138 [1] : vector<12x12xf32> to vector<12xf32>
    %312 = vector.shape_cast %311 : vector<12xf32> to vector<12x1xf32>
    %313 = vector.broadcast %312 : vector<12x1xf32> to vector<12x12xf32>
    %314 = arith.subf %310, %313 : vector<12x12xf32>
    %315 = math.exp %314 : vector<12x12xf32>
    %cst_139 = arith.constant dense<0.000000e+00> : vector<12xf32>
    %316 = vector.multi_reduction <add>, %315, %cst_139 [1] : vector<12x12xf32> to vector<12xf32>
    %317 = vector.shape_cast %316 : vector<12xf32> to vector<12x1xf32>
    %318 = tpu.reciprocal %317 {approx = true} : vector<12x1xf32> -> vector<12x1xf32>
    %319 = vector.broadcast %318 : vector<12x1xf32> to vector<12x12xf32>
    %320 = arith.mulf %315, %319 : vector<12x12xf32>
    %cst_140 = arith.constant dense<0.000000e+00> : vector<12x16xf32>
    %321 = tpu.matmul %320, %306, %cst_140 {dimension_numbers = #tpu.dot_dimension_numbers<[1], [0], [0], [1], [0, 0, 1, 1], [], []>} : vector<12x12xf32>, vector<12x16xf32>, vector<12x16xf32> -> vector<12x16xf32>
    %322 = vector.extract_strided_slice %207 {offsets = [48, 0], sizes = [16, 64], strides = [1, 1]} : vector<64x64xf32> to vector<16x64xf32>
    %cst_141 = arith.constant dense<0.000000e+00> : vector<12x64xf32>
    %323 = tpu.matmul %321, %322, %cst_141 {dimension_numbers = #tpu.dot_dimension_numbers<[1], [0], [0], [1], [0, 0, 1, 1], [], []>} : vector<12x16xf32>, vector<16x64xf32>, vector<12x64xf32> -> vector<12x64xf32>
    %324 = arith.addf %303, %323 : vector<12x64xf32>
    %325 = arith.addf %202, %324 : vector<12x64xf32>
    %326 = vector.broadcast %208 : vector<1x64xf32> to vector<12x64xf32>
    %327 = arith.addf %325, %326 : vector<12x64xf32>
    %cst_142 = arith.constant dense<0.000000e+00> : vector<12xf32>
    %328 = vector.multi_reduction <add>, %327, %cst_142 [1] : vector<12x64xf32> to vector<12xf32>
    %329 = vector.shape_cast %328 : vector<12xf32> to vector<12x1xf32>
    %cst_143 = arith.constant 6.400000e+01 : f32
    %330 = vector.broadcast %cst_143 : f32 to vector<12x1xf32>
    %331 = arith.divf %329, %330 : vector<12x1xf32>
    %332 = vector.broadcast %331 : vector<12x1xf32> to vector<12x64xf32>
    %333 = arith.subf %327, %332 : vector<12x64xf32>
    %334 = arith.mulf %333, %333 : vector<12x64xf32>
    %cst_144 = arith.constant dense<0.000000e+00> : vector<12xf32>
    %335 = vector.multi_reduction <add>, %334, %cst_144 [1] : vector<12x64xf32> to vector<12xf32>
    %336 = vector.shape_cast %335 : vector<12xf32> to vector<12x1xf32>
    %cst_145 = arith.constant 6.400000e+01 : f32
    %337 = vector.broadcast %cst_145 : f32 to vector<12x1xf32>
    %338 = arith.divf %336, %337 : vector<12x1xf32>
    %339 = vector.broadcast %331 : vector<12x1xf32> to vector<12x64xf32>
    %340 = arith.subf %327, %339 : vector<12x64xf32>
    %cst_146 = arith.constant 9.99999974E-6 : f32
    %341 = vector.broadcast %cst_146 : f32 to vector<12x1xf32>
    %342 = arith.addf %338, %341 : vector<12x1xf32>
    %343 = math.rsqrt %342 : vector<12x1xf32>
    %344 = vector.broadcast %343 : vector<12x1xf32> to vector<12x64xf32>
    %345 = arith.mulf %340, %344 : vector<12x64xf32>
    %346 = vector.broadcast %209 : vector<1x64xf32> to vector<12x64xf32>
    %347 = arith.mulf %345, %346 : vector<12x64xf32>
    %348 = vector.broadcast %210 : vector<1x64xf32> to vector<12x64xf32>
    %349 = arith.addf %347, %348 : vector<12x64xf32>
    %cst_147 = arith.constant dense<0.000000e+00> : vector<12x256xf32>
    %350 = tpu.matmul %349, %211, %cst_147 {dimension_numbers = #tpu.dot_dimension_numbers<[1], [0], [0], [1], [0, 0, 1, 1], [], []>} : vector<12x64xf32>, vector<64x256xf32>, vector<12x256xf32> -> vector<12x256xf32>
    %351 = vector.broadcast %212 : vector<1x256xf32> to vector<12x256xf32>
    %352 = arith.addf %350, %351 : vector<12x256xf32>
    %cst_148 = arith.constant 5.000000e-01 : f32
    %353 = vector.broadcast %cst_148 : f32 to vector<12x256xf32>
    %354 = arith.mulf %353, %352 : vector<12x256xf32>
    %cst_149 = arith.constant 0.707106769 : f32
    %355 = vector.broadcast %cst_149 : f32 to vector<12x256xf32>
    %356 = arith.mulf %352, %355 : vector<12x256xf32>
    %cst_150 = arith.constant 0.000000e+00 : f32
    %357 = vector.broadcast %cst_150 : f32 to vector<12x256xf32>
    %358 = arith.cmpf oge, %356, %357 : vector<12x256xf32>
    %cst_151 = arith.constant 1.000000e+00 : f32
    %cst_152 = arith.constant -1.000000e+00 : f32
    %359 = vector.broadcast %cst_151 : f32 to vector<12x256xf32>
    %360 = vector.broadcast %cst_152 : f32 to vector<12x256xf32>
    %361 = arith.select %358, %359, %360 : vector<12x256xi1>, vector<12x256xf32>
    %362 = math.absf %356 : vector<12x256xf32>
    %cst_153 = arith.constant 0.327591091 : f32
    %363 = vector.broadcast %cst_153 : f32 to vector<12x256xf32>
    %364 = arith.mulf %363, %362 : vector<12x256xf32>
    %cst_154 = arith.constant 1.000000e+00 : f32
    %365 = vector.broadcast %cst_154 : f32 to vector<12x256xf32>
    %366 = arith.addf %365, %364 : vector<12x256xf32>
    %cst_155 = arith.constant 1.000000e+00 : f32
    %367 = vector.broadcast %cst_155 : f32 to vector<12x256xf32>
    %368 = arith.divf %367, %366 : vector<12x256xf32>
    %cst_156 = arith.constant 1.06140542 : f32
    %369 = vector.broadcast %cst_156 : f32 to vector<12x256xf32>
    %370 = arith.mulf %369, %368 : vector<12x256xf32>
    %cst_157 = arith.constant -1.45315206 : f32
    %371 = vector.broadcast %cst_157 : f32 to vector<12x256xf32>
    %372 = arith.addf %370, %371 : vector<12x256xf32>
    %373 = arith.mulf %372, %368 : vector<12x256xf32>
    %cst_158 = arith.constant 1.42141378 : f32
    %374 = vector.broadcast %cst_158 : f32 to vector<12x256xf32>
    %375 = arith.addf %373, %374 : vector<12x256xf32>
    %376 = arith.mulf %375, %368 : vector<12x256xf32>
    %cst_159 = arith.constant -0.284496725 : f32
    %377 = vector.broadcast %cst_159 : f32 to vector<12x256xf32>
    %378 = arith.addf %376, %377 : vector<12x256xf32>
    %379 = arith.mulf %378, %368 : vector<12x256xf32>
    %cst_160 = arith.constant 0.254829586 : f32
    %380 = vector.broadcast %cst_160 : f32 to vector<12x256xf32>
    %381 = arith.addf %379, %380 : vector<12x256xf32>
    %382 = arith.mulf %381, %368 : vector<12x256xf32>
    %cst_161 = arith.constant 0.000000e+00 : f32
    %383 = vector.broadcast %cst_161 : f32 to vector<12x256xf32>
    %384 = arith.subf %383, %362 : vector<12x256xf32>
    %385 = arith.mulf %384, %362 : vector<12x256xf32>
    %386 = math.exp %385 : vector<12x256xf32>
    %387 = arith.mulf %382, %386 : vector<12x256xf32>
    %cst_162 = arith.constant 1.000000e+00 : f32
    %388 = vector.broadcast %cst_162 : f32 to vector<12x256xf32>
    %389 = arith.subf %388, %387 : vector<12x256xf32>
    %390 = arith.mulf %361, %389 : vector<12x256xf32>
    %cst_163 = arith.constant 1.000000e+00 : f32
    %391 = vector.broadcast %cst_163 : f32 to vector<12x256xf32>
    %392 = arith.addf %391, %390 : vector<12x256xf32>
    %393 = arith.mulf %354, %392 : vector<12x256xf32>
    %cst_164 = arith.constant dense<0.000000e+00> : vector<12x64xf32>
    %394 = tpu.matmul %393, %213, %cst_164 {dimension_numbers = #tpu.dot_dimension_numbers<[1], [0], [0], [1], [0, 0, 1, 1], [], []>} : vector<12x256xf32>, vector<256x64xf32>, vector<12x64xf32> -> vector<12x64xf32>
    %395 = arith.addf %327, %394 : vector<12x64xf32>
    %396 = vector.broadcast %214 : vector<1x64xf32> to vector<12x64xf32>
    %397 = arith.addf %395, %396 : vector<12x64xf32>
    %c0_165 = arith.constant 0 : index
    %c0_166 = arith.constant 0 : index
    %398 = vector.load %arg30[%c0_165, %c0_166] : memref<1x64xf32, #tpu.memory_space<vmem>>, vector<1x64xf32>
    %c0_167 = arith.constant 0 : index
    %c0_168 = arith.constant 0 : index
    %399 = vector.load %arg31[%c0_167, %c0_168] : memref<1x64xf32, #tpu.memory_space<vmem>>, vector<1x64xf32>
    %cst_169 = arith.constant dense<0.000000e+00> : vector<12xf32>
    %400 = vector.multi_reduction <add>, %397, %cst_169 [1] : vector<12x64xf32> to vector<12xf32>
    %401 = vector.shape_cast %400 : vector<12xf32> to vector<12x1xf32>
    %cst_170 = arith.constant 6.400000e+01 : f32
    %402 = vector.broadcast %cst_170 : f32 to vector<12x1xf32>
    %403 = arith.divf %401, %402 : vector<12x1xf32>
    %404 = vector.broadcast %403 : vector<12x1xf32> to vector<12x64xf32>
    %405 = arith.subf %397, %404 : vector<12x64xf32>
    %406 = arith.mulf %405, %405 : vector<12x64xf32>
    %cst_171 = arith.constant dense<0.000000e+00> : vector<12xf32>
    %407 = vector.multi_reduction <add>, %406, %cst_171 [1] : vector<12x64xf32> to vector<12xf32>
    %408 = vector.shape_cast %407 : vector<12xf32> to vector<12x1xf32>
    %cst_172 = arith.constant 6.400000e+01 : f32
    %409 = vector.broadcast %cst_172 : f32 to vector<12x1xf32>
    %410 = arith.divf %408, %409 : vector<12x1xf32>
    %411 = vector.broadcast %403 : vector<12x1xf32> to vector<12x64xf32>
    %412 = arith.subf %397, %411 : vector<12x64xf32>
    %cst_173 = arith.constant 9.99999974E-6 : f32
    %413 = vector.broadcast %cst_173 : f32 to vector<12x1xf32>
    %414 = arith.addf %410, %413 : vector<12x1xf32>
    %415 = math.rsqrt %414 : vector<12x1xf32>
    %416 = vector.broadcast %415 : vector<12x1xf32> to vector<12x64xf32>
    %417 = arith.mulf %412, %416 : vector<12x64xf32>
    %418 = vector.broadcast %398 : vector<1x64xf32> to vector<12x64xf32>
    %419 = arith.mulf %417, %418 : vector<12x64xf32>
    %420 = vector.broadcast %399 : vector<1x64xf32> to vector<12x64xf32>
    %421 = arith.addf %419, %420 : vector<12x64xf32>
    %422 = vector.extract_strided_slice %421 {offsets = [0, 0], sizes = [2, 64], strides = [1, 1]} : vector<12x64xf32> to vector<2x64xf32>
    %c0_174 = arith.constant 0 : index
    %c0_175 = arith.constant 0 : index
    %423 = vector.load %arg32[%c0_174, %c0_175] : memref<64x2xf32, #tpu.memory_space<vmem>>, vector<64x2xf32>
    %cst_176 = arith.constant dense<0.000000e+00> : vector<2x2xf32>
    %424 = tpu.matmul %422, %423, %cst_176 {dimension_numbers = #tpu.dot_dimension_numbers<[1], [0], [0], [1], [0, 0, 1, 1], [], []>} : vector<2x64xf32>, vector<64x2xf32>, vector<2x2xf32> -> vector<2x2xf32>
    %c0_177 = arith.constant 0 : index
    %c0_178 = arith.constant 0 : index
    %425 = vector.load %arg33[%c0_177, %c0_178] : memref<1x2xf32, #tpu.memory_space<vmem>>, vector<1x2xf32>
    %426 = vector.broadcast %425 : vector<1x2xf32> to vector<2x2xf32>
    %427 = arith.addf %424, %426 : vector<2x2xf32>
    %428 = vector.extract_strided_slice %427 {offsets = [0, 0], sizes = [2, 1], strides = [1, 1]} : vector<2x2xf32> to vector<2x1xf32>
    %429 = vector.extract_strided_slice %427 {offsets = [0, 1], sizes = [2, 1], strides = [1, 1]} : vector<2x2xf32> to vector<2x1xf32>
    %c0_179 = arith.constant 0 : index
    %c0_180 = arith.constant 0 : index
    %430 = vector.load %arg1[%c0_179, %c0_180] : memref<2x1xf32, #tpu.memory_space<vmem>>, vector<2x1xf32>
    %cst_181 = arith.constant 0.000000e+00 : f32
    %431 = vector.broadcast %cst_181 : f32 to vector<2x1xf32>
    %432 = arith.cmpf ogt, %430, %431 : vector<2x1xf32>
    %433 = arith.select %432, %429, %428 : vector<2x1xi1>, vector<2x1xf32>
    %cst_182 = arith.constant 0.000000e+00 : f32
    %434 = vector.broadcast %cst_182 : f32 to vector<2x1xf32>
    %435 = arith.cmpf ogt, %430, %434 : vector<2x1xf32>
    %436 = arith.select %435, %428, %429 : vector<2x1xi1>, vector<2x1xf32>
    %437 = tpu.concatenate %433, %436 in 1 : vector<2x1xf32>, vector<2x1xf32> -> vector<2x2xf32>
    %c0_183 = arith.constant 0 : index
    %c0_184 = arith.constant 0 : index
    %438 = vector.load %arg34[%c0_183, %c0_184] : memref<2x2xf32, #tpu.memory_space<vmem>>, vector<2x2xf32>
    tpu.vector_store %arg34[%c0_183, %c0_184], %437 {strides = array<i32>} : memref<2x2xf32, #tpu.memory_space<vmem>>, vector<2x2xf32>,
    return
  }
}

</mosaic_0001>

<bundles_post_ra>
// kernel: tile.9
= control target key start
LH: loop header
LB: loop body
LE: loop exit
PB: predicated region body
PF: predicated region fallthrough
CT: control target
= control target key end

     0   :  { %vm3_vm0 = vcmask 523264   ;;  %s34_s0 = inlined_call_operand.vmem [shape: f32[2,5,64], index: 0, kind: input, shape index: {}]   ;;  %s35_s1 = inlined_call_operand.vmem [shape: f32[10,64], index: 1, kind: output, shape index: {}]  }
   0x1   :  { %v2_v0 = vld [vmem:[%s34_s0] sm:$0x1f]   ;;  %v10_v1 = vld [vmem:[%s34_s0 + $0x8] sm:$0x1f]  }
   0x2   :  { %4 = vst.msk [vmem:[%s35_s1] sm:$0x1f] %vm3_vm0, %v2_v0   ;;  %11 = vst.msk [vmem:[%s35_s1 + $0x5] sm:$0x1f] %vm3_vm0, %v10_v1  }

// kernel: ftransformer_forward.1
= control target key start
LH: loop header
LB: loop body
LE: loop exit
PB: predicated region body
PF: predicated region fallthrough
CT: control target
= control target key end

     0   :  { %s4450_s3 = smov 5   ;;  %vm154_vm0 = vcmask 1044480   ;;  %vm147_vm1 = vcmask 39936   ;;  %s4451_s10 = smov 4   ;;  %vm236_vm2 = vcmask 1041408   ;;  %vm325_vm3 = vcmask 523264   ;;  %s5147_s0 = inlined_call_operand.smem [shape: u32[35], index: -1, kind: input, shape index: {}] }
   0x1   :  { %s3786_s6 = sld [smem:[%s5147_s0 + %s4450_s3]]   ;;  %s4452_s14 = smov 3   ;;  %vm329_vm4 = vcmask 519168   ;;  %v4454_v41 = vmov 0.0   ;;  %v371_v59 = vlaneseq  ;;  %vm470_vm5 = vcmask 130048  }
   0x2   :  { %s1_s9 = sld [smem:[%s5147_s0]]   ;;  %s4453_s18 = smov 8   ;;  %vm588_vm6 = vcmask 1043456   ;;  %vm562_vm7 = vcmask 93184   ;;  %vm558_vm8 = vcmask 97280  }
   0x3   :  { %s3785_s13 = sld [smem:[%s5147_s0 + %s4451_s10]]   ;;  %s4455_s22 = smov 6   ;;  %v372_v60 = vshrl.u32 %v371_v59, 7 }
   0x4   :  { %s3784_s17 = sld [smem:[%s5147_s0 + %s4452_s14]]   ;;  %s4456_s26 = smov 7  }
   0x5   :  { %s4525_s21 = sld [smem:[%s5147_s0 + %s4453_s18]]   ;;  %s4457_s30 = smov 9   ;;  %v4556_v61 = vsub.s32 0, %v372_v60 }
   0x6   :  { %s3787_s25 = sld [smem:[%s5147_s0 + %s4455_s22]]   ;;  %s4458_s4 = smov 64  }
   0x7   :  { %v144_v0 = vld [vmem:[%s3786_s6] sm:$0x1f]  ;;  %s3788_s29 = sld [smem:[%s5147_s0 + %s4456_s26]]   ;;  %s4459_s5 = smov 2  }
   0x8   :  { %4099 = vmatprep.subr.msk.mxu1 %vm154_vm0, %v144_v0  ;;  %v142_v1 = vld [vmem:[%s1_s9] sm:$0xff]  ;;  %v143_v2 = vld [vmem:[%s1_s9 + $0x8] sm:$0x3]  ;;  %s3790_s3 = sld [smem:[%s5147_s0 + %s4457_s30]]   ;;  %s4460_s9 = smov 48  }
   0x9   :  { %4100 = vmatpush3.msk.msra.mxu1 %vm154_vm0, %v144_v0  ;;  %4101 = vmatprep.mubr.msk.f32.mxu1 %vm147_vm1, %v142_v1  ;;  %v146_v3 = vld [vmem:[%s3785_s13 + $0x8] sm:$0x3]  ;;  %v145_v5 = vld [vmem:[%s3785_s13] sm:$0xff]  ;;  %s4591_s8 = sld [smem:[%s5147_s0 + %s4459_s5]]   ;;  %s4461_s10 = smov 112  }
   0xa   :  { %4102 = vmatmul.mubr.msk.f32.vlgmr.msra.gmra.mxu1 %vm147_vm1, %v143_v2  ;;  %v233_v9 = vld [vmem:[%s3784_s17] sm:$0x3]  ;;  %s4462_s11 = smov 10   ;;  %s4463_s15 = smov 32   ;;  %vm4486_vm1 = vmmov 0  }
   0xb   :  { %v262_v26 = vld [vmem:[%s4525_s21 + $0x78] sm:$0xff]  ;;  %v261_v27 = vld [vmem:[%s4525_s21 + $0x70] sm:$0xff]  ;;  %v260_v28 = vld [vmem:[%s4525_s21 + $0x68] sm:$0xff]  ;;  %451 = vmatprep.mubr.f32.mxu1 %v4454_v41  ;;  %s4632_s14 = sld [smem:[%s5147_s0 + %s4462_s11]]   ;;  %s4464_s16 = smov 96  }
   0xc   :  { %403 = vmatprep.subr.mxu1 %v262_v26  ;;  %v259_v29 = vld [vmem:[%s4525_s21 + $0x60] sm:$0xff]  ;;  %v258_v30 = vld [vmem:[%s4525_s21 + $0x58] sm:$0xff]  ;;  %v257_v31 = vld [vmem:[%s4525_s21 + $0x50] sm:$0xff]  ;;  %s4465_s17 = smov 16   ;;  %s4466_s18 = smov 80  }
   0xd   :  { %404 = vmatpush1.msra.mxu1 %v261_v27  ;;  %v256_v32 = vld [vmem:[%s4525_s21 + $0x48] sm:$0xff]  ;;  %v255_v33 = vld [vmem:[%s4525_s21 + $0x40] sm:$0xff]  ;;  %v254_v34 = vld [vmem:[%s4525_s21 + $0x38] sm:$0xff]  ;;  %s4467_s19 = smov 11   ;;  %s4468_s23 = smov 14  }
   0xe   :  { %405 = vmatprep.subr.mxu1 %v260_v28  ;;  %v253_v35 = vld [vmem:[%s4525_s21 + $0x30] sm:$0xff]  ;;  %v252_v36 = vld [vmem:[%s4525_s21 + $0x28] sm:$0xff]  ;;  %v251_v37 = vld [vmem:[%s4525_s21 + $0x20] sm:$0xff]  ;;  %s3792_s22 = sld [smem:[%s5147_s0 + %s4467_s19]]   ;;  %s4469_s27 = smov 12  }
   0xf   :  { %406 = vmatpush1.msra.mxu1 %v259_v29  ;;  %v250_v38 = vld [vmem:[%s4525_s21 + $0x18] sm:$0xff]  ;;  %v249_v39 = vld [vmem:[%s4525_s21 + $0x10] sm:$0xff]  ;;  %v248_v40 = vld [vmem:[%s4525_s21 + $0x8] sm:$0xff]  ;;  %s3795_s26 = sld [smem:[%s5147_s0 + %s4468_s23]]   ;;  %s4470_s1 = smov 13  }
  0x10   :  { %407 = vmatprep.subr.mxu1 %v258_v30  ;;  %v247_v42 = vld [vmem:[%s4525_s21] sm:$0xff]  ;;  %s3793_s30 = sld [smem:[%s5147_s0 + %s4469_s27]]   ;;  %s4471_s12 = smov 15  }
  0x11   :  { %408 = vmatpush1.msra.mxu1 %v257_v31  ;;  %v3819_v50 = vld [vmem:[%s3787_s25] ss:$0 sm:$0xff]  ;;  %s3794_s5 = sld [smem:[%s5147_s0 + %s4470_s1]]   ;;  %s4473_s20 = smov 17  }
  0x12   :  { %409 = vmatprep.subr.mxu1 %v256_v32  ;;  %v3820_v52 = vld [vmem:[%s3788_s29] ss:$0 sm:$0xff]  ;;  %s4759_s11 = sld [smem:[%s5147_s0 + %s4465_s17]]   ;;  %s4474_s24 = smov 20  }
  0x13   :  { %410 = vmatpush1.msra.mxu1 %v255_v33  ;;  %v263_v62 = vld [vmem:[%s3790_s3] sm:$0x3]  ;;  %s3796_s19 = sld [smem:[%s5147_s0 + %s4471_s12]]   ;;  %s4475_s28 = smov 18  }
  0x14   :  { %411 = vmatprep.subr.mxu1 %v254_v34  ;;  %v374_v63 = vrot.slane %v263_v62, %v4556_v61  ;;  %s3798_s23 = sld [smem:[%s5147_s0 + %s4473_s20]]   ;;  %s4476_s2 = smov 19  }
  0x15   :  { %412 = vmatpush1.msra.mxu1 %v253_v35  ;;  %s3801_s27 = sld [smem:[%s5147_s0 + %s4474_s24]]   ;;  %s4477_s7 = smov 21  }
  0x16   :  { %413 = vmatprep.subr.mxu1 %v252_v36  ;;  %s3799_s1 = sld [smem:[%s5147_s0 + %s4475_s28]]   ;;  %s4488_s20 = smov 31  }
  0x17   :  { %414 = vmatpush1.msra.mxu1 %v251_v37  ;;  %s3800_s6 = sld [smem:[%s5147_s0 + %s4476_s2]]   ;;  %s4489_s24 = smov 33  }
  0x18   :  { %415 = vmatprep.subr.mxu1 %v250_v38  ;;  %s3802_s13 = sld [smem:[%s5147_s0 + %s4477_s7]]   ;;  %s4490_s28 = smov 127  }
  0x19   :  { %416 = vmatpush1.msra.mxu1 %v249_v39  ;;  %s4491_s29 = smov 1   ;;  %s4492_s3 = smov 34  }
  0x1a   :  { %417 = vmatprep.subr.mxu1 %v248_v40  ;;  %s3782_s2 = sld [smem:[%s5147_s0 + %s4491_s29]]  }
  0x1b   :  { %418 = vmatpush1.msra.mxu1 %v247_v42  ;;  %s3815_s7 = sld [smem:[%s5147_s0 + %s4492_s3]]  }
  0xca   :  { %v4103_v4 = vpop.f32.mrf.mxu1 }
  0xcb   :  { %v230_v7 = vadd.f32 %v4103_v4, %v146_v3 }
  0xcc   :  { %v224_v6 = vpop.f32.mrf.mxu1 }
  0xcd   :  { %v225_v8 = vadd.f32 %v224_v6, %v145_v5  ;;  %v238_v11 = vrot.slane %v230_v7, 6  ;;  %v4569_v5 = vsub.s32 1, %v372_v60 }
  0xcf   :  { %v237_v10 = vrot.slane %v225_v8, 6 }
  0xd1   :  { %v4510_v12 = vsel %vm236_vm2, %v233_v9, %v237_v10  ;;  %v4514_v14 = vsel %vm236_vm2, %v237_v10, %v238_v11  ;;  %v378_v9 = vrot.slane %v263_v62, %v4569_v5 }
  0xd2   :  { %v326_v13 = vsel %vm325_vm3, %v4510_v12, 0.0  ;;  %v330_v15 = vsel %vm329_vm4, %v4514_v14, 0.0 }
  0xd3   :  { %327 = vadd.xlane.f32.xlu0 %v326_v13 }
  0xd7   :  { %331 = vadd.xlane.f32.xlu0 %v330_v15  ;;  %v4594_v15 = vld [vmem:[%s4591_s8 + $0x8] sm:$0xf] }
 0x15c   :  { %v328_v16 = vpop.xlane.xlu0 %327 }
 0x15d   :  { %v334_v17 = vmul.f32 0.015625, %v328_v16 }
 0x15f   :  { %v336_v18 = vsub.f32 %v4510_v12, %v334_v17 }
 0x160   :  { %v332_v19 = vpop.xlane.xlu0 %331 }
 0x161   :  { %v335_v20 = vmul.f32 0.015625, %v332_v19  ;;  %v338_v21 = vmul.f32 %v336_v18, %v336_v18 }
 0x163   :  { %v337_v22 = vsub.f32 %v4514_v14, %v335_v20  ;;  %v340_v23 = vsel %vm325_vm3, %v338_v21, 0.0 }
 0x164   :  { %341 = vadd.xlane.f32.xlu1 %v340_v23 }
 0x165   :  { %v339_v24 = vmul.f32 %v337_v22, %v337_v22 }
 0x167   :  { %v343_v25 = vsel %vm329_vm4, %v339_v24, 0.0 }
 0x168   :  { %344 = vadd.xlane.f32.xlu1 %v343_v25 }
 0x1ed   :  { %v342_v43 = vpop.xlane.xlu1 %341 }
 0x1ee   :  { %v346_v44 = vmul.f32 0.015625, %v342_v43 }
 0x1f0   :  { %v348_v45 = vadd.f32 1e-05, %v346_v44 }
 0x1f1   :  { %v345_v46 = vpop.xlane.xlu1 %344 }
 0x1f2   :  { %4334 = vrsqrt.f32 %v348_v45  ;;  %v347_v47 = vmul.f32 0.015625, %v345_v46 }
 0x1f4   :  { %v349_v48 = vadd.f32 1e-05, %v347_v47 }
 0x1f6   :  { %4336 = vrsqrt.f32 %v349_v48 }
 0x1ff   :  { %v4335_v49 = vpop.eup %4334 }
 0x200   :  { %v352_v51 = vmul.f32 %v4335_v49, %v336_v18  ;;  %v4597_v18 = vld [vmem:[%s4591_s8] sm:$0xff] }
 0x202   :  { %v360_v53 = vmul.f32 %v3819_v50, %v352_v51 }
 0x203   :  { %v4337_v54 = vpop.eup %4336 }
 0x204   :  { %v368_v55 = vadd.f32 %v3820_v52, %v360_v53  ;;  %v353_v56 = vmul.f32 %v4337_v54, %v337_v22 }
 0x206   :  { %3821 = vmatmul.mubr.msk.f32.vlgmr.msra.gmra.mxu1 %vm325_vm3, %v368_v55  ;;  %v361_v57 = vmul.f32 %v3819_v50, %v353_v56  ;;  %v267_v55 = vld [vmem:[%s4632_s14 + $0x18] sm:$0xff]  ;;  %v266_v56 = vld [vmem:[%s4632_s14 + $0x10] sm:$0xff] }
 0x207   :  { %457 = vmatprep.mubr.f32.mxu1 %v4454_v41 }
 0x208   :  { %v369_v58 = vadd.f32 %v3820_v52, %v361_v57 }
 0x20a   :  { %3822 = vmatmul.mubr.msk.f32.gmra.mxu1 %vm325_vm3, %v369_v58 }
 0x2c6   :  { %v453_v0 = vpop.f32.mrf.mxu1 }
 0x2c7   :  { %v4559_v1 = vadd.f32 %v453_v0, %v374_v63 }
 0x2c8   :  { %v455_v2 = vpop.f32.mrf.mxu1 }
 0x2c9   :  { %4108 = vmatprep.mubr.msk.f32.mxu0 %vm470_vm5, %v4559_v1  ;;  %466 = vrot.lane.b32.xlu1 %v4559_v1, %s4458_s4  ;;  %v4580_v11 = vadd.f32 %v455_v2, %v378_v9 }
 0x2ca   :  { %v459_v3 = vpop.f32.mrf.mxu1 }
 0x2cb   :  { %v4565_v4 = vadd.f32 %v459_v3, %v374_v63 }
 0x2cc   :  { %v461_v7 = vpop.f32.mrf.mxu1 }
 0x2cd   :  { %468 = vrot.lane.b32.xlu0 %v4565_v4, %s4458_s4  ;;  %v4575_v10 = vadd.f32 %v461_v7, %v378_v9 }
 0x33b   :  { %v467_v8 = vpop.permute.xlu1 %466 }
 0x33f   :  { %v469_v6 = vpop.permute.xlu0 %468 }
 0x340   :  { %4104 = vmatprep.subr.msk.mxu0 %vm470_vm5, %v469_v6 }
 0x341   :  { %4105 = vmatpush3.xpose.msk.msra.mxu0 %vm470_vm5, %v469_v6 }
 0x342   :  { %4106 = vmatprep.subr.msk.mxu0 %vm470_vm5, %v467_v8 }
 0x345   :  { %4107 = vmatpush3.xpose.msk.msra.mxu0 %vm470_vm5, %v467_v8 }
 0x346   :  { %4111 = vmatprep.subr.msk.mxu0 %vm588_vm6, %v4575_v10 }
 0x348   :  { %4109 = vmatmul.mubr.msk.f32.vlgmr.msra.gmra.mxu0 %vm470_vm5, %v4565_v4 }
 0x349   :  { %4112 = vmatpush3.msk.msra.mxu0 %vm588_vm6, %v4575_v10 }
 0x34a   :  { %4113 = vmatprep.subr.mxu0 %v4580_v11 }
 0x34b   :  { %4114 = vmatpush3.msra.mxu0 %v4580_v11 }
 0x408   :  { %v4110_v13 = vpop.f32.mrf.mxu0 }
 0x409   :  { %v555_v16 = vmul.f32 0.25, %v4110_v13 }
 0x40a   :  { %v545_v17 = vpop.f32.mrf.mxu0 }
 0x40b   :  { %v554_v19 = vmul.f32 0.25, %v545_v17  ;;  %v557_v20 = vadd.f32 %v555_v16, %v4594_v15  ;;  %v265_v17 = vld [vmem:[%s4632_s14 + $0x8] sm:$0xff] }
 0x40d   :  { %v563_v21 = vsel %vm562_vm7, %v557_v20, -inf  ;;  %v556_v22 = vadd.f32 %v554_v19, %v4597_v18 }
 0x40e   :  { %564 = vmax.xlane.f32.xlu0 %v563_v21 }
 0x40f   :  { %v559_v23 = vsel %vm558_vm8, %v556_v22, -inf }
 0x410   :  { %560 = vmax.xlane.f32.xlu1 %v559_v23 }
 0x497   :  { %v565_v24 = vpop.xlane.xlu0 %564 }
 0x498   :  { %v567_v25 = vsub.f32 %v557_v20, %v565_v24 }
 0x499   :  { %v561_v26 = vpop.xlane.xlu1 %560 }
 0x49a   :  { %v570_v27 = vmul.f32 1.442695, %v567_v25  ;;  %v566_v28 = vsub.f32 %v556_v22, %v561_v26 }
 0x49c   :  { %4338 = vpow2.f32 %v570_v27  ;;  %v568_v29 = vmul.f32 1.442695, %v566_v28 }
 0x49e   :  { %4340 = vpow2.f32 %v568_v29 }
 0x4a9   :  { %v4339_v30 = vpop.eup %4338 }
 0x4aa   :  { %v575_v31 = vsel %vm562_vm7, %v4339_v30, 0.0 }
 0x4ab   :  { %v4341_v32 = vpop.eup %4340  ;;  %576 = vadd.xlane.f32.xlu1 %v575_v31 }
 0x4ac   :  { %v572_v33 = vsel %vm558_vm8, %v4341_v32, 0.0 }
 0x4ad   :  { %573 = vadd.xlane.f32.xlu0 %v572_v33 }
 0x4bc   :  { %671 = vrot.lane.b32.xlu1 %v4559_v1, %s4460_s9 }
 0x4c0   :  { %667 = vrot.lane.b32.xlu1 %v4559_v1, %s4461_s10 }
 0x4c3   :  { %673 = vrot.lane.b32.xlu0 %v4565_v4, %s4460_s9 }
 0x4c4   :  { %669 = vrot.lane.b32.xlu1 %v4565_v4, %s4461_s10 }
 0x534   :  { %v577_v34 = vpop.xlane.xlu1 %576 }
 0x535   :  { %4342 = vrcp.f32 %v577_v34 }
 0x536   :  { %v574_v35 = vpop.xlane.xlu0 %573 }
 0x537   :  { %4344 = vrcp.f32 %v574_v35 }
 0x538   :  { %v672_v37 = vpop.permute.xlu1 %671 }
 0x53a   :  { %v674_v36 = vpop.permute.xlu0 %673 }
 0x53b   :  { %4118 = vmatprep.subr.msk.mxu0 %vm470_vm5, %v674_v36 }
 0x53c   :  { %v668_v43 = vpop.permute.xlu1 %667 }
 0x540   :  { %v670_v44 = vpop.permute.xlu1 %669 }
 0x542   :  { %v4343_v38 = vpop.eup %4342 }
 0x543   :  { %v581_v42 = vmul.f32 %v4343_v38, %v4339_v30 }
 0x544   :  { %v4345_v39 = vpop.eup %4344 }
 0x545   :  { %v580_v40 = vmul.f32 %v4345_v39, %v4341_v32 }
 0x547   :  { %4115 = vmatprep.mubr.msk.f32.mxu0 %vm558_vm8, %v580_v40 }
 0x548   :  { %4116 = vmatmul.mubr.msk.f32.vlgmr.msra.gmra.mxu0 %vm558_vm8, %v581_v42 }
 0x549   :  { %4119 = vmatpush3.xpose.msk.msra.mxu0 %vm470_vm5, %v674_v36  ;;  %4122 = vmatprep.mubr.msk.f32.mxu0 %vm470_vm5, %v668_v43 }
 0x54a   :  { %4120 = vmatprep.subr.msk.mxu0 %vm470_vm5, %v672_v37 }
 0x54d   :  { %4121 = vmatpush3.xpose.msk.msra.mxu0 %vm470_vm5, %v672_v37 }
 0x54e   :  { %4132 = vmatprep.subr.mxu0 %v267_v55 }
 0x550   :  { %4123 = vmatmul.mubr.msk.f32.vlgmr.msra.gmra.mxu0 %vm470_vm5, %v670_v44 }
 0x551   :  { %4133 = vmatpush3.msra.mxu0 %v267_v55 }
 0x552   :  { %4134 = vmatprep.subr.mxu0 %v266_v56 }
 0x553   :  { %4135 = vmatpush3.msra.mxu0 %v266_v56 }
 0x608   :  { %v4621_v45 = vpop.f32.mrf.mxu0 }
 0x60a   :  { %v4623_v46 = vpop.f32.mrf.mxu0 }
 0x610   :  { %v4124_v47 = vpop.f32.mrf.mxu0 }
 0x611   :  { %v759_v48 = vmul.f32 0.25, %v4124_v47 }
 0x612   :  { %v749_v49 = vpop.f32.mrf.mxu0 }
 0x613   :  { %v758_v50 = vmul.f32 0.25, %v749_v49  ;;  %v761_v51 = vadd.f32 %v759_v48, %v4594_v15 }
 0x615   :  { %v765_v52 = vsel %vm562_vm7, %v761_v51, -inf  ;;  %v760_v53 = vadd.f32 %v758_v50, %v4597_v18 }
 0x616   :  { %766 = vmax.xlane.f32.xlu1 %v765_v52 }
 0x617   :  { %v762_v54 = vsel %vm558_vm8, %v760_v53, -inf }
 0x618   :  { %763 = vmax.xlane.f32.xlu0 %v762_v54 }
 0x627   :  { %785 = vrot.lane.b32.xlu1 %v4580_v11, %s4461_s10 }
 0x62b   :  { %1041 = vrot.lane.b32.xlu1 %v4565_v4, %s4463_s15 }
 0x62f   :  { %1039 = vrot.lane.b32.xlu1 %v4559_v1, %s4463_s15 }
 0x633   :  { %1037 = vrot.lane.b32.xlu1 %v4565_v4, %s4464_s16 }
 0x637   :  { %1327 = vrot.lane.b32.xlu1 %v4559_v1, %s4465_s17 }
 0x63b   :  { %1325 = vrot.lane.b32.xlu1 %v4565_v4, %s4466_s18 }
 0x69f   :  { %v767_v57 = vpop.xlane.xlu1 %766 }
 0x6a0   :  { %v769_v58 = vsub.f32 %v761_v51, %v767_v57 }
 0x6a1   :  { %v764_v59 = vpop.xlane.xlu0 %763 }
 0x6a2   :  { %v772_v60 = vmul.f32 1.442695, %v769_v58  ;;  %v768_v62 = vsub.f32 %v760_v53, %v764_v59 }
 0x6a3   :  { %v786_v63 = vpop.permute.xlu1 %785 }
 0x6a4   :  { %4346 = vpow2.f32 %v772_v60  ;;  %v770_v0 = vmul.f32 1.442695, %v768_v62 }
 0x6a6   :  { %4348 = vpow2.f32 %v770_v0 }
 0x6a7   :  { %v1042_v2 = vpop.permute.xlu1 %1041 }
 0x6a8   :  { %4146 = vmatprep.subr.msk.mxu0 %vm470_vm5, %v1042_v2 }
 0x6ab   :  { %v1040_v24 = vpop.permute.xlu1 %1039 }
 0x6af   :  { %v1038_v27 = vpop.permute.xlu1 %1037 }
 0x6b1   :  { %v4347_v3 = vpop.eup %4346 }
 0x6b2   :  { %v777_v6 = vsel %vm562_vm7, %v4347_v3, 0.0 }
 0x6b3   :  { %v4349_v7 = vpop.eup %4348  ;;  %778 = vadd.xlane.f32.xlu0 %v777_v6  ;;  %v1328_v29 = vpop.permute.xlu1 %1327 }
 0x6b4   :  { %v774_v8 = vsel %vm558_vm8, %v4349_v7, 0.0 }
 0x6b7   :  { %775 = vadd.xlane.f32.xlu0 %v774_v8  ;;  %v1326_v30 = vpop.permute.xlu1 %1325 }
 0x6cd   :  { %787 = vrot.lane.b32.xlu0 %v4575_v10, %s4461_s10 }
 0x6d1   :  { %1035 = vrot.lane.b32.xlu0 %v4559_v1, %s4464_s16 }
 0x6d5   :  { %1329 = vrot.lane.b32.xlu0 %v4565_v4, %s4465_s17 }
 0x6d9   :  { %1323 = vrot.lane.b32.xlu0 %v4559_v1, %s4466_s18  ;;  %v264_v1 = vld [vmem:[%s4632_s14] sm:$0xff] }
 0x73c   :  { %v779_v9 = vpop.xlane.xlu0 %778 }
 0x73d   :  { %4350 = vrcp.f32 %v779_v9 }
 0x740   :  { %v776_v13 = vpop.xlane.xlu0 %775 }
 0x741   :  { %4352 = vrcp.f32 %v776_v13 }
 0x744   :  { %v788_v16 = vpop.permute.xlu0 %787 }
 0x745   :  { %4125 = vmatprep.subr.msk.mxu1 %vm588_vm6, %v788_v16 }
 0x746   :  { %4126 = vmatpush3.msk.msra.mxu1 %vm588_vm6, %v788_v16 }
 0x747   :  { %4127 = vmatprep.subr.mxu1 %v786_v63 }
 0x748   :  { %4128 = vmatpush3.msra.mxu1 %v786_v63  ;;  %v1036_v22 = vpop.permute.xlu0 %1035 }
 0x749   :  { %4139 = vmatprep.subr.mxu1 %v265_v17 }
 0x74a   :  { %v4351_v19 = vpop.eup %4350 }
 0x74b   :  { %v783_v21 = vmul.f32 %v4351_v19, %v4347_v3 }
 0x74c   :  { %v1330_v26 = vpop.permute.xlu0 %1329 }
 0x74e   :  { %v4353_v20 = vpop.eup %4352 }
 0x74f   :  { %v782_v4 = vmul.f32 %v4353_v20, %v4349_v7 }
 0x750   :  { %v1324_v28 = vpop.permute.xlu0 %1323 }
 0x751   :  { %4129 = vmatprep.mubr.msk.f32.mxu1 %vm558_vm8, %v782_v4 }
 0x752   :  { %4130 = vmatmul.mubr.msk.f32.vlgmr.msra.gmra.mxu1 %vm558_vm8, %v783_v21 }
 0x753   :  { %4140 = vmatpush3.msra.mxu1 %v265_v17  ;;  %4143 = vmatprep.mubr.msk.f32.mxu1 %vm470_vm5, %v4623_v46 }
 0x754   :  { %4141 = vmatprep.subr.mxu1 %v264_v1 }
 0x755   :  { %4142 = vmatpush3.msra.mxu1 %v264_v1 }
 0x756   :  { %4144 = vmatmul.mubr.msk.f32.vlgmr.msra.gmra.mxu1 %vm470_vm5, %v4621_v45 }
 0x812   :  { %v4131_v23 = vpop.f32.mrf.mxu1 }
 0x814   :  { %v864_v25 = vpop.f32.mrf.mxu1 }
 0x815   :  { %4136 = vmatprep.mubr.msk.f32.mxu0 %vm470_vm5, %v864_v25 }
 0x816   :  { %4137 = vmatmul.mubr.msk.f32.vlgmr.msra.gmra.mxu0 %vm470_vm5, %v4131_v23  ;;  %v4145_v23 = vpop.f32.mrf.mxu1 }
 0x817   :  { %4147 = vmatpush3.xpose.msk.msra.mxu0 %vm470_vm5, %v1042_v2  ;;  %4150 = vmatprep.mubr.msk.f32.mxu0 %vm470_vm5, %v1036_v22 }
 0x818   :  { %4148 = vmatprep.subr.msk.mxu0 %vm470_vm5, %v1040_v24 }
 0x81b   :  { %4149 = vmatpush3.xpose.msk.msra.mxu0 %vm470_vm5, %v1040_v24  ;;  %v1026_v24 = vpop.f32.mrf.mxu1 }
 0x81c   :  { %4167 = vmatprep.subr.msk.mxu0 %vm470_vm5, %v1330_v26 }
 0x81e   :  { %4151 = vmatmul.mubr.msk.f32.vlgmr.msra.gmra.mxu0 %vm470_vm5, %v1038_v27 }
 0x81f   :  { %4168 = vmatpush3.xpose.msk.msra.mxu0 %vm470_vm5, %v1330_v26  ;;  %4171 = vmatprep.mubr.msk.f32.mxu0 %vm470_vm5, %v1324_v28 }
 0x820   :  { %4169 = vmatprep.subr.msk.mxu0 %vm470_vm5, %v1328_v29 }
 0x823   :  { %4170 = vmatpush3.xpose.msk.msra.mxu0 %vm470_vm5, %v1328_v29 }
 0x826   :  { %4172 = vmatmul.mubr.msk.f32.vlgmr.msra.gmra.mxu0 %vm470_vm5, %v1326_v30 }
 0x827   :  { %1744 = vmatprep.mubr.f32.mxu0 %v4454_v41 }
 0x8d6   :  { %v4683_v31 = vpop.f32.mrf.mxu0 }
 0x8d8   :  { %v4685_v32 = vpop.f32.mrf.mxu0 }
 0x8de   :  { %v4152_v33 = vpop.f32.mrf.mxu0 }
 0x8df   :  { %v1127_v34 = vmul.f32 0.25, %v4152_v33 }
 0x8e0   :  { %v1117_v35 = vpop.f32.mrf.mxu0 }
 0x8e1   :  { %v1126_v36 = vmul.f32 0.25, %v1117_v35  ;;  %v1129_v37 = vadd.f32 %v1127_v34, %v4594_v15  ;;  %v271_v34 = vld [vmem:[%s4632_s14 + $0x38] sm:$0xff]  ;;  %v270_v35 = vld [vmem:[%s4632_s14 + $0x30] sm:$0xff] }
 0x8e3   :  { %v1133_v38 = vsel %vm562_vm7, %v1129_v37, -inf  ;;  %v1128_v39 = vadd.f32 %v1126_v36, %v4597_v18  ;;  %v1032_v36 = vadd.f32 %v4145_v23, %v4683_v31  ;;  %v3859_v31 = vld [vmem:[%s3792_s22] ss:$0 sm:$0xff] }
 0x8e4   :  { %1134 = vmax.xlane.f32.xlu1 %v1133_v38  ;;  %v1027_v38 = vadd.f32 %v1026_v24, %v4685_v32 }
 0x8e5   :  { %v1130_v40 = vsel %vm558_vm8, %v1128_v39, -inf }
 0x8e6   :  { %1131 = vmax.xlane.f32.xlu0 %v1130_v40  ;;  %v4173_v42 = vpop.f32.mrf.mxu0 }
 0x8e7   :  { %v1415_v60 = vmul.f32 0.25, %v4173_v42 }
 0x8e8   :  { %v1405_v43 = vpop.f32.mrf.mxu0 }
 0x8e9   :  { %v1414_v44 = vmul.f32 0.25, %v1405_v43  ;;  %v1417_v62 = vadd.f32 %v1415_v60, %v4594_v15  ;;  %v269_v15 = vld [vmem:[%s4632_s14 + $0x28] sm:$0xff] }
 0x8eb   :  { %v1416_v45 = vadd.f32 %v1414_v44, %v4597_v18  ;;  %v1421_v63 = vsel %vm562_vm7, %v1417_v62, -inf }
 0x8ed   :  { %v1418_v46 = vsel %vm558_vm8, %v1416_v45, -inf }
 0x8f5   :  { %1152 = vrot.lane.b32.xlu1 %v4580_v11, %s4464_s16 }
 0x919   :  { %1419 = vmax.xlane.f32.xlu1 %v1418_v46 }
 0x96d   :  { %v1135_v47 = vpop.xlane.xlu1 %1134 }
 0x96e   :  { %v1137_v48 = vsub.f32 %v1129_v37, %v1135_v47 }
 0x96f   :  { %v1132_v49 = vpop.xlane.xlu0 %1131 }
 0x970   :  { %v1140_v50 = vmul.f32 1.442695, %v1137_v48  ;;  %v1136_v51 = vsub.f32 %v1128_v39, %v1132_v49 }
 0x971   :  { %v1153_v18 = vpop.permute.xlu1 %1152 }
 0x972   :  { %4354 = vpow2.f32 %v1140_v50  ;;  %v1138_v52 = vmul.f32 1.442695, %v1136_v51 }
 0x974   :  { %4356 = vpow2.f32 %v1138_v52 }
 0x97f   :  { %v4355_v53 = vpop.eup %4354 }
 0x980   :  { %v1145_v54 = vsel %vm562_vm7, %v4355_v53, 0.0 }
 0x981   :  { %v4357_v55 = vpop.eup %4356  ;;  %1146 = vadd.xlane.f32.xlu0 %v1145_v54 }
 0x982   :  { %v1142_v56 = vsel %vm558_vm8, %v4357_v55, 0.0 }
 0x985   :  { %1143 = vadd.xlane.f32.xlu0 %v1142_v56 }
 0x99b   :  { %1154 = vrot.lane.b32.xlu0 %v4575_v10, %s4464_s16 }
 0x9a2   :  { %v1420_v57 = vpop.xlane.xlu1 %1419 }
 0x9a3   :  { %v1424_v58 = vsub.f32 %v1416_v45, %v1420_v57 }
 0x9a5   :  { %v1426_v59 = vmul.f32 1.442695, %v1424_v58 }
 0x9a7   :  { %4358 = vpow2.f32 %v1426_v59 }
 0x9b4   :  { %v4359_v0 = vpop.eup %4358 }
 0x9b5   :  { %v1430_v2 = vsel %vm558_vm8, %v4359_v0, 0.0 }
 0x9ba   :  { %1422 = vmax.xlane.f32.xlu0 %v1421_v63  ;;  %v289_v63 = vld [vmem:[%s3795_s26 + $0x70] sm:$0xff] }
 0x9be   :  { %1431 = vadd.xlane.f32.xlu0 %v1430_v2  ;;  %v287_v2 = vld [vmem:[%s3795_s26 + $0x60] sm:$0xff] }
 0x9d4   :  { %1442 = vrot.lane.b32.xlu0 %v4575_v10, %s4466_s18  ;;  %v268_v10 = vld [vmem:[%s4632_s14 + $0x20] sm:$0xff] }
 0xa0a   :  { %v1147_v3 = vpop.xlane.xlu0 %1146 }
 0xa0b   :  { %4360 = vrcp.f32 %v1147_v3  ;;  %v286_v3 = vld [vmem:[%s3795_s26 + $0x58] sm:$0xff] }
 0xa0e   :  { %v1144_v6 = vpop.xlane.xlu0 %1143 }
 0xa0f   :  { %4362 = vrcp.f32 %v1144_v6  ;;  %v285_v6 = vld [vmem:[%s3795_s26 + $0x50] sm:$0xff] }
 0xa12   :  { %v1155_v7 = vpop.permute.xlu0 %1154 }
 0xa13   :  { %4153 = vmatprep.subr.msk.mxu1 %vm588_vm6, %v1155_v7 }
 0xa14   :  { %4154 = vmatpush3.msk.msra.mxu1 %vm588_vm6, %v1155_v7  ;;  %v284_v7 = vld [vmem:[%s3795_s26 + $0x48] sm:$0xff] }
 0xa15   :  { %4155 = vmatprep.subr.mxu1 %v1153_v18 }
 0xa16   :  { %4156 = vmatpush3.msra.mxu1 %v1153_v18 }
 0xa17   :  { %4160 = vmatprep.subr.mxu1 %v269_v15 }
 0xa18   :  { %v4361_v8 = vpop.eup %4360 }
 0xa19   :  { %v1151_v16 = vmul.f32 %v4361_v8, %v4355_v53  ;;  %v282_v8 = vld [vmem:[%s3795_s26 + $0x38] sm:$0xff] }
 0xa1c   :  { %v4363_v9 = vpop.eup %4362 }
 0xa1d   :  { %v1150_v13 = vmul.f32 %v4363_v9, %v4357_v55  ;;  %v281_v9 = vld [vmem:[%s3795_s26 + $0x30] sm:$0xff] }
 0xa1f   :  { %4157 = vmatprep.mubr.msk.f32.mxu1 %vm558_vm8, %v1150_v13  ;;  %v280_v13 = vld [vmem:[%s3795_s26 + $0x28] sm:$0xff] }
 0xa20   :  { %4158 = vmatmul.mubr.msk.f32.vlgmr.msra.gmra.mxu1 %vm558_vm8, %v1151_v16  ;;  %v279_v16 = vld [vmem:[%s3795_s26 + $0x20] sm:$0xff] }
 0xa21   :  { %4161 = vmatpush3.msra.mxu1 %v269_v15  ;;  %v283_v15 = vld [vmem:[%s3795_s26 + $0x40] sm:$0xff] }
 0xa22   :  { %4162 = vmatprep.subr.mxu1 %v268_v10 }
 0xa23   :  { %4163 = vmatpush3.msra.mxu1 %v268_v10  ;;  %v278_v10 = vld [vmem:[%s3795_s26 + $0x18] sm:$0xff] }
 0xa43   :  { %v1423_v17 = vpop.xlane.xlu0 %1422 }
 0xa44   :  { %v1425_v19 = vsub.f32 %v1417_v62, %v1423_v17  ;;  %v290_v62 = vld [vmem:[%s3795_s26 + $0x78] sm:$0xff]  ;;  %v277_v17 = vld [vmem:[%s3795_s26 + $0x10] sm:$0xff] }
 0xa45   :  { %1696 = vmatprep.subr.mxu0 %v290_v62  ;;  %v294_v62 = vld [vmem:[%s4759_s11 + $0x10] sm:$0xff] }
 0xa46   :  { %v1428_v20 = vmul.f32 1.442695, %v1425_v19  ;;  %1697 = vmatpush1.msra.mxu0 %v289_v63  ;;  %v276_v19 = vld [vmem:[%s3795_s26 + $0x8] sm:$0xff] }
 0xa47   :  { %v1432_v4 = vpop.xlane.xlu0 %1431  ;;  %v309_v63 = vld [vmem:[%s4759_s11 + $0x88] sm:$0xff] }
 0xa48   :  { %4364 = vpow2.f32 %v1428_v20  ;;  %v275_v20 = vld [vmem:[%s3795_s26] sm:$0xff] }
 0xa49   :  { %4366 = vrcp.f32 %v1432_v4 }
 0xa4b   :  { %v1443_v21 = vpop.permute.xlu0 %1442 }
 0xa4c   :  { %4174 = vmatprep.subr.msk.mxu1 %vm588_vm6, %v1443_v21 }
 0xa55   :  { %v4365_v1 = vpop.eup %4364 }
 0xa56   :  { %v1433_v22 = vsel %vm562_vm7, %v4365_v1, 0.0  ;;  %v4367_v25 = vpop.eup %4366 }
 0xa57   :  { %1434 = vadd.xlane.f32.xlu1 %v1433_v22  ;;  %v1438_v29 = vmul.f32 %v4367_v25, %v4359_v0  ;;  %v288_v0 = vld [vmem:[%s3795_s26 + $0x68] sm:$0xff] }
 0xa58   :  { %1698 = vmatprep.subr.mxu0 %v288_v0  ;;  %v293_v0 = vld [vmem:[%s4759_s11 + $0x8] sm:$0xff] }
 0xa59   :  { %1699 = vmatpush1.msra.mxu0 %v287_v2  ;;  %v308_v2 = vld [vmem:[%s4759_s11 + $0x80] sm:$0xff] }
 0xa5a   :  { %1700 = vmatprep.subr.mxu0 %v286_v3  ;;  %v292_v3 = vld [vmem:[%s4759_s11] sm:$0xff] }
 0xa5b   :  { %1701 = vmatpush1.msra.mxu0 %v285_v6  ;;  %v291_v6 = vld [vmem:[%s3796_s19] sm:$0x3]  ;;  %s4480_s19 = smov 26  }
 0xa5c   :  { %1702 = vmatprep.subr.mxu0 %v284_v7  ;;  %v1667_v7 = vrot.slane %v291_v6, %v4556_v61  ;;  %s3807_s22 = sld [smem:[%s5147_s0 + %s4480_s19]]  }
 0xa5d   :  { %1703 = vmatpush1.msra.mxu0 %v283_v15  ;;  %v1671_v15 = vrot.slane %v291_v6, %v4569_v5 }
 0xa5e   :  { %1704 = vmatprep.subr.mxu0 %v282_v8 }
 0xa5f   :  { %1705 = vmatpush1.msra.mxu0 %v281_v9 }
 0xa60   :  { %1706 = vmatprep.subr.mxu0 %v280_v13 }
 0xa61   :  { %1707 = vmatpush1.msra.mxu0 %v279_v16 }
 0xa62   :  { %1708 = vmatprep.subr.mxu0 %v278_v10 }
 0xa63   :  { %1709 = vmatpush1.msra.mxu0 %v277_v17 }
 0xa64   :  { %1710 = vmatprep.subr.mxu0 %v276_v19 }
 0xa65   :  { %1711 = vmatpush1.msra.mxu0 %v275_v20 }
 0xa68   :  { %1440 = vrot.lane.b32.xlu1 %v4580_v11, %s4466_s18 }
 0xae0   :  { %v4159_v26 = vpop.f32.mrf.mxu1  ;;  %v1435_v27 = vpop.xlane.xlu1 %1434 }
 0xae1   :  { %4368 = vrcp.f32 %v1435_v27 }
 0xae2   :  { %v1231_v28 = vpop.f32.mrf.mxu1 }
 0xae3   :  { %4164 = vmatprep.mubr.msk.f32.mxu1 %vm470_vm5, %v1231_v28 }
 0xae4   :  { %4165 = vmatmul.mubr.msk.f32.vlgmr.msra.gmra.mxu1 %vm470_vm5, %v4159_v26  ;;  %v1441_v30 = vpop.permute.xlu1 %1440 }
 0xae5   :  { %4175 = vmatpush3.msk.msra.mxu1 %vm588_vm6, %v1443_v21  ;;  %4178 = vmatprep.mubr.msk.f32.mxu1 %vm558_vm8, %v1438_v29  ;;  %v3860_v29 = vld [vmem:[%s3793_s30] ss:$0 sm:$0xff] }
 0xae6   :  { %4176 = vmatprep.subr.mxu1 %v1441_v30 }
 0xae7   :  { %4177 = vmatpush3.msra.mxu1 %v1441_v30 }
 0xae8   :  { %4181 = vmatprep.subr.mxu1 %v271_v34 }
 0xaee   :  { %v4369_v11 = vpop.eup %4368 }
 0xaef   :  { %v1439_v33 = vmul.f32 %v4369_v11, %v4365_v1  ;;  %v3861_v11 = vld [vmem:[%s3794_s5] ss:$0 sm:$0xff] }
 0xaf1   :  { %4179 = vmatmul.mubr.msk.f32.vlgmr.msra.gmra.mxu1 %vm558_vm8, %v1439_v33 }
 0xaf2   :  { %4182 = vmatpush3.msra.mxu1 %v271_v34 }
 0xaf3   :  { %4183 = vmatprep.subr.mxu1 %v270_v35 }
 0xaf4   :  { %4184 = vmatpush3.msra.mxu1 %v270_v35 }
 0xba4   :  { %v4166_v37 = vpop.f32.mrf.mxu1 }
 0xba5   :  { %v1322_v39 = vadd.f32 %v4166_v37, %v1032_v36  ;;  %v323_v36 = vld [vmem:[%s4759_s11 + $0xf8] sm:$0xff] }
 0xba6   :  { %v1312_v40 = vpop.f32.mrf.mxu1  ;;  %3966 = vmatprep.subr.mxu1 %v323_v36  ;;  %v307_v37 = vld [vmem:[%s4759_s11 + $0x78] sm:$0xff] }
 0xba7   :  { %v1321_v42 = vadd.f32 %v1312_v40, %v1027_v38  ;;  %v322_v38 = vld [vmem:[%s4759_s11 + $0xf0] sm:$0xff]  ;;  %v321_v40 = vld [vmem:[%s4759_s11 + $0xe8] sm:$0xff] }
 0xbb1   :  { %v4180_v43 = vpop.f32.mrf.mxu1 }
 0xbb3   :  { %v1519_v44 = vpop.f32.mrf.mxu1 }
 0xbb4   :  { %4185 = vmatprep.mubr.msk.f32.mxu1 %vm470_vm5, %v1519_v44  ;;  %v304_v44 = vld [vmem:[%s4759_s11 + $0x60] sm:$0xff] }
 0xbb5   :  { %4186 = vmatmul.mubr.msk.f32.vlgmr.msra.gmra.mxu1 %vm470_vm5, %v4180_v43  ;;  %v320_v43 = vld [vmem:[%s4759_s11 + $0xe0] sm:$0xff] }
 0xbb6   :  { %3967 = vmatpush3.msra.mxu1 %v307_v37 }
 0xbb7   :  { %3968 = vmatprep.subr.mxu1 %v322_v38 }
 0xc75   :  { %v4187_v45 = vpop.f32.mrf.mxu1 }
 0xc76   :  { %v1610_v46 = vadd.f32 %v4187_v45, %v1322_v39  ;;  %v306_v39 = vld [vmem:[%s4759_s11 + $0x70] sm:$0xff]  ;;  %v319_v45 = vld [vmem:[%s4759_s11 + $0xd8] sm:$0xff] }
 0xc77   :  { %v1600_v47 = vpop.f32.mrf.mxu1  ;;  %3969 = vmatpush3.msra.mxu1 %v306_v39 }
 0xc78   :  { %v1612_v32 = vadd.f32 %v1610_v46, %v4514_v14  ;;  %v1609_v48 = vadd.f32 %v1600_v47, %v1321_v42  ;;  %3970 = vmatprep.subr.mxu1 %v321_v40  ;;  %v305_v42 = vld [vmem:[%s4759_s11 + $0x68] sm:$0xff]  ;;  %v303_v46 = vld [vmem:[%s4759_s11 + $0x58] sm:$0xff]  ;;  %v302_v47 = vld [vmem:[%s4759_s11 + $0x50] sm:$0xff] }
 0xc79   :  { %3971 = vmatpush3.msra.mxu1 %v305_v42 }
 0xc7a   :  { %v4729_v49 = vadd.f32 %v3859_v31, %v1612_v32  ;;  %v1611_v50 = vadd.f32 %v1609_v48, %v4510_v12  ;;  %3972 = vmatprep.subr.mxu1 %v320_v43  ;;  %v317_v32 = vld [vmem:[%s4759_s11 + $0xc8] sm:$0xff] }
 0xc7b   :  { %3973 = vmatpush3.msra.mxu1 %v304_v44  ;;  %v301_v48 = vld [vmem:[%s4759_s11 + $0x48] sm:$0xff] }
 0xc7c   :  { %v4732_v51 = vadd.f32 %v3859_v31, %v1611_v50  ;;  %v1624_v52 = vsel %vm329_vm4, %v4729_v49, 0.0  ;;  %3974 = vmatprep.subr.mxu1 %v319_v45  ;;  %v318_v31 = vld [vmem:[%s4759_s11 + $0xd0] sm:$0xff]  ;;  %v316_v50 = vld [vmem:[%s4759_s11 + $0xc0] sm:$0xff] }
 0xc7d   :  { %1625 = vadd.xlane.f32.xlu0 %v1624_v52  ;;  %3975 = vmatpush3.msra.mxu1 %v303_v46  ;;  %v300_v52 = vld [vmem:[%s4759_s11 + $0x40] sm:$0xff] }
 0xc7e   :  { %v1621_v53 = vsel %vm325_vm3, %v4732_v51, 0.0  ;;  %3976 = vmatprep.subr.mxu1 %v318_v31 }
 0xc7f   :  { %1622 = vadd.xlane.f32.xlu1 %v1621_v53  ;;  %3977 = vmatpush3.msra.mxu1 %v302_v47  ;;  %v315_v53 = vld [vmem:[%s4759_s11 + $0xb8] sm:$0xff] }
 0xc80   :  { %3978 = vmatprep.subr.mxu1 %v317_v32 }
 0xc81   :  { %3979 = vmatpush3.msra.mxu1 %v301_v48 }
 0xc82   :  { %3980 = vmatprep.subr.mxu1 %v316_v50 }
 0xc83   :  { %3981 = vmatpush3.msra.mxu1 %v300_v52 }
 0xc84   :  { %3982 = vmatprep.subr.mxu1 %v315_v53 }
 0xd06   :  { %v1626_v54 = vpop.xlane.xlu0 %1625 }
 0xd07   :  { %v1628_v55 = vmul.f32 0.015625, %v1626_v54  ;;  %v299_v54 = vld [vmem:[%s4759_s11 + $0x38] sm:$0xff] }
 0xd08   :  { %v1623_v56 = vpop.xlane.xlu1 %1622  ;;  %3983 = vmatpush3.msra.mxu1 %v299_v54 }
 0xd09   :  { %v1630_v14 = vsub.f32 %v4729_v49, %v1628_v55  ;;  %v1627_v18 = vmul.f32 0.015625, %v1623_v56  ;;  %v314_v55 = vld [vmem:[%s4759_s11 + $0xb0] sm:$0xff] }
 0xd0a   :  { %3984 = vmatprep.subr.mxu1 %v314_v55  ;;  %v298_v56 = vld [vmem:[%s4759_s11 + $0x30] sm:$0xff] }
 0xd0b   :  { %v1629_v57 = vsub.f32 %v4732_v51, %v1627_v18  ;;  %v1632_v58 = vmul.f32 %v1630_v14, %v1630_v14  ;;  %3985 = vmatpush3.msra.mxu1 %v298_v56  ;;  %v297_v18 = vld [vmem:[%s4759_s11 + $0x28] sm:$0xff] }
 0xd0d   :  { %v1636_v12 = vsel %vm329_vm4, %v1632_v58, 0.0  ;;  %v1631_v59 = vmul.f32 %v1629_v57, %v1629_v57  ;;  %v296_v58 = vld [vmem:[%s4759_s11 + $0x20] sm:$0xff] }
 0xd0e   :  { %1637 = vadd.xlane.f32.xlu1 %v1636_v12  ;;  %v311_v12 = vld [vmem:[%s4759_s11 + $0x98] sm:$0xff] }
 0xd0f   :  { %v1633_v60 = vsel %vm325_vm3, %v1631_v59, 0.0  ;;  %v295_v59 = vld [vmem:[%s4759_s11 + $0x18] sm:$0xff] }
 0xd10   :  { %1634 = vadd.xlane.f32.xlu0 %v1633_v60  ;;  %v310_v60 = vld [vmem:[%s4759_s11 + $0x90] sm:$0xff] }
 0xd97   :  { %v1638_v4 = vpop.xlane.xlu1 %1637 }
 0xd98   :  { %v1640_v21 = vmul.f32 0.015625, %v1638_v4 }
 0xd99   :  { %v1635_v1 = vpop.xlane.xlu0 %1634 }
 0xd9a   :  { %v1642_v22 = vadd.f32 1e-05, %v1640_v21  ;;  %v1639_v23 = vmul.f32 0.015625, %v1635_v1 }
 0xd9c   :  { %4370 = vrsqrt.f32 %v1642_v22  ;;  %v1641_v24 = vadd.f32 1e-05, %v1639_v23 }
 0xd9e   :  { %4372 = vrsqrt.f32 %v1641_v24 }
 0xda9   :  { %v4371_v25 = vpop.eup %4370 }
 0xdaa   :  { %v1646_v28 = vmul.f32 %v4371_v25, %v1630_v14  ;;  %v313_v14 = vld [vmem:[%s4759_s11 + $0xa8] sm:$0xff] }
 0xdab   :  { %v4373_v26 = vpop.eup %4372  ;;  %3986 = vmatprep.subr.mxu1 %v313_v14 }
 0xdac   :  { %v1645_v27 = vmul.f32 %v4373_v26, %v1629_v57  ;;  %v1654_v34 = vmul.f32 %v3860_v29, %v1646_v28  ;;  %3987 = vmatpush3.msra.mxu1 %v297_v18  ;;  %v312_v57 = vld [vmem:[%s4759_s11 + $0xa0] sm:$0xff] }
 0xdad   :  { %3988 = vmatprep.subr.mxu1 %v312_v57 }
 0xdae   :  { %v1653_v30 = vmul.f32 %v3860_v29, %v1645_v27  ;;  %v1662_v35 = vadd.f32 %v3861_v11, %v1654_v34  ;;  %3989 = vmatpush3.msra.mxu1 %v296_v58 }
 0xdaf   :  { %3990 = vmatprep.subr.mxu1 %v311_v12 }
 0xdb0   :  { %v1661_v33 = vadd.f32 %v3861_v11, %v1653_v30  ;;  %3991 = vmatpush3.msra.mxu1 %v295_v59 }
 0xdb1   :  { %3992 = vmatprep.subr.mxu1 %v310_v60 }
 0xdb2   :  { %3862 = vmatmul.mubr.msk.f32.vlgmr.msra.gmra.mxu0 %vm325_vm3, %v1661_v33  ;;  %3993 = vmatpush3.msra.mxu1 %v294_v62 }
 0xdb3   :  { %1750 = vmatprep.mubr.f32.mxu0 %v4454_v41  ;;  %3994 = vmatprep.subr.mxu1 %v309_v63 }
 0xdb4   :  { %3995 = vmatpush3.msra.mxu1 %v293_v0 }
 0xdb5   :  { %3996 = vmatprep.subr.mxu1 %v308_v2 }
 0xdb6   :  { %3863 = vmatmul.mubr.msk.f32.gmra.mxu0 %vm325_vm3, %v1662_v35  ;;  %3997 = vmatpush3.msra.mxu1 %v292_v3 }
 0xdb7   :  { %2153 = vmatprep.mubr.f32.mxu0 %v4454_v41 }
 0xe72   :  { %v1746_v8 = vpop.f32.mrf.mxu0 }
 0xe73   :  { %v4798_v9 = vadd.f32 %v1746_v8, %v1667_v7 }
 0xe74   :  { %v1748_v13 = vpop.f32.mrf.mxu0 }
 0xe75   :  { %v4801_v16 = vmul.f32 0.70710677, %v4798_v9  ;;  %v4803_v10 = vadd.f32 %v1748_v13, %v1671_v15 }
 0xe76   :  { %v1752_v17 = vpop.f32.mrf.mxu0 }
 0xe77   :  { %v1773_v19 = vand.u32 2147483647, %v4801_v16  ;;  %v4807_v20 = vmul.f32 0.70710677, %v4803_v10  ;;  %v4809_v4 = vadd.f32 %v1752_v17, %v1667_v7  ;;  %vm1765_vm9 = vcmp.ge.f32.partialorder %v4801_v16, 0.0 }
 0xe78   :  { %v1754_v21 = vpop.f32.mrf.mxu0 }
 0xe79   :  { %v1777_v1 = vmul.f32 0.3275911, %v1773_v19  ;;  %v1774_v22 = vand.u32 2147483647, %v4807_v20  ;;  %v4813_v23 = vmul.f32 0.70710677, %v4809_v4  ;;  %v4815_v24 = vadd.f32 %v1754_v21, %v1671_v15 }
 0xe7a   :  { %v1829_v35 = vsub.f32 0.0, %v1773_v19  ;;  %vm1766_vm10 = vcmp.ge.f32.partialorder %v4807_v20, 0.0 }
 0xe7b   :  { %v1781_v25 = vadd.f32 1.0, %v1777_v1  ;;  %v1778_v26 = vmul.f32 0.3275911, %v1774_v22  ;;  %v1775_v27 = vand.u32 2147483647, %v4813_v23  ;;  %v1830_v37 = vsub.f32 0.0, %v1774_v22 }
 0xe7c   :  { %v4819_v28 = vmul.f32 0.70710677, %v4815_v24  ;;  %v1833_v38 = vmul.f32 %v1829_v35, %v1773_v19  ;;  %vm1767_vm11 = vcmp.ge.f32.partialorder %v4813_v23, 0.0  ;;  %v1757_v23 = vmul.f32 0.5, %v4798_v9 }
 0xe7d   :  { %4374 = vrcp.f32 %v1781_v25  ;;  %v1782_v29 = vadd.f32 1.0, %v1778_v26  ;;  %v1779_v30 = vmul.f32 0.3275911, %v1775_v27  ;;  %v1831_v39 = vsub.f32 0.0, %v1775_v27 }
 0xe7e   :  { %v1776_v11 = vand.u32 2147483647, %v4819_v28  ;;  %v1834_v42 = vmul.f32 %v1830_v37, %v1774_v22  ;;  %v1837_v44 = vmul.f32 1.442695, %v1833_v38  ;;  %v4472_v38 = vmov -1.0  }
 0xe7f   :  { %4376 = vrcp.f32 %v1782_v29  ;;  %v1783_v33 = vadd.f32 1.0, %v1779_v30  ;;  %v1835_v46 = vmul.f32 %v1831_v39, %v1775_v27  ;;  %v1769_v39 = vsel %vm1765_vm9, 1.0, %v4472_v38 }
 0xe80   :  { %v1780_v34 = vmul.f32 0.3275911, %v1776_v11  ;;  %v1832_v45 = vsub.f32 0.0, %v1776_v11  ;;  %v1839_v32 = vmul.f32 1.442695, %v1834_v42  ;;  %vm1768_vm12 = vcmp.ge.f32.partialorder %v4819_v28, 0.0 }
 0xe81   :  { %4378 = vrcp.f32 %v1783_v33  ;;  %v1841_v54 = vmul.f32 1.442695, %v1835_v46  ;;  %v1759_v28 = vmul.f32 0.5, %v4809_v4 }
 0xe82   :  { %v1784_v36 = vadd.f32 1.0, %v1780_v34  ;;  %v1836_v53 = vmul.f32 %v1832_v45, %v1776_v11 }
 0xe84   :  { %4380 = vrcp.f32 %v1784_v36  ;;  %v1843_v59 = vmul.f32 1.442695, %v1836_v53 }
 0xe85   :  { %4382 = vpow2.f32 %v1837_v44 }
 0xe86   :  { %4384 = vpow2.f32 %v1839_v32 }
 0xe87   :  { %4386 = vpow2.f32 %v1841_v54  ;;  %v1771_v54 = vsel %vm1767_vm11, 1.0, %v4472_v38 }
 0xe88   :  { %4388 = vpow2.f32 %v1843_v59 }
 0xe8a   :  { %v4375_v40 = vpop.eup %4374 }
 0xe8b   :  { %v1793_v43 = vmul.f32 1.0614054, %v4375_v40 }
 0xe8c   :  { %v4377_v31 = vpop.eup %4376 }
 0xe8d   :  { %v1797_v47 = vadd.f32 -1.4531521, %v1793_v43  ;;  %v1794_v48 = vmul.f32 1.0614054, %v4377_v31 }
 0xe8e   :  { %v4379_v50 = vpop.eup %4378 }
 0xe8f   :  { %v1801_v52 = vmul.f32 %v4375_v40, %v1797_v47  ;;  %v1798_v55 = vadd.f32 -1.4531521, %v1794_v48  ;;  %v1795_v56 = vmul.f32 1.0614054, %v4379_v50 }
 0xe91   :  { %v1805_v14 = vadd.f32 1.4214138, %v1801_v52  ;;  %v4381_v18 = vpop.eup %4380  ;;  %v1802_v57 = vmul.f32 %v4377_v31, %v1798_v55  ;;  %v1799_v58 = vadd.f32 -1.4531521, %v1795_v56 }
 0xe92   :  { %v1796_v60 = vmul.f32 1.0614054, %v4381_v18  ;;  %v4383_v26 = vpop.eup %4382 }
 0xe93   :  { %v1809_v12 = vmul.f32 %v4375_v40, %v1805_v14  ;;  %v1806_v62 = vadd.f32 1.4214138, %v1802_v57  ;;  %v1803_v63 = vmul.f32 %v4379_v50, %v1799_v58  ;;  %v4385_v35 = vpop.eup %4384  ;;  %v1772_v57 = vsel %vm1768_vm12, 1.0, %v4472_v38 }
 0xe94   :  { %v1800_v2 = vadd.f32 -1.4531521, %v1796_v60  ;;  %v4387_v43 = vpop.eup %4386  ;;  %v1760_v60 = vmul.f32 0.5, %v4815_v24 }
 0xe95   :  { %v1813_v0 = vadd.f32 -0.28449672, %v1809_v12  ;;  %v1810_v3 = vmul.f32 %v4377_v31, %v1806_v62  ;;  %v1807_v6 = vadd.f32 1.4214138, %v1803_v63  ;;  %v4389_v32 = vpop.eup %4388 }
 0xe96   :  { %v1804_v15 = vmul.f32 %v4381_v18, %v1800_v2 }
 0xe97   :  { %v1817_v7 = vmul.f32 %v4375_v40, %v1813_v0  ;;  %v1814_v8 = vadd.f32 -0.28449672, %v1810_v3  ;;  %v1811_v13 = vmul.f32 %v4379_v50, %v1807_v6  ;;  %v3864_v3 = vld [vmem:[%s3798_s23] ss:$0 sm:$0xff]  ;;  %s4481_s23 = smov 24  }
 0xe98   :  { %v1808_v19 = vadd.f32 1.4214138, %v1804_v15  ;;  %s3805_s26 = sld [smem:[%s5147_s0 + %s4481_s23]]  }
 0xe99   :  { %v1821_v17 = vadd.f32 0.2548296, %v1817_v7  ;;  %v1818_v21 = vmul.f32 %v4377_v31, %v1814_v8  ;;  %v1815_v1 = vadd.f32 -0.28449672, %v1811_v13  ;;  %s3812_s23 = sld [smem:[%s5147_s0 + %s4488_s20]]  }
 0xe9a   :  { %v1812_v25 = vmul.f32 %v4381_v18, %v1808_v19 }
 0xe9b   :  { %v1825_v22 = vmul.f32 %v4375_v40, %v1821_v17  ;;  %v1822_v27 = vadd.f32 0.2548296, %v1818_v21  ;;  %v1819_v29 = vmul.f32 %v4379_v50, %v1815_v1 }
 0xe9c   :  { %v1816_v11 = vadd.f32 -0.28449672, %v1812_v25 }
 0xe9d   :  { %v1845_v30 = vmul.f32 %v4383_v26, %v1825_v22  ;;  %v1826_v33 = vmul.f32 %v4377_v31, %v1822_v27  ;;  %v1823_v34 = vadd.f32 0.2548296, %v1819_v29  ;;  %v1770_v31 = vsel %vm1766_vm10, 1.0, %v4472_v38 }
 0xe9e   :  { %v1820_v37 = vmul.f32 %v4381_v18, %v1816_v11  ;;  %v1967_v11 = vld [vmem:[%s3801_s27 + $0x78] sm:$0xff] }
 0xe9f   :  { %v1849_v36 = vsub.f32 1.0, %v1845_v30  ;;  %v1846_v42 = vmul.f32 %v4385_v35, %v1826_v33  ;;  %v1827_v40 = vmul.f32 %v4379_v50, %v1823_v34  ;;  %v1758_v50 = vmul.f32 0.5, %v4803_v10  ;;  %2105 = vmatprep.subr.mxu0 %v1967_v11  ;;  %v1966_v33 = vld [vmem:[%s3801_s27 + $0x70] sm:$0xff]  ;;  %v1965_v34 = vld [vmem:[%s3801_s27 + $0x68] sm:$0xff]  ;;  %v1964_v35 = vld [vmem:[%s3801_s27 + $0x60] sm:$0xff] }
 0xea0   :  { %v1824_v45 = vadd.f32 0.2548296, %v1820_v37  ;;  %2106 = vmatpush1.msra.mxu0 %v1966_v33  ;;  %v1962_v37 = vld [vmem:[%s3801_s27 + $0x50] sm:$0xff] }
 0xea1   :  { %v1853_v44 = vmul.f32 %v1849_v36, %v1769_v39  ;;  %v1850_v16 = vsub.f32 1.0, %v1846_v42  ;;  %v1847_v46 = vmul.f32 %v4387_v43, %v1827_v40  ;;  %2107 = vmatprep.subr.mxu0 %v1965_v34  ;;  %v1963_v36 = vld [vmem:[%s3801_s27 + $0x58] sm:$0xff]  ;;  %v1961_v39 = vld [vmem:[%s3801_s27 + $0x48] sm:$0xff]  ;;  %v1960_v42 = vld [vmem:[%s3801_s27 + $0x40] sm:$0xff] }
 0xea2   :  { %v1828_v47 = vmul.f32 %v4381_v18, %v1824_v45  ;;  %2108 = vmatpush1.msra.mxu0 %v1964_v35  ;;  %v1959_v40 = vld [vmem:[%s3801_s27 + $0x38] sm:$0xff]  ;;  %v1958_v43 = vld [vmem:[%s3801_s27 + $0x30] sm:$0xff]  ;;  %v1956_v45 = vld [vmem:[%s3801_s27 + $0x20] sm:$0xff] }
 0xea3   :  { %v1854_v48 = vmul.f32 %v1850_v16, %v1770_v31  ;;  %v1851_v52 = vsub.f32 1.0, %v1847_v46  ;;  %v1857_v53 = vadd.f32 1.0, %v1853_v44  ;;  %2109 = vmatprep.subr.mxu0 %v1963_v36  ;;  %v1957_v44 = vld [vmem:[%s3801_s27 + $0x28] sm:$0xff]  ;;  %v1955_v16 = vld [vmem:[%s3801_s27 + $0x18] sm:$0xff]  ;;  %v1954_v46 = vld [vmem:[%s3801_s27 + $0x10] sm:$0xff] }
 0xea4   :  { %v1848_v20 = vmul.f32 %v4389_v32, %v1828_v47  ;;  %2110 = vmatpush1.msra.mxu0 %v1962_v37  ;;  %v1953_v31 = vld [vmem:[%s3801_s27 + $0x8] sm:$0xff]  ;;  %v1952_v47 = vld [vmem:[%s3801_s27] sm:$0xff]  ;;  %s4482_s27 = smov 25  }
 0xea5   :  { %v1858_v55 = vadd.f32 1.0, %v1854_v48  ;;  %v1855_v56 = vmul.f32 %v1851_v52, %v1771_v54  ;;  %v1861_v18 = vmul.f32 %v1857_v53, %v1757_v23  ;;  %2111 = vmatprep.subr.mxu0 %v1961_v39  ;;  %v3866_v23 = vld [vmem:[%s3800_s6] ss:$0 sm:$0xff]  ;;  %s3806_s30 = sld [smem:[%s5147_s0 + %s4482_s27]]   ;;  %s4484_s6 = smov 27  }
 0xea6   :  { %v1852_v14 = vsub.f32 1.0, %v1848_v20  ;;  %2112 = vmatpush1.msra.mxu0 %v1960_v42  ;;  %s3808_s12 = sld [smem:[%s5147_s0 + %s4484_s6]]  }
 0xea7   :  { %v1862_v58 = vmul.f32 %v1858_v55, %v1758_v50  ;;  %v1859_v59 = vadd.f32 1.0, %v1855_v56  ;;  %2113 = vmatprep.subr.mxu0 %v1959_v40  ;;  %v3865_v55 = vld [vmem:[%s3799_s1] ss:$0 sm:$0xff]  ;;  %s4483_s1 = smov 28   ;;  %s3814_s27 = sld [smem:[%s5147_s0 + %s4489_s24]]  }
 0xea8   :  { %v1856_v12 = vmul.f32 %v1852_v14, %v1772_v57  ;;  %2114 = vmatpush1.msra.mxu0 %v1958_v43  ;;  %s5058_s5 = sld [smem:[%s5147_s0 + %s4483_s1]]  }
 0xea9   :  { %1929 = vmatprep.mubr.f32.mxu1 %v1862_v58  ;;  %v1863_v10 = vmul.f32 %v1859_v59, %v1759_v28  ;;  %2115 = vmatprep.subr.mxu0 %v1957_v44 }
 0xeaa   :  { %1930 = vmatmul.mubr.f32.vlgmr.msra.gmra.mxu1 %v1861_v18  ;;  %v1860_v62 = vadd.f32 1.0, %v1856_v12  ;;  %2116 = vmatpush1.msra.mxu0 %v1956_v45 }
 0xeab   :  { %2117 = vmatprep.subr.mxu0 %v1955_v16 }
 0xeac   :  { %v1864_v63 = vmul.f32 %v1860_v62, %v1760_v60  ;;  %2118 = vmatpush1.msra.mxu0 %v1954_v46  ;;  %v1968_v60 = vld [vmem:[%s3802_s13] sm:$0x3]  ;;  %s4485_s13 = smov 29  }
 0xead   :  { %2119 = vmatprep.subr.mxu0 %v1953_v31  ;;  %v2076_v62 = vrot.slane %v1968_v60, %v4556_v61 }
 0xeae   :  { %1934 = vmatprep.mubr.f32.mxu1 %v1864_v63  ;;  %2120 = vmatpush1.msra.mxu0 %v1952_v47 }
 0xeaf   :  { %1935 = vmatmul.mubr.f32.gmra.mxu1 %v1863_v10 }
 0xf6a   :  { %v3998_v9 = vpop.f32.mrf.mxu1 }
 0xf6c   :  { %v3999_v0 = vpop.f32.mrf.mxu1 }
 0xf6d   :  { %v4000_v2 = vadd.f32 %v3999_v0, %v3998_v9  ;;  %v2080_v0 = vrot.slane %v1968_v60, %v4569_v5 }
 0xf6f   :  { %v1940_v6 = vadd.f32 %v4000_v2, %v4732_v51  ;;  %v4001_v24 = vpop.f32.mrf.mxu1 }
 0xf71   :  { %v4838_v7 = vadd.f32 %v3864_v3, %v1940_v6  ;;  %v4002_v15 = vpop.f32.mrf.mxu1 }
 0xf72   :  { %v4003_v4 = vadd.f32 %v4002_v15, %v4001_v24 }
 0xf73   :  { %v2030_v8 = vsel %vm325_vm3, %v4838_v7, 0.0 }
 0xf74   :  { %v1941_v13 = vadd.f32 %v4003_v4, %v4729_v49  ;;  %2031 = vadd.xlane.f32.xlu0 %v2030_v8 }
 0xf76   :  { %v4843_v17 = vadd.f32 %v3864_v3, %v1941_v13 }
 0xf78   :  { %v2033_v19 = vsel %vm329_vm4, %v4843_v17, 0.0 }
 0xf79   :  { %2034 = vadd.xlane.f32.xlu1 %v2033_v19 }
 0xffd   :  { %v2032_v21 = vpop.xlane.xlu0 %2031 }
 0xffe   :  { %v2036_v1 = vmul.f32 0.015625, %v2032_v21 }
0x1000   :  { %v2038_v51 = vsub.f32 %v4838_v7, %v2036_v1 }
0x1002   :  { %v2035_v22 = vpop.xlane.xlu1 %2034  ;;  %v2040_v25 = vmul.f32 %v2038_v51, %v2038_v51 }
0x1003   :  { %v2037_v26 = vmul.f32 0.015625, %v2035_v22 }
0x1004   :  { %v2042_v27 = vsel %vm325_vm3, %v2040_v25, 0.0 }
0x1005   :  { %v2039_v29 = vsub.f32 %v4843_v17, %v2037_v26  ;;  %2043 = vadd.xlane.f32.xlu0 %v2042_v27  ;;  %v4909_v26 = vld [vmem:[%s4591_s8 + $0x8] sm:$0xf] }
0x1007   :  { %v2041_v49 = vmul.f32 %v2039_v29, %v2039_v29 }
0x1009   :  { %v2045_v30 = vsel %vm329_vm4, %v2041_v49, 0.0  ;;  %v4914_v49 = vld [vmem:[%s4591_s8] sm:$0xff] }
0x100a   :  { %2046 = vadd.xlane.f32.xlu1 %v2045_v30 }
0x108e   :  { %v2044_v32 = vpop.xlane.xlu0 %2043 }
0x108f   :  { %v2048_v48 = vmul.f32 0.015625, %v2044_v32 }
0x1091   :  { %v2050_v52 = vadd.f32 1e-05, %v2048_v48 }
0x1093   :  { %4390 = vrsqrt.f32 %v2050_v52  ;;  %v2047_v53 = vpop.xlane.xlu1 %2046 }
0x1094   :  { %v2049_v54 = vmul.f32 0.015625, %v2047_v53 }
0x1096   :  { %v2051_v20 = vadd.f32 1e-05, %v2049_v54 }
0x1098   :  { %4392 = vrsqrt.f32 %v2051_v20 }
0x10a0   :  { %v4391_v50 = vpop.eup %4390 }
0x10a1   :  { %v2054_v56 = vmul.f32 %v4391_v50, %v2038_v51 }
0x10a3   :  { %v2062_v14 = vmul.f32 %v3865_v55, %v2054_v56 }
0x10a5   :  { %v4393_v57 = vpop.eup %4392  ;;  %v2070_v58 = vadd.f32 %v3866_v23, %v2062_v14 }
0x10a6   :  { %v2055_v18 = vmul.f32 %v4393_v57, %v2039_v29 }
0x10a7   :  { %3867 = vmatmul.mubr.msk.f32.vlgmr.msra.gmra.mxu0 %vm325_vm3, %v2070_v58 }
0x10a8   :  { %2159 = vmatprep.mubr.f32.mxu0 %v4454_v41  ;;  %v2063_v12 = vmul.f32 %v3865_v55, %v2055_v18 }
0x10aa   :  { %v2071_v59 = vadd.f32 %v3866_v23, %v2063_v12 }
0x10ac   :  { %3868 = vmatmul.mubr.msk.f32.gmra.mxu0 %vm325_vm3, %v2071_v59 }
0x1167   :  { %v2155_v28 = vpop.f32.mrf.mxu0 }
0x1168   :  { %v4867_v63 = vadd.f32 %v2155_v28, %v2076_v62 }
0x1169   :  { %v2157_v10 = vpop.f32.mrf.mxu0 }
0x116a   :  { %2168 = vrot.lane.b32.xlu1 %v4867_v63, %s4458_s4  ;;  %4192 = vmatprep.mubr.msk.f32.mxu0 %vm470_vm5, %v4867_v63  ;;  %v4882_v24 = vadd.f32 %v2157_v10, %v2080_v0 }
0x116c   :  { %v2161_v9 = vpop.f32.mrf.mxu0 }
0x116d   :  { %v4874_v2 = vadd.f32 %v2161_v9, %v2076_v62 }
0x116e   :  { %v2163_v3 = vpop.f32.mrf.mxu0 }
0x116f   :  { %v4876_v6 = vadd.f32 %v2163_v3, %v2080_v0  ;;  %2371 = vrot.lane.b32.xlu1 %v4874_v2, %s4460_s9  ;;  %2170 = vrot.lane.b32.xlu0 %v4874_v2, %s4458_s4  ;;  %s4478_s4 = smov 22  }
0x1171   :  { %4195 = vmatprep.subr.msk.mxu1 %vm588_vm6, %v4876_v6 }
0x1172   :  { %4196 = vmatpush3.msk.msra.mxu1 %vm588_vm6, %v4876_v6 }
0x1173   :  { %4197 = vmatprep.subr.mxu1 %v4882_v24  ;;  %2369 = vrot.lane.b32.xlu1 %v4867_v63, %s4460_s9  ;;  %s3810_s9 = sld [smem:[%s5147_s0 + %s4485_s13]]  }
0x1174   :  { %2365 = vrot.lane.b32.xlu0 %v4867_v63, %s4461_s10  ;;  %4198 = vmatpush3.msra.mxu1 %v4882_v24 }
0x1177   :  { %2367 = vrot.lane.b32.xlu1 %v4874_v2, %s4461_s10 }
0x11dc   :  { %v2169_v15 = vpop.permute.xlu1 %2168 }
0x11e1   :  { %v2171_v4 = vpop.permute.xlu0 %2170  ;;  %v2372_v8 = vpop.permute.xlu1 %2371 }
0x11e2   :  { %4188 = vmatprep.subr.msk.mxu0 %vm470_vm5, %v2171_v4 }
0x11e3   :  { %4189 = vmatpush3.xpose.msk.msra.mxu0 %vm470_vm5, %v2171_v4 }
0x11e4   :  { %4190 = vmatprep.subr.msk.mxu0 %vm470_vm5, %v2169_v15 }
0x11e5   :  { %v2370_v19 = vpop.permute.xlu1 %2369 }
0x11e6   :  { %v2366_v13 = vpop.permute.xlu0 %2365 }
0x11e7   :  { %4191 = vmatpush3.xpose.msk.msra.mxu0 %vm470_vm5, %v2169_v15 }
0x11e8   :  { %4202 = vmatprep.subr.msk.mxu0 %vm470_vm5, %v2372_v8 }
0x11e9   :  { %v2368_v21 = vpop.permute.xlu1 %2367 }
0x11ea   :  { %4193 = vmatmul.mubr.msk.f32.vlgmr.msra.gmra.mxu0 %vm470_vm5, %v4874_v2 }
0x11eb   :  { %4203 = vmatpush3.xpose.msk.msra.mxu0 %vm470_vm5, %v2372_v8  ;;  %4206 = vmatprep.mubr.msk.f32.mxu0 %vm470_vm5, %v2366_v13 }
0x11ec   :  { %4204 = vmatprep.subr.msk.mxu0 %vm470_vm5, %v2370_v19 }
0x11ef   :  { %4205 = vmatpush3.xpose.msk.msra.mxu0 %vm470_vm5, %v2370_v19 }
0x11f2   :  { %4207 = vmatmul.mubr.msk.f32.vlgmr.msra.gmra.mxu0 %vm470_vm5, %v2368_v21 }
0x12aa   :  { %v4194_v1 = vpop.f32.mrf.mxu0 }
0x12ab   :  { %v2256_v51 = vmul.f32 0.25, %v4194_v1 }
0x12ac   :  { %v2246_v22 = vpop.f32.mrf.mxu0 }
0x12ad   :  { %v2255_v25 = vmul.f32 0.25, %v2246_v22  ;;  %v2258_v27 = vadd.f32 %v4909_v26, %v2256_v51 }
0x12af   :  { %v2262_v29 = vsel %vm562_vm7, %v2258_v27, -inf  ;;  %v2257_v30 = vadd.f32 %v4914_v49, %v2255_v25 }
0x12b0   :  { %2263 = vmax.xlane.f32.xlu1 %v2262_v29 }
0x12b1   :  { %v2259_v11 = vsel %vm558_vm8, %v2257_v30, -inf }
0x12b2   :  { %2260 = vmax.xlane.f32.xlu0 %v2259_v11  ;;  %v4208_v33 = vpop.f32.mrf.mxu0 }
0x12b3   :  { %v2457_v35 = vmul.f32 0.25, %v4208_v33 }
0x12b4   :  { %v2447_v34 = vpop.f32.mrf.mxu0 }
0x12b5   :  { %v2456_v36 = vmul.f32 0.25, %v2447_v34  ;;  %v2459_v42 = vadd.f32 %v4909_v26, %v2457_v35 }
0x12b7   :  { %v2458_v37 = vadd.f32 %v4914_v49, %v2456_v36  ;;  %v2463_v40 = vsel %vm562_vm7, %v2459_v42, -inf }
0x12b9   :  { %v2460_v39 = vsel %vm558_vm8, %v2458_v37, -inf }
0x12ba   :  { %2461 = vmax.xlane.f32.xlu0 %v2460_v39 }
0x12be   :  { %2464 = vmax.xlane.f32.xlu0 %v2463_v40 }
0x1339   :  { %v2264_v43 = vpop.xlane.xlu1 %2263 }
0x133a   :  { %v2266_v44 = vsub.f32 %v2258_v27, %v2264_v43 }
0x133b   :  { %v2261_v45 = vpop.xlane.xlu0 %2260 }
0x133c   :  { %v2269_v16 = vmul.f32 1.442695, %v2266_v44  ;;  %v2265_v46 = vsub.f32 %v2257_v30, %v2261_v45 }
0x133e   :  { %4394 = vpow2.f32 %v2269_v16  ;;  %v2267_v31 = vmul.f32 1.442695, %v2265_v46 }
0x1340   :  { %4396 = vpow2.f32 %v2267_v31 }
0x1343   :  { %v2462_v47 = vpop.xlane.xlu0 %2461 }
0x1344   :  { %v2466_v32 = vsub.f32 %v2458_v37, %v2462_v47 }
0x1346   :  { %v2468_v48 = vmul.f32 1.442695, %v2466_v32 }
0x1347   :  { %v2465_v52 = vpop.xlane.xlu0 %2464 }
0x1348   :  { %4398 = vpow2.f32 %v2468_v48  ;;  %v2467_v53 = vsub.f32 %v2459_v42, %v2465_v52 }
0x134a   :  { %v2470_v54 = vmul.f32 1.442695, %v2467_v53 }
0x134b   :  { %v4395_v20 = vpop.eup %4394 }
0x134c   :  { %4400 = vpow2.f32 %v2470_v54  ;;  %v2274_v50 = vsel %vm562_vm7, %v4395_v20, 0.0 }
0x134d   :  { %v4397_v55 = vpop.eup %4396  ;;  %2275 = vadd.xlane.f32.xlu1 %v2274_v50 }
0x134e   :  { %v2271_v56 = vsel %vm558_vm8, %v4397_v55, 0.0 }
0x134f   :  { %2272 = vadd.xlane.f32.xlu0 %v2271_v56 }
0x1355   :  { %v4399_v23 = vpop.eup %4398 }
0x1356   :  { %v2472_v14 = vsel %vm558_vm8, %v4399_v23, 0.0 }
0x1357   :  { %2473 = vadd.xlane.f32.xlu0 %v2472_v14 }
0x1359   :  { %v4401_v57 = vpop.eup %4400 }
0x135a   :  { %v2475_v58 = vsel %vm562_vm7, %v4401_v57, 0.0 }
0x135b   :  { %2476 = vadd.xlane.f32.xlu1 %v2475_v58 }
0x136c   :  { %2483 = vrot.lane.b32.xlu1 %v4882_v24, %s4461_s10 }
0x136d   :  { %2485 = vrot.lane.b32.xlu0 %v4876_v6, %s4461_s10  ;;  %s4949_s10 = sld [smem:[%s5147_s0 + %s4478_s4]]  }
0x1370   :  { %2739 = vrot.lane.b32.xlu1 %v4874_v2, %s4463_s15 }
0x1371   :  { %2733 = vrot.lane.b32.xlu0 %v4867_v63, %s4464_s16 }
0x1373   :  { %v1971_v13 = vld [vmem:[%s4949_s10 + $0x10] sm:$0xff]  ;;  %v1970_v21 = vld [vmem:[%s4949_s10 + $0x8] sm:$0xff]  ;;  %v1969_v1 = vld [vmem:[%s4949_s10] sm:$0xff] }
0x1374   :  { %2737 = vrot.lane.b32.xlu1 %v4867_v63, %s4463_s15  ;;  %4223 = vmatprep.subr.mxu0 %v1970_v21 }
0x1375   :  { %3027 = vrot.lane.b32.xlu0 %v4874_v2, %s4465_s17  ;;  %4224 = vmatpush3.msra.mxu0 %v1970_v21 }
0x1376   :  { %4225 = vmatprep.subr.mxu0 %v1969_v1 }
0x1377   :  { %4226 = vmatpush3.msra.mxu0 %v1969_v1 }
0x1378   :  { %2735 = vrot.lane.b32.xlu1 %v4874_v2, %s4464_s16 }
0x1379   :  { %3021 = vrot.lane.b32.xlu0 %v4867_v63, %s4466_s18 }
0x137c   :  { %3025 = vrot.lane.b32.xlu1 %v4867_v63, %s4465_s17  ;;  %s3813_s17 = sld [smem:[%s5147_s0 + %s4463_s15]]   ;;  %s4487_s15 = smov 30  }
0x137d   :  { %s3811_s19 = sld [smem:[%s5147_s0 + %s4487_s15]]  }
0x1380   :  { %3023 = vrot.lane.b32.xlu1 %v4874_v2, %s4466_s18  ;;  %v1972_v2 = vld [vmem:[%s4949_s10 + $0x18] sm:$0xff] }
0x13d6   :  { %v2276_v18 = vpop.xlane.xlu1 %2275 }
0x13d7   :  { %4402 = vrcp.f32 %v2276_v18 }
0x13d8   :  { %v2273_v12 = vpop.xlane.xlu0 %2272 }
0x13d9   :  { %4404 = vrcp.f32 %v2273_v12 }
0x13e0   :  { %v2474_v59 = vpop.xlane.xlu0 %2473 }
0x13e1   :  { %4406 = vrcp.f32 %v2474_v59 }
0x13e4   :  { %v2486_v60 = vpop.permute.xlu0 %2485  ;;  %v2477_v62 = vpop.xlane.xlu1 %2476 }
0x13e5   :  { %v4403_v28 = vpop.eup %4402  ;;  %4408 = vrcp.f32 %v2477_v62  ;;  %4209 = vmatprep.subr.msk.mxu1 %vm588_vm6, %v2486_v60 }
0x13e6   :  { %v4405_v63 = vpop.eup %4404  ;;  %v2280_v9 = vmul.f32 %v4403_v28, %v4395_v20 }
0x13e7   :  { %v2279_v10 = vmul.f32 %v4405_v63, %v4397_v55 }
0x13e8   :  { %v2484_v0 = vpop.permute.xlu1 %2483  ;;  %v2734_v25 = vpop.permute.xlu0 %2733 }
0x13e9   :  { %4199 = vmatprep.mubr.msk.f32.mxu1 %vm558_vm8, %v2279_v10 }
0x13ea   :  { %4200 = vmatmul.mubr.msk.f32.vlgmr.msra.gmra.mxu1 %vm558_vm8, %v2280_v9 }
0x13eb   :  { %4210 = vmatpush3.msk.msra.mxu1 %vm588_vm6, %v2486_v60 }
0x13ec   :  { %4211 = vmatprep.subr.mxu1 %v2484_v0  ;;  %v2740_v19 = vpop.permute.xlu1 %2739  ;;  %v3028_v11 = vpop.permute.xlu0 %3027 }
0x13ed   :  { %4212 = vmatpush3.msra.mxu1 %v2484_v0 }
0x13ee   :  { %v4407_v3 = vpop.eup %4406  ;;  %4216 = vmatprep.subr.mxu1 %v1972_v2 }
0x13ef   :  { %v2480_v15 = vmul.f32 %v4407_v3, %v4399_v23 }
0x13f0   :  { %v2738_v29 = vpop.permute.xlu1 %2737  ;;  %v3022_v34 = vpop.permute.xlu0 %3021 }
0x13f1   :  { %4213 = vmatprep.mubr.msk.f32.mxu1 %vm558_vm8, %v2480_v15 }
0x13f2   :  { %v4409_v4 = vpop.eup %4408 }
0x13f3   :  { %v2481_v8 = vmul.f32 %v4409_v4, %v4401_v57 }
0x13f4   :  { %v2736_v33 = vpop.permute.xlu1 %2735 }
0x13f5   :  { %4214 = vmatmul.mubr.msk.f32.vlgmr.msra.gmra.mxu1 %vm558_vm8, %v2481_v8 }
0x13f6   :  { %4217 = vmatpush3.msra.mxu1 %v1972_v2 }
0x13f7   :  { %4218 = vmatprep.subr.mxu1 %v1971_v13 }
0x13f8   :  { %4219 = vmatpush3.msra.mxu1 %v1971_v13  ;;  %v3026_v35 = vpop.permute.xlu1 %3025 }
0x13f9   :  { %4230 = vmatprep.subr.msk.mxu1 %vm470_vm5, %v2740_v19 }
0x13fc   :  { %v3024_v36 = vpop.permute.xlu1 %3023 }
0x14aa   :  { %v4201_v51 = vpop.f32.mrf.mxu1 }
0x14ac   :  { %v2356_v22 = vpop.f32.mrf.mxu1 }
0x14ad   :  { %4227 = vmatprep.mubr.msk.f32.mxu0 %vm470_vm5, %v2356_v22 }
0x14ae   :  { %4228 = vmatmul.mubr.msk.f32.vlgmr.msra.gmra.mxu0 %vm470_vm5, %v4201_v51 }
0x14b5   :  { %v4215_v27 = vpop.f32.mrf.mxu1 }
0x14b7   :  { %v2562_v30 = vpop.f32.mrf.mxu1 }
0x14b8   :  { %4220 = vmatprep.mubr.msk.f32.mxu1 %vm470_vm5, %v2562_v30 }
0x14b9   :  { %4221 = vmatmul.mubr.msk.f32.vlgmr.msra.gmra.mxu1 %vm470_vm5, %v4215_v27 }
0x14ba   :  { %4231 = vmatpush3.xpose.msk.msra.mxu1 %vm470_vm5, %v2740_v19  ;;  %4234 = vmatprep.mubr.msk.f32.mxu1 %vm470_vm5, %v2734_v25 }
0x14bb   :  { %4232 = vmatprep.subr.msk.mxu1 %vm470_vm5, %v2738_v29 }
0x14be   :  { %4233 = vmatpush3.xpose.msk.msra.mxu1 %vm470_vm5, %v2738_v29 }
0x14bf   :  { %4251 = vmatprep.subr.msk.mxu1 %vm470_vm5, %v3028_v11 }
0x14c1   :  { %4235 = vmatmul.mubr.msk.f32.vlgmr.msra.gmra.mxu1 %vm470_vm5, %v2736_v33 }
0x14c2   :  { %4252 = vmatpush3.xpose.msk.msra.mxu1 %vm470_vm5, %v3028_v11  ;;  %4255 = vmatprep.mubr.msk.f32.mxu1 %vm470_vm5, %v3022_v34 }
0x14c3   :  { %4253 = vmatprep.subr.msk.mxu1 %vm470_vm5, %v3026_v35 }
0x14c6   :  { %4254 = vmatpush3.xpose.msk.msra.mxu1 %vm470_vm5, %v3026_v35 }
0x14c9   :  { %4256 = vmatmul.mubr.msk.f32.vlgmr.msra.gmra.mxu1 %vm470_vm5, %v3024_v36 }
0x14ca   :  { %3442 = vmatprep.mubr.f32.mxu1 %v4454_v41 }
0x156e   :  { %v4229_v37 = vpop.f32.mrf.mxu0 }
0x1570   :  { %v2724_v11 = vpop.f32.mrf.mxu0 }
0x1579   :  { %v4222_v39 = vpop.f32.mrf.mxu1 }
0x157a   :  { %v4978_v42 = vadd.f32 %v4229_v37, %v4222_v39 }
0x157b   :  { %v4980_v40 = vpop.f32.mrf.mxu1 }
0x1581   :  { %v4236_v43 = vpop.f32.mrf.mxu1 }
0x1582   :  { %v2825_v44 = vmul.f32 0.25, %v4236_v43 }
0x1583   :  { %v2815_v45 = vpop.f32.mrf.mxu1 }
0x1584   :  { %v2824_v16 = vmul.f32 0.25, %v2815_v45  ;;  %v2827_v46 = vadd.f32 %v4909_v26, %v2825_v44  ;;  %v1976_v44 = vld [vmem:[%s4949_s10 + $0x38] sm:$0xff]  ;;  %v1975_v45 = vld [vmem:[%s4949_s10 + $0x30] sm:$0xff] }
0x1586   :  { %v2831_v31 = vsel %vm562_vm7, %v2827_v46, -inf  ;;  %v2826_v47 = vadd.f32 %v4914_v49, %v2824_v16 }
0x1587   :  { %2832 = vmax.xlane.f32.xlu1 %v2831_v31 }
0x1588   :  { %v2828_v32 = vsel %vm558_vm8, %v2826_v47, -inf }
0x1589   :  { %2829 = vmax.xlane.f32.xlu0 %v2828_v32  ;;  %v4257_v48 = vpop.f32.mrf.mxu1 }
0x158a   :  { %v3113_v63 = vmul.f32 0.25, %v4257_v48 }
0x158b   :  { %v3103_v52 = vpop.f32.mrf.mxu1 }
0x158c   :  { %v3112_v53 = vmul.f32 0.25, %v3103_v52  ;;  %v3115_v10 = vadd.f32 %v4909_v26, %v3113_v63  ;;  %v1974_v26 = vld [vmem:[%s4949_s10 + $0x28] sm:$0xff]  ;;  %v1990_v63 = vld [vmem:[%s3807_s22 + $0x50] sm:$0xff] }
0x158e   :  { %v3114_v54 = vadd.f32 %v4914_v49, %v3112_v53  ;;  %v3119_v9 = vsel %vm562_vm7, %v3115_v10, -inf }
0x1590   :  { %v3116_v20 = vsel %vm558_vm8, %v3114_v54, -inf }
0x1598   :  { %2850 = vrot.lane.b32.xlu1 %v4882_v24, %s4464_s16 }
0x15bc   :  { %3117 = vmax.xlane.f32.xlu1 %v3116_v20 }
0x1610   :  { %v2833_v50 = vpop.xlane.xlu1 %2832 }
0x1611   :  { %v2835_v55 = vsub.f32 %v2827_v46, %v2833_v50  ;;  %v2725_v46 = vadd.f32 %v2724_v11, %v4980_v40 }
0x1612   :  { %v2830_v56 = vpop.xlane.xlu0 %2829 }
0x1613   :  { %v2838_v23 = vmul.f32 1.442695, %v2835_v55  ;;  %v2834_v14 = vsub.f32 %v2826_v47, %v2830_v56 }
0x1614   :  { %v2851_v49 = vpop.permute.xlu1 %2850 }
0x1615   :  { %4410 = vpow2.f32 %v2838_v23  ;;  %v2836_v57 = vmul.f32 1.442695, %v2834_v14 }
0x1617   :  { %4412 = vpow2.f32 %v2836_v57 }
0x1622   :  { %v4411_v58 = vpop.eup %4410 }
0x1623   :  { %v2843_v18 = vsel %vm562_vm7, %v4411_v58, 0.0 }
0x1624   :  { %v4413_v12 = vpop.eup %4412  ;;  %2844 = vadd.xlane.f32.xlu0 %v2843_v18 }
0x1625   :  { %v2840_v59 = vsel %vm558_vm8, %v4413_v12, 0.0 }
0x1628   :  { %2841 = vadd.xlane.f32.xlu0 %v2840_v59 }
0x163e   :  { %2852 = vrot.lane.b32.xlu0 %v4876_v6, %s4464_s16  ;;  %s4479_s16 = smov 23  }
0x163f   :  { %s3804_s14 = sld [smem:[%s5147_s0 + %s4479_s16]]  }
0x1645   :  { %v3118_v60 = vpop.xlane.xlu1 %3117  ;;  %v3905_v20 = vld [vmem:[%s3804_s14] ss:$0 sm:$0xff] }
0x1646   :  { %v3122_v62 = vsub.f32 %v3114_v54, %v3118_v60  ;;  %v1993_v60 = vld [vmem:[%s3807_s22 + $0x68] sm:$0xff] }
0x1648   :  { %v3124_v28 = vmul.f32 1.442695, %v3122_v62  ;;  %v1992_v62 = vld [vmem:[%s3807_s22 + $0x60] sm:$0xff] }
0x164a   :  { %4414 = vpow2.f32 %v3124_v28  ;;  %v1991_v28 = vld [vmem:[%s3807_s22 + $0x58] sm:$0xff] }
0x1657   :  { %v4415_v0 = vpop.eup %4414 }
0x1658   :  { %v3128_v2 = vsel %vm558_vm8, %v4415_v0, 0.0 }
0x165d   :  { %3120 = vmax.xlane.f32.xlu0 %v3119_v9  ;;  %v1988_v9 = vld [vmem:[%s3807_s22 + $0x40] sm:$0xff] }
0x1661   :  { %3129 = vadd.xlane.f32.xlu0 %v3128_v2  ;;  %v1986_v2 = vld [vmem:[%s3807_s22 + $0x30] sm:$0xff] }
0x1677   :  { %3140 = vrot.lane.b32.xlu0 %v4876_v6, %s4466_s18  ;;  %v1973_v6 = vld [vmem:[%s4949_s10 + $0x20] sm:$0xff] }
0x16ad   :  { %v2845_v3 = vpop.xlane.xlu0 %2844 }
0x16ae   :  { %4416 = vrcp.f32 %v2845_v3  ;;  %v1985_v3 = vld [vmem:[%s3807_s22 + $0x28] sm:$0xff] }
0x16b1   :  { %v2842_v15 = vpop.xlane.xlu0 %2841 }
0x16b2   :  { %4418 = vrcp.f32 %v2842_v15  ;;  %v1984_v15 = vld [vmem:[%s3807_s22 + $0x20] sm:$0xff] }
0x16b5   :  { %v2853_v4 = vpop.permute.xlu0 %2852 }
0x16b6   :  { %4237 = vmatprep.subr.msk.mxu0 %vm588_vm6, %v2853_v4 }
0x16b7   :  { %4238 = vmatpush3.msk.msra.mxu0 %vm588_vm6, %v2853_v4  ;;  %v1983_v4 = vld [vmem:[%s3807_s22 + $0x18] sm:$0xff] }
0x16b8   :  { %4239 = vmatprep.subr.mxu0 %v2851_v49 }
0x16b9   :  { %4240 = vmatpush3.msra.mxu0 %v2851_v49  ;;  %v1994_v49 = vld [vmem:[%s3807_s22 + $0x70] sm:$0xff] }
0x16ba   :  { %4244 = vmatprep.subr.mxu0 %v1974_v26 }
0x16bb   :  { %v4417_v8 = vpop.eup %4416 }
0x16bc   :  { %v2849_v21 = vmul.f32 %v4417_v8, %v4411_v58  ;;  %v1981_v8 = vld [vmem:[%s3807_s22 + $0x8] sm:$0xff] }
0x16bf   :  { %v4419_v13 = vpop.eup %4418 }
0x16c0   :  { %v2848_v19 = vmul.f32 %v4419_v13, %v4413_v12  ;;  %v1980_v13 = vld [vmem:[%s3807_s22] sm:$0xff] }
0x16c2   :  { %4241 = vmatprep.mubr.msk.f32.mxu0 %vm558_vm8, %v2848_v19 }
0x16c3   :  { %4242 = vmatmul.mubr.msk.f32.vlgmr.msra.gmra.mxu0 %vm558_vm8, %v2849_v21 }
0x16c4   :  { %4245 = vmatpush3.msra.mxu0 %v1974_v26  ;;  %v1982_v26 = vld [vmem:[%s3807_s22 + $0x10] sm:$0xff] }
0x16c5   :  { %4246 = vmatprep.subr.mxu0 %v1973_v6 }
0x16c6   :  { %4247 = vmatpush3.msra.mxu0 %v1973_v6 }
0x16e6   :  { %v3121_v1 = vpop.xlane.xlu0 %3120 }
0x16e7   :  { %v3123_v51 = vsub.f32 %v3115_v10, %v3121_v1  ;;  %v1989_v10 = vld [vmem:[%s3807_s22 + $0x48] sm:$0xff] }
0x16e9   :  { %v3126_v22 = vmul.f32 1.442695, %v3123_v51 }
0x16ea   :  { %v3130_v25 = vpop.xlane.xlu0 %3129 }
0x16eb   :  { %4420 = vpow2.f32 %v3126_v22 }
0x16ec   :  { %4422 = vrcp.f32 %v3130_v25 }
0x16ee   :  { %v3141_v27 = vpop.permute.xlu0 %3140 }
0x16ef   :  { %4258 = vmatprep.subr.msk.mxu0 %vm588_vm6, %v3141_v27 }
0x16f8   :  { %v4421_v29 = vpop.eup %4420 }
0x16f9   :  { %v3131_v30 = vsel %vm562_vm7, %v4421_v29, 0.0  ;;  %v4423_v33 = vpop.eup %4422 }
0x16fa   :  { %3132 = vadd.xlane.f32.xlu1 %v3131_v30  ;;  %v3136_v37 = vmul.f32 %v4423_v33, %v4415_v0  ;;  %v1987_v0 = vld [vmem:[%s3807_s22 + $0x38] sm:$0xff]  ;;  %v5047_v30 = vld [vmem:[%s3805_s26] ss:$0 sm:$0xff] }
0x16fb   :  { %v5049_v33 = vld [vmem:[%s3806_s30] ss:$0 sm:$0xff] }
0x170b   :  { %3138 = vrot.lane.b32.xlu1 %v4882_v24, %s4466_s18 }
0x1783   :  { %v4243_v34 = vpop.f32.mrf.mxu0  ;;  %v3133_v35 = vpop.xlane.xlu1 %3132 }
0x1784   :  { %4424 = vrcp.f32 %v3133_v35 }
0x1785   :  { %v2929_v36 = vpop.f32.mrf.mxu0 }
0x1786   :  { %4248 = vmatprep.mubr.msk.f32.mxu0 %vm470_vm5, %v2929_v36  ;;  %v2028_v36 = vld [vmem:[%s5058_s5 + $0xf8] sm:$0xff] }
0x1787   :  { %4249 = vmatmul.mubr.msk.f32.vlgmr.msra.gmra.mxu0 %vm470_vm5, %v4243_v34  ;;  %v3139_v39 = vpop.permute.xlu1 %3138 }
0x1788   :  { %4259 = vmatpush3.msk.msra.mxu0 %vm588_vm6, %v3141_v27  ;;  %4262 = vmatprep.mubr.msk.f32.mxu0 %vm558_vm8, %v3136_v37  ;;  %v2012_v37 = vld [vmem:[%s5058_s5 + $0x78] sm:$0xff] }
0x1789   :  { %4260 = vmatprep.subr.mxu0 %v3139_v39 }
0x178a   :  { %4261 = vmatpush3.msra.mxu0 %v3139_v39  ;;  %v2027_v39 = vld [vmem:[%s5058_s5 + $0xf0] sm:$0xff] }
0x178b   :  { %4265 = vmatprep.subr.mxu0 %v1976_v44 }
0x1791   :  { %v4425_v24 = vpop.eup %4424 }
0x1792   :  { %v3137_v43 = vmul.f32 %v4425_v24, %v4421_v29  ;;  %v2011_v24 = vld [vmem:[%s5058_s5 + $0x70] sm:$0xff] }
0x1794   :  { %4263 = vmatmul.mubr.msk.f32.vlgmr.msra.gmra.mxu0 %vm558_vm8, %v3137_v43  ;;  %v2026_v43 = vld [vmem:[%s5058_s5 + $0xe8] sm:$0xff] }
0x1795   :  { %4266 = vmatpush3.msra.mxu0 %v1976_v44  ;;  %v2010_v44 = vld [vmem:[%s5058_s5 + $0x68] sm:$0xff] }
0x1796   :  { %4267 = vmatprep.subr.mxu0 %v1975_v45 }
0x1797   :  { %4268 = vmatpush3.msra.mxu0 %v1975_v45  ;;  %v2025_v45 = vld [vmem:[%s5058_s5 + $0xe0] sm:$0xff] }
0x1798   :  { %4052 = vmatprep.subr.mxu0 %v2028_v36 }
0x1847   :  { %v4250_v16 = vpop.f32.mrf.mxu0 }
0x1848   :  { %v3020_v31 = vadd.f32 %v4250_v16, %v4978_v42  ;;  %v2009_v16 = vld [vmem:[%s5058_s5 + $0x60] sm:$0xff] }
0x1849   :  { %v3010_v47 = vpop.f32.mrf.mxu0 }
0x184a   :  { %v3019_v32 = vadd.f32 %v3010_v47, %v2725_v46  ;;  %v2024_v46 = vld [vmem:[%s5058_s5 + $0xd8] sm:$0xff]  ;;  %v2023_v47 = vld [vmem:[%s5058_s5 + $0xd0] sm:$0xff] }
0x1854   :  { %v4264_v48 = vpop.f32.mrf.mxu0 }
0x1856   :  { %v3217_v52 = vpop.f32.mrf.mxu0 }
0x1857   :  { %4269 = vmatprep.mubr.msk.f32.mxu0 %vm470_vm5, %v3217_v52  ;;  %v2006_v52 = vld [vmem:[%s5058_s5 + $0x48] sm:$0xff] }
0x1858   :  { %4270 = vmatmul.mubr.msk.f32.vlgmr.msra.gmra.mxu0 %vm470_vm5, %v4264_v48  ;;  %v2022_v48 = vld [vmem:[%s5058_s5 + $0xc8] sm:$0xff] }
0x1859   :  { %4053 = vmatpush3.msra.mxu0 %v2012_v37 }
0x185a   :  { %4054 = vmatprep.subr.mxu0 %v2027_v39 }
0x185b   :  { %4055 = vmatpush3.msra.mxu0 %v2011_v24 }
0x185c   :  { %4056 = vmatprep.subr.mxu0 %v2026_v43 }
0x185d   :  { %4057 = vmatpush3.msra.mxu0 %v2010_v44 }
0x185e   :  { %4058 = vmatprep.subr.mxu0 %v2025_v45 }
0x185f   :  { %4059 = vmatpush3.msra.mxu0 %v2009_v16 }
0x1860   :  { %4060 = vmatprep.subr.mxu0 %v2024_v46 }
0x1918   :  { %v4271_v53 = vpop.f32.mrf.mxu0 }
0x1919   :  { %v3308_v54 = vadd.f32 %v4271_v53, %v3020_v31  ;;  %v2008_v31 = vld [vmem:[%s5058_s5 + $0x58] sm:$0xff]  ;;  %v2021_v53 = vld [vmem:[%s5058_s5 + $0xc0] sm:$0xff] }
0x191a   :  { %v3298_v50 = vpop.f32.mrf.mxu0  ;;  %4061 = vmatpush3.msra.mxu0 %v2008_v31 }
0x191b   :  { %v3310_v40 = vadd.f32 %v3308_v54, %v4843_v17  ;;  %v3307_v42 = vadd.f32 %v3298_v50, %v3019_v32  ;;  %4062 = vmatprep.subr.mxu0 %v2023_v47  ;;  %v2007_v32 = vld [vmem:[%s5058_s5 + $0x50] sm:$0xff]  ;;  %v2005_v54 = vld [vmem:[%s5058_s5 + $0x40] sm:$0xff]  ;;  %v2004_v50 = vld [vmem:[%s5058_s5 + $0x38] sm:$0xff] }
0x191c   :  { %4063 = vmatpush3.msra.mxu0 %v2007_v32 }
0x191d   :  { %v3309_v55 = vadd.f32 %v3307_v42, %v4838_v7  ;;  %v3318_v56 = vadd.f32 %v3905_v20, %v3310_v40  ;;  %v1995_v7 = vld [vmem:[%s3807_s22 + $0x78] sm:$0xff]  ;;  %4064 = vmatprep.subr.mxu0 %v2022_v48  ;;  %v2019_v40 = vld [vmem:[%s5058_s5 + $0xb0] sm:$0xff] }
0x191e   :  { %3394 = vmatprep.subr.mxu1 %v1995_v7  ;;  %4065 = vmatpush3.msra.mxu0 %v2006_v52  ;;  %v2003_v42 = vld [vmem:[%s5058_s5 + $0x30] sm:$0xff]  ;;  %v1998_v7 = vld [vmem:[%s5058_s5 + $0x8] sm:$0xff] }
0x191f   :  { %v5025_v23 = vadd.f32 %v3905_v20, %v3309_v55  ;;  %v3322_v17 = vsel %vm329_vm4, %v3318_v56, 0.0  ;;  %3395 = vmatpush1.msra.mxu1 %v1994_v49  ;;  %4066 = vmatprep.subr.mxu0 %v2021_v53  ;;  %v2020_v20 = vld [vmem:[%s5058_s5 + $0xb8] sm:$0xff]  ;;  %v2018_v55 = vld [vmem:[%s5058_s5 + $0xa8] sm:$0xff]  ;;  %v2013_v49 = vld [vmem:[%s5058_s5 + $0x80] sm:$0xff] }
0x1920   :  { %3396 = vmatprep.subr.mxu1 %v1993_v60  ;;  %4067 = vmatpush3.msra.mxu0 %v2005_v54  ;;  %v1997_v60 = vld [vmem:[%s5058_s5] sm:$0xff] }
0x1921   :  { %v3319_v14 = vsel %vm325_vm3, %v5025_v23, 0.0  ;;  %3397 = vmatpush1.msra.mxu1 %v1992_v62  ;;  %4068 = vmatprep.subr.mxu0 %v2020_v20 }
0x1922   :  { %3320 = vadd.xlane.f32.xlu1 %v3319_v14  ;;  %3398 = vmatprep.subr.mxu1 %v1991_v28  ;;  %v2017_v14 = vld [vmem:[%s5058_s5 + $0xa0] sm:$0xff] }
0x1923   :  { %3399 = vmatpush1.msra.mxu1 %v1990_v63  ;;  %4069 = vmatpush3.msra.mxu0 %v2004_v50 }
0x1924   :  { %3400 = vmatprep.subr.mxu1 %v1989_v10  ;;  %4070 = vmatprep.subr.mxu0 %v2019_v40 }
0x1925   :  { %3401 = vmatpush1.msra.mxu1 %v1988_v9  ;;  %4071 = vmatpush3.msra.mxu0 %v2003_v42 }
0x1926   :  { %3402 = vmatprep.subr.mxu1 %v1987_v0  ;;  %4072 = vmatprep.subr.mxu0 %v2018_v55 }
0x1927   :  { %3403 = vmatpush1.msra.mxu1 %v1986_v2 }
0x1928   :  { %3404 = vmatprep.subr.mxu1 %v1985_v3  ;;  %v1996_v3 = vld [vmem:[%s3808_s12] sm:$0x3] }
0x1929   :  { %3405 = vmatpush1.msra.mxu1 %v1984_v15  ;;  %v5100_v15 = vrot.slane %v1996_v3, %v4556_v61 }
0x192a   :  { %3406 = vmatprep.subr.mxu1 %v1983_v4  ;;  %v5103_v4 = vrot.slane %v1996_v3, %v4569_v5 }
0x192b   :  { %3407 = vmatpush1.msra.mxu1 %v1982_v26 }
0x192c   :  { %3408 = vmatprep.subr.mxu1 %v1981_v8 }
0x192d   :  { %3409 = vmatpush1.msra.mxu1 %v1980_v13 }
0x192e   :  { %4272 = vmatprep.subr.mxu1 %v4454_v41 }
0x19ab   :  { %v3321_v57 = vpop.xlane.xlu1 %3320 }
0x19ac   :  { %v3325_v58 = vmul.f32 0.015625, %v3321_v57  ;;  %v2001_v57 = vld [vmem:[%s5058_s5 + $0x20] sm:$0xff] }
0x19ae   :  { %v3327_v18 = vsub.f32 %v5025_v23, %v3325_v58  ;;  %v2016_v58 = vld [vmem:[%s5058_s5 + $0x98] sm:$0xff] }
0x19b0   :  { %v3329_v12 = vmul.f32 %v3327_v18, %v3327_v18 }
0x19b2   :  { %v3331_v59 = vsel %vm325_vm3, %v3329_v12, 0.0  ;;  %v2015_v12 = vld [vmem:[%s5058_s5 + $0x90] sm:$0xff] }
0x19b3   :  { %3332 = vadd.xlane.f32.xlu0 %v3331_v59  ;;  %v1999_v59 = vld [vmem:[%s5058_s5 + $0x10] sm:$0xff] }
0x19b7   :  { %3323 = vadd.xlane.f32.xlu0 %v3322_v17  ;;  %v2014_v17 = vld [vmem:[%s5058_s5 + $0x88] sm:$0xff] }
0x1a3c   :  { %v3333_v19 = vpop.xlane.xlu0 %3332 }
0x1a3d   :  { %v3337_v21 = vmul.f32 0.015625, %v3333_v19 }
0x1a3f   :  { %v3339_v6 = vadd.f32 1e-05, %v3337_v21 }
0x1a40   :  { %v3324_v1 = vpop.xlane.xlu0 %3323 }
0x1a41   :  { %4426 = vrsqrt.f32 %v3339_v6  ;;  %v3326_v51 = vmul.f32 0.015625, %v3324_v1 }
0x1a43   :  { %v5036_v22 = vsub.f32 %v3318_v56, %v3326_v51  ;;  %v2002_v56 = vld [vmem:[%s5058_s5 + $0x28] sm:$0xff] }
0x1a44   :  { %4073 = vmatpush3.msra.mxu0 %v2002_v56 }
0x1a45   :  { %v3330_v25 = vmul.f32 %v5036_v22, %v5036_v22  ;;  %4074 = vmatprep.subr.mxu0 %v2017_v14 }
0x1a46   :  { %4075 = vmatpush3.msra.mxu0 %v2001_v57 }
0x1a47   :  { %v3334_v27 = vsel %vm329_vm4, %v3330_v25, 0.0  ;;  %4076 = vmatprep.subr.mxu0 %v2016_v58  ;;  %vm3776_vm4 = vcmask 9216  }
0x1a48   :  { %3335 = vadd.xlane.f32.xlu1 %v3334_v27 }
0x1a4e   :  { %v4427_v29 = vpop.eup %4426 }
0x1a4f   :  { %v3343_v11 = vmul.f32 %v4427_v29, %v3327_v18  ;;  %v2000_v18 = vld [vmem:[%s5058_s5 + $0x18] sm:$0xff] }
0x1a50   :  { %4077 = vmatpush3.msra.mxu0 %v2000_v18 }
0x1a51   :  { %v3351_v34 = vmul.f32 %v5047_v30, %v3343_v11  ;;  %4078 = vmatprep.subr.mxu0 %v2015_v12 }
0x1a52   :  { %4079 = vmatpush3.msra.mxu0 %v1999_v59 }
0x1a53   :  { %v3359_v35 = vadd.f32 %v5049_v33, %v3351_v34  ;;  %4080 = vmatprep.subr.mxu0 %v2014_v17 }
0x1a54   :  { %4081 = vmatpush3.msra.mxu0 %v1998_v7 }
0x1a55   :  { %3908 = vmatmul.mubr.msk.f32.vlgmr.msra.gmra.mxu1 %vm325_vm3, %v3359_v35  ;;  %4082 = vmatprep.subr.mxu0 %v2013_v49 }
0x1a56   :  { %3448 = vmatprep.mubr.f32.mxu1 %v4454_v41  ;;  %4083 = vmatpush3.msra.mxu0 %v1997_v60 }
0x1ad1   :  { %v3336_v62 = vpop.xlane.xlu1 %3335 }
0x1ad2   :  { %v3338_v28 = vmul.f32 0.015625, %v3336_v62 }
0x1ad4   :  { %v3340_v63 = vadd.f32 1e-05, %v3338_v28 }
0x1ad6   :  { %4428 = vrsqrt.f32 %v3340_v63 }
0x1ae3   :  { %v4429_v10 = vpop.eup %4428 }
0x1ae4   :  { %v3344_v9 = vmul.f32 %v4429_v10, %v5036_v22 }
0x1ae6   :  { %v3352_v0 = vmul.f32 %v5047_v30, %v3344_v9 }
0x1ae8   :  { %v3360_v2 = vadd.f32 %v5049_v33, %v3352_v0 }
0x1aea   :  { %3909 = vmatmul.mubr.msk.f32.gmra.mxu1 %vm325_vm3, %v3360_v2 }
0x1aeb   :  { %4288 = vmatprep.mubr.msk.f32.mxu1 %vm4486_vm1, %v4454_v41 }
0x1b15   :  { %v3444_v26 = vpop.f32.mrf.mxu1 }
0x1b16   :  { %v3445_v8 = vadd.f32 %v3444_v26, %v5100_v15 }
0x1b17   :  { %v3446_v13 = vpop.f32.mrf.mxu1 }
0x1b18   :  { %v3459_v19 = vmul.f32 0.70710677, %v3445_v8  ;;  %v3447_v21 = vadd.f32 %v3446_v13, %v5103_v4  ;;  %v3455_v62 = vmul.f32 0.5, %v3445_v8 }
0x1b1a   :  { %v3471_v6 = vand.u32 2147483647, %v3459_v19  ;;  %v3460_v1 = vmul.f32 0.70710677, %v3447_v21  ;;  %vm3463_vm13 = vcmp.ge.f32.partialorder %v3459_v19, 0.0  ;;  %v3456_v49 = vmul.f32 0.5, %v3447_v21 }
0x1b1b   :  { %v3467_v57 = vsel %vm3463_vm13, 1.0, %v4472_v38 }
0x1b1c   :  { %v3475_v51 = vmul.f32 0.3275911, %v3471_v6  ;;  %v3472_v22 = vand.u32 2147483647, %v3460_v1  ;;  %v3527_v61 = vsub.f32 0.0, %v3471_v6  ;;  %vm3464_vm14 = vcmp.ge.f32.partialorder %v3460_v1, 0.0 }
0x1b1d   :  { %v3468_v59 = vsel %vm3464_vm14, 1.0, %v4472_v38 }
0x1b1e   :  { %v3479_v25 = vadd.f32 1.0, %v3475_v51  ;;  %v3476_v27 = vmul.f32 0.3275911, %v3472_v22  ;;  %v3528_v30 = vsub.f32 0.0, %v3472_v22  ;;  %v3531_v5 = vmul.f32 %v3527_v61, %v3471_v6 }
0x1b20   :  { %4430 = vrcp.f32 %v3479_v25  ;;  %v3480_v29 = vadd.f32 1.0, %v3476_v27  ;;  %v3532_v33 = vmul.f32 %v3528_v30, %v3472_v22  ;;  %v3535_v35 = vmul.f32 1.442695, %v3531_v5 }
0x1b22   :  { %4432 = vrcp.f32 %v3480_v29  ;;  %v3537_v39 = vmul.f32 1.442695, %v3532_v33 }
0x1b23   :  { %4434 = vpow2.f32 %v3535_v35 }
0x1b24   :  { %4436 = vpow2.f32 %v3537_v39 }
0x1b2d   :  { %v4431_v11 = vpop.eup %4430 }
0x1b2e   :  { %v3491_v34 = vmul.f32 1.0614054, %v4431_v11 }
0x1b2f   :  { %v4433_v36 = vpop.eup %4432 }
0x1b30   :  { %v3495_v37 = vadd.f32 -1.4531521, %v3491_v34  ;;  %v3492_v24 = vmul.f32 1.0614054, %v4433_v36  ;;  %v4435_v50 = vpop.eup %4434 }
0x1b31   :  { %v4437_v56 = vpop.eup %4436 }
0x1b32   :  { %v3499_v43 = vmul.f32 %v4431_v11, %v3495_v37  ;;  %v3496_v44 = vadd.f32 -1.4531521, %v3492_v24 }
0x1b34   :  { %v3503_v45 = vadd.f32 1.4214138, %v3499_v43  ;;  %v3500_v16 = vmul.f32 %v4433_v36, %v3496_v44 }
0x1b36   :  { %v3507_v46 = vmul.f32 %v4431_v11, %v3503_v45  ;;  %v3504_v31 = vadd.f32 1.4214138, %v3500_v16 }
0x1b38   :  { %v3511_v47 = vadd.f32 -0.28449672, %v3507_v46  ;;  %v3508_v32 = vmul.f32 %v4433_v36, %v3504_v31 }
0x1b3a   :  { %v3515_v48 = vmul.f32 %v4431_v11, %v3511_v47  ;;  %v3512_v52 = vadd.f32 -0.28449672, %v3508_v32 }
0x1b3c   :  { %v3519_v53 = vadd.f32 0.2548296, %v3515_v48  ;;  %v3516_v54 = vmul.f32 %v4433_v36, %v3512_v52 }
0x1b3e   :  { %v3523_v20 = vmul.f32 %v4431_v11, %v3519_v53  ;;  %v3520_v40 = vadd.f32 0.2548296, %v3516_v54 }
0x1b40   :  { %v3543_v42 = vmul.f32 %v4435_v50, %v3523_v20  ;;  %v3524_v55 = vmul.f32 %v4433_v36, %v3520_v40 }
0x1b42   :  { %v3547_v14 = vsub.f32 1.0, %v3543_v42  ;;  %v3544_v58 = vmul.f32 %v4437_v56, %v3524_v55 }
0x1b44   :  { %v3551_v18 = vmul.f32 %v3547_v14, %v3467_v57  ;;  %v3548_v12 = vsub.f32 1.0, %v3544_v58 }
0x1b46   :  { %v3552_v17 = vmul.f32 %v3548_v12, %v3468_v59  ;;  %v3555_v7 = vadd.f32 1.0, %v3551_v18 }
0x1b48   :  { %v3556_v60 = vadd.f32 1.0, %v3552_v17  ;;  %v3559_v63 = vmul.f32 %v3555_v7, %v3455_v62 }
0x1b4a   :  { %v3560_v28 = vmul.f32 %v3556_v60, %v3456_v49  ;;  %v3910_v60 = vld [vmem:[%s3810_s9] ss:$0 sm:$0xff] }
0x1b4c   :  { %3627 = vmatprep.mubr.f32.mxu0 %v3560_v28 }
0x1b4d   :  { %3628 = vmatmul.mubr.f32.vlgmr.msra.gmra.mxu0 %v3559_v63 }
0x1baa   :  { %v3450_v10 = vpop.f32.mrf.mxu1 }
0x1bab   :  { %v3451_v9 = vadd.f32 %v3450_v10, %v5100_v15 }
0x1bac   :  { %v3452_v0 = vpop.f32.mrf.mxu1 }
0x1bad   :  { %v3461_v2 = vmul.f32 0.70710677, %v3451_v9  ;;  %v3453_v3 = vadd.f32 %v3452_v0, %v5103_v4  ;;  %v3457_v18 = vmul.f32 0.5, %v3451_v9 }
0x1baf   :  { %v3473_v26 = vand.u32 2147483647, %v3461_v2  ;;  %v3462_v13 = vmul.f32 0.70710677, %v3453_v3  ;;  %vm3465_vm15 = vcmp.ge.f32.partialorder %v3461_v2, 0.0  ;;  %v3458_v57 = vmul.f32 0.5, %v3453_v3 }
0x1bb0   :  { %v3469_v20 = vsel %vm3465_vm15, 1.0, %v4472_v38 }
0x1bb1   :  { %v3477_v19 = vmul.f32 0.3275911, %v3473_v26  ;;  %v3474_v6 = vand.u32 2147483647, %v3462_v13  ;;  %v3529_v8 = vsub.f32 0.0, %v3473_v26  ;;  %vm3466_vm0 = vcmp.ge.f32.partialorder %v3462_v13, 0.0 }
0x1bb2   :  { %v3470_v55 = vsel %vm3466_vm0, 1.0, %v4472_v38  ;;  %v3681_v13 = vld [vmem:[%s3813_s17 + $0x38] sm:$0xff] }
0x1bb3   :  { %v3481_v1 = vadd.f32 1.0, %v3477_v19  ;;  %v3478_v51 = vmul.f32 0.3275911, %v3474_v6  ;;  %v3530_v22 = vsub.f32 0.0, %v3474_v6  ;;  %v3533_v25 = vmul.f32 %v3529_v8, %v3473_v26  ;;  %4273 = vmatpush3.msra.mxu1 %v3681_v13  ;;  %v3679_v19 = vld [vmem:[%s3813_s17 + $0x28] sm:$0xff]  ;;  %v3674_v8 = vld [vmem:[%s3813_s17] sm:$0xff] }
0x1bb4   :  { %4274 = vmatprep.subr.mxu1 %v4454_v41 }
0x1bb5   :  { %4438 = vrcp.f32 %v3481_v1  ;;  %v3482_v21 = vadd.f32 1.0, %v3478_v51  ;;  %v3534_v29 = vmul.f32 %v3530_v22, %v3474_v6  ;;  %v3539_v61 = vmul.f32 1.442695, %v3533_v25  ;;  %v3678_v6 = vld [vmem:[%s3813_s17 + $0x20] sm:$0xff]  ;;  %v3677_v1 = vld [vmem:[%s3813_s17 + $0x18] sm:$0xff]  ;;  %v3676_v51 = vld [vmem:[%s3813_s17 + $0x10] sm:$0xff] }
0x1bb7   :  { %4440 = vrcp.f32 %v3482_v21  ;;  %v3541_v11 = vmul.f32 1.442695, %v3534_v29  ;;  %v3675_v21 = vld [vmem:[%s3813_s17 + $0x8] sm:$0xff] }
0x1bb8   :  { %4442 = vpow2.f32 %v3539_v61  ;;  %v3911_v61 = vld [vmem:[%s3811_s19] ss:$0 sm:$0xff] }
0x1bb9   :  { %4444 = vpow2.f32 %v3541_v11  ;;  %v3913_v11 = vld [vmem:[%s3814_s27] ss:$0 sm:$0xff] }
0x1bc2   :  { %v4439_v27 = vpop.eup %4438 }
0x1bc3   :  { %v3493_v15 = vmul.f32 1.0614054, %v4439_v27 }
0x1bc4   :  { %v4441_v30 = vpop.eup %4440 }
0x1bc5   :  { %v3497_v5 = vadd.f32 -1.4531521, %v3493_v15  ;;  %v3494_v4 = vmul.f32 1.0614054, %v4441_v30  ;;  %v4443_v47 = vpop.eup %4442 }
0x1bc6   :  { %v4445_v53 = vpop.eup %4444 }
0x1bc7   :  { %v3501_v33 = vmul.f32 %v4439_v27, %v3497_v5  ;;  %v3498_v34 = vadd.f32 -1.4531521, %v3494_v4 }
0x1bc9   :  { %v3505_v35 = vadd.f32 1.4214138, %v3501_v33  ;;  %v3502_v36 = vmul.f32 %v4441_v30, %v3498_v34 }
0x1bcb   :  { %v3509_v37 = vmul.f32 %v4439_v27, %v3505_v35  ;;  %v3506_v39 = vadd.f32 1.4214138, %v3502_v36  ;;  %v3762_v35 = vld [vmem:[%s3782_s2] sm:$0x3] }
0x1bcc   :  { %vm3763_vm2 = vcmp.gt.f32.partialorder %v3762_v35, 0.0 }
0x1bcd   :  { %v3513_v24 = vadd.f32 -0.28449672, %v3509_v37  ;;  %v3510_v43 = vmul.f32 %v4441_v30, %v3506_v39 }
0x1bcf   :  { %v3517_v44 = vmul.f32 %v4439_v27, %v3513_v24  ;;  %v3514_v45 = vadd.f32 -0.28449672, %v3510_v43 }
0x1bd1   :  { %v3521_v16 = vadd.f32 0.2548296, %v3517_v44  ;;  %v3518_v46 = vmul.f32 %v4441_v30, %v3514_v45 }
0x1bd3   :  { %v3525_v31 = vmul.f32 %v4439_v27, %v3521_v16  ;;  %v3522_v32 = vadd.f32 0.2548296, %v3518_v46 }
0x1bd5   :  { %v3545_v48 = vmul.f32 %v4443_v47, %v3525_v31  ;;  %v3526_v52 = vmul.f32 %v4441_v30, %v3522_v32  ;;  %v3912_v30 = vld [vmem:[%s3812_s23] ss:$0 sm:$0xff] }
0x1bd7   :  { %v3549_v54 = vsub.f32 1.0, %v3545_v48  ;;  %v3546_v50 = vmul.f32 %v4445_v53, %v3526_v52 }
0x1bd9   :  { %v3553_v40 = vmul.f32 %v3549_v54, %v3469_v20  ;;  %v3550_v42 = vsub.f32 1.0, %v3546_v50 }
0x1bdb   :  { %v3554_v56 = vmul.f32 %v3550_v42, %v3470_v55  ;;  %v3557_v14 = vadd.f32 1.0, %v3553_v40 }
0x1bdd   :  { %v3558_v58 = vadd.f32 1.0, %v3554_v56  ;;  %v3561_v59 = vmul.f32 %v3557_v14, %v3457_v18 }
0x1bdf   :  { %v3562_v12 = vmul.f32 %v3558_v58, %v3458_v57 }
0x1be1   :  { %3632 = vmatprep.mubr.f32.mxu0 %v3562_v12 }
0x1be2   :  { %3633 = vmatmul.mubr.f32.gmra.mxu0 %v3561_v59 }
0x1c0d   :  { %v4084_v17 = vpop.f32.mrf.mxu0 }
0x1c0f   :  { %v4085_v7 = vpop.f32.mrf.mxu0 }
0x1c10   :  { %v4086_v49 = vadd.f32 %v4085_v7, %v4084_v17 }
0x1c12   :  { %v3637_v38 = vadd.f32 %v4086_v49, %v5025_v23  ;;  %v3680_v23 = vld [vmem:[%s3813_s17 + $0x30] sm:$0xff] }
0x1c13   :  { %4275 = vmatpush3.msra.mxu1 %v3680_v23 }
0x1c14   :  { %v3644_v62 = vadd.f32 %v3910_v60, %v3637_v38  ;;  %4276 = vmatprep.subr.mxu1 %v4454_v41 }
0x1c15   :  { %4277 = vmatpush3.msra.mxu1 %v3679_v19 }
0x1c16   :  { %v3647_v28 = vsel %vm325_vm3, %v3644_v62, 0.0  ;;  %4278 = vmatprep.subr.mxu1 %v4454_v41 }
0x1c17   :  { %3648 = vadd.xlane.f32.xlu0 %v3647_v28  ;;  %4279 = vmatpush3.msra.mxu1 %v3678_v6 }
0x1c18   :  { %4280 = vmatprep.subr.mxu1 %v4454_v41 }
0x1c19   :  { %4281 = vmatpush3.msra.mxu1 %v3677_v1 }
0x1c1a   :  { %4282 = vmatprep.subr.mxu1 %v4454_v41 }
0x1c1b   :  { %4283 = vmatpush3.msra.mxu1 %v3676_v51 }
0x1c1c   :  { %4284 = vmatprep.subr.mxu1 %v4454_v41 }
0x1c1d   :  { %4285 = vmatpush3.msra.mxu1 %v3675_v21 }
0x1c1e   :  { %4286 = vmatprep.subr.mxu1 %v4454_v41 }
0x1c1f   :  { %4287 = vmatpush3.msra.mxu1 %v3674_v8 }
0x1ca0   :  { %v3649_v63 = vpop.xlane.xlu0 %3648 }
0x1ca1   :  { %v3650_v10 = vmul.f32 0.015625, %v3649_v63 }
0x1ca2   :  { %v4087_v9 = vpop.f32.mrf.mxu0 }
0x1ca3   :  { %v3651_v0 = vsub.f32 %v3644_v62, %v3650_v10 }
0x1ca4   :  { %v4088_v2 = vpop.f32.mrf.mxu0 }
0x1ca5   :  { %v3652_v3 = vmul.f32 %v3651_v0, %v3651_v0 }
0x1ca7   :  { %v3653_v26 = vsel %vm325_vm3, %v3652_v3, 0.0 }
0x1ca8   :  { %3654 = vadd.xlane.f32.xlu1 %v3653_v26 }
0x1d31   :  { %v3655_v22 = vpop.xlane.xlu1 %3654 }
0x1d32   :  { %v3656_v25 = vmul.f32 0.015625, %v3655_v22 }
0x1d34   :  { %v3657_v27 = vadd.f32 1e-05, %v3656_v25 }
0x1d36   :  { %4446 = vrsqrt.f32 %v3657_v27 }
0x1d43   :  { %v4447_v29 = vpop.eup %4446 }
0x1d44   :  { %v3659_v15 = vmul.f32 %v4447_v29, %v3651_v0 }
0x1d46   :  { %v3666_v41 = vmul.f32 %v3911_v61, %v3659_v15 }
0x1d48   :  { %v3673_v5 = vadd.f32 %v3912_v30, %v3666_v41 }
0x1d4a   :  { %4289 = vmatmul.mubr.msk.f32.vlgmr.msra.gmra.mxu1 %vm325_vm3, %v3673_v5  ;;  %vm3774_vm3 = vcmask 7168  }
0x1e0a   :  { %v3758_v4 = vpop.f32.mrf.mxu1 }
0x1e0b   :  { %v3759_v33 = vadd.f32 %v3913_v11, %v3758_v4 }
0x1e0c   :  { %v4290_v34 = vpop.f32.mrf.mxu1 }
0x1e0d   :  { %3765 = vrot.lane.b32.xlu0 %v3759_v33, %s4490_s28 }
0x1e7f   :  { %v3766_v36 = vpop.permute.xlu0 %3765 }
0x1e80   :  { %v3768_v37 = vsel %vm3763_vm2, %v3766_v36, %v3759_v33  ;;  %v3769_v39 = vsel %vm3763_vm2, %v3759_v33, %v3766_v36 }
0x1e81   :  { %3771 = vrot.lane.b32.xlu1 %v3769_v39, %s4491_s29 }
0x1ef3   :  { %v3772_v24 = vpop.permute.xlu1 %3771 }
0x1ef4   :  { %v3775_v43 = vsel %vm3774_vm3, %v3768_v37, %v3772_v24 }
0x1ef5   :  { %3777 = vst.msk [vmem:[%s3815_s7] sm:$0x3] %vm3776_vm4, %v3775_v43 }

</bundles_post_ra>
